<compile_context>
chip_gen: v7x
topology: tpu7x:2x2x1
jax: 0.10.0
libtpu: 0.0.40
codegen_flags: <defaults>
</compile_context>

<pallas_src>
import functools

import jax
import jax.numpy as jnp
from jax import lax
from jax.experimental import pallas as pl
from jax.experimental.pallas import tpu as pltpu

_BN_EPS = 1e-5


# --------------------------- in-kernel helpers -------------------------------
def _shift_seq(x, steps, tb):
    """Shift a packed (C, W) activation by `steps` sequence positions.

    Packed layout lane = l*tb + b: a shift of `steps` positions is a shift of
    steps*tb lanes; zero fill at the array ends is exactly the conv 'same'
    padding and batch elements never leak into each other.
    """
    # TODO(synk): pltpu.roll (+ edge mask) or pl.ds reads from a VMEM scratch
    #             would avoid these concat copies once matmuls stop dominating.
    c, w = x.shape
    s = steps * tb
    if s == 0:
        return x
    z = jnp.zeros((c, abs(s)), x.dtype)
    if s > 0:
        return jnp.concatenate([x[:, s:], z], axis=1)
    return jnp.concatenate([z, x[:, :w + s]], axis=1)


def _conv_bn(x, w_flat, b_col, tb, mm_dtype):
    """BN-folded 'same' conv1d on a packed (Cin, W) activation -> (Cout, W) f32.

    w_flat: (Cout, K*Cin), column index k*Cin + c.  b_col: (Cout, 1) f32.
    One MXU matmul: the K lane-shifted taps are stacked along sublanes.
    """
    cin, _ = x.shape
    k = w_flat.shape[1] // cin
    pad = (k - 1) // 2
    xc = x.astype(mm_dtype)
    taps = jnp.concatenate([_shift_seq(xc, dk - pad, tb) for dk in range(k)],
                           axis=0)                                   # (K*Cin, W)
    y = jnp.dot(w_flat, taps, preferred_element_type=jnp.float32)    # MXU
    return y + b_col


def _maxpool2(x, s_even, tb, mm_dtype):
    """MaxPool1d(2,2): pairwise max (VPU) + one 0/1 compaction matmul."""
    pm = jnp.maximum(x, _shift_seq(x, 1, tb))          # valid at even positions
    return jnp.dot(pm.astype(mm_dtype), s_even, preferred_element_type=jnp.float32)


def _linear_head(v, wl, b_col, tb, mm_dtype):
    """Fused Flatten(1) + Linear.

    v: (d, Lq*tb) packed; wl: (E, Lq*d) with column index l*d + c (reordered on
    the host so no in-kernel reshape/transpose is needed); b_col: (E, 1).
    Returns (E, TB) float32.
    """
    _, w = v.shape
    lq = w // tb
    vc = v.astype(mm_dtype)
    vstack = jnp.concatenate([vc[:, l * tb:(l + 1) * tb] for l in range(lq)],
                             axis=0)                                 # (Lq*d, TB)
    return jnp.dot(wl, vstack, preferred_element_type=jnp.float32) + b_col


def _freq_encoder_kernel(xs_ref,
                         wap_ref, bap_ref, wm_ref, bm_ref,
                         w11_ref, b11_ref, w12_ref, b12_ref,
                         w21_ref, b21_ref, w22_ref, b22_ref,
                         s1_ref, s2_ref, wl_ref, bl_ref,
                         o_ref, *, tb, mm_dtype):
    xs = xs_ref[0]                                       # (2*Cin, TB*L) f32

    # conv_a & conv_p fused as one block-diagonal conv (+BN folded) + ReLU.
    ap = jnp.maximum(_conv_bn(xs, wap_ref[...], bap_ref[...], tb, mm_dtype), 0.0)

    # merge_conv on the (already channel-stacked) a/p output: Conv5 + BN.
    m = _conv_bn(ap, wm_ref[...], bm_ref[...], tb, mm_dtype)

    # conv1 branch: Conv5+BN+ReLU -> Conv3+BN.
    c1 = jnp.maximum(_conv_bn(m, w11_ref[...], b11_ref[...], tb, mm_dtype), 0.0)
    emb = _conv_bn(c1, w12_ref[...], b12_ref[...], tb, mm_dtype)

    # conv2 head: ReLU -> Conv3+BN+ReLU -> pool -> Conv3+BN+ReLU -> pool
    #             -> Flatten -> Linear (Dropout = identity at inference).
    r = jnp.maximum(m + emb, 0.0)                        # residual add in f32
    t1 = jnp.maximum(_conv_bn(r, w21_ref[...], b21_ref[...], tb, mm_dtype), 0.0)
    v1 = _maxpool2(t1, s1_ref[...], tb, mm_dtype)        # (d, TB*L/2)
    t2 = jnp.maximum(_conv_bn(v1, w22_ref[...], b22_ref[...], tb, mm_dtype), 0.0)
    v2 = _maxpool2(t2, s2_ref[...], tb, mm_dtype)        # (d, TB*L/4)

    o_ref[0] = _linear_head(v2, wl_ref[...], bl_ref[...], tb, mm_dtype)  # (E, TB)


# ------------------------------ host wrapper ---------------------------------
def _fold_bn(w, bn, eps=_BN_EPS):
    """Fold eval-mode BatchNorm1d into a bias-free conv; flat weight + bias."""
    gamma, beta, mean, var = (a.astype(jnp.float32) for a in bn)
    scale = gamma / jnp.sqrt(var + eps)
    w_eff = w.astype(jnp.float32) * scale[:, None, None]             # (Cout,Cin,K)
    b_eff = (beta - mean * scale).reshape(-1, 1)
    cout, cin, k = w.shape
    w_flat = jnp.transpose(w_eff, (0, 2, 1)).reshape(cout, k * cin)  # col=k*Cin+c
    return w_flat, b_eff


def _block_diag_ap(wa_flat, wp_flat, cin, k):
    """Fuse conv_a / conv_p into one block-diagonal weight over stacked channels."""
    d = wa_flat.shape[0]
    wa_r = wa_flat.reshape(d, k, cin)
    wp_r = wp_flat.reshape(d, k, cin)
    z = jnp.zeros((d, k, cin), jnp.float32)
    top = jnp.concatenate([wa_r, z], axis=2)     # first d rows read xa channels
    bot = jnp.concatenate([z, wp_r], axis=2)     # next  d rows read xp channels
    return jnp.concatenate([top, bot], axis=0).reshape(2 * d, k * 2 * cin)


def _pool_select(width, tb, dtype):
    """(W, W//2) 0/1 compaction of even sequence positions (lane = l*tb + b)."""
    j = jnp.arange(width // 2)
    src = 2 * (j // tb) * tb + (j % tb)
    return (jnp.arange(width)[:, None] == src[None, :]).astype(dtype)


def _pack_batch(x, tb):
    """(B, C, L) -> (B//tb, C, L*tb) with lane = l*tb + b (batch-minor)."""
    b, c, l = x.shape
    return (x.reshape(b // tb, tb, c, l)
             .transpose(0, 2, 3, 1)
             .reshape(b // tb, c, l * tb))


def freq_encoder_pallas(xa, xp, P, *, batch_tile=None, mm_dtype=jnp.bfloat16):
    """xa, xp: (B, in_dim, n_freq) float32 (PyTorch NCL). Returns (B, emb_dim)."""
    B, cin, L = xa.shape
    d = P["wa"].shape[0]
    E = P["w12"].shape[0]
    assert E == d, "residual merge_emb + emb requires emb_dim == d_model"
    assert L % 4 == 0, "two MaxPool1d(2,2) stages require n_freq % 4 == 0"

    # Batch tile: pack TB sequences onto the lane axis (target ~256 live lanes,
    # capped at B); pad B up to a multiple of TB and slice the result.
    if batch_tile is None:
        batch_tile = max(1, min(B, pl.cdiv(256, L)))
    tb = int(batch_tile)
    nt = pl.cdiv(B, tb)
    b_pad = nt * tb
    xa = xa.astype(jnp.float32)
    xp = xp.astype(jnp.float32)
    if b_pad != B:
        padding = ((0, b_pad - B), (0, 0), (0, 0))
        xa = jnp.pad(xa, padding)
        xp = jnp.pad(xp, padding)
    W = L * tb

    # BN-folded weights (folded in f32, matmul operands cast to mm_dtype).
    wa, ba = _fold_bn(P["wa"], P["bn_a"])
    wp, bp = _fold_bn(P["wp"], P["bn_p"])
    wap = _block_diag_ap(wa, wp, cin, P["wa"].shape[2]).astype(mm_dtype)
    bap = jnp.concatenate([ba, bp], axis=0)
    wm, bm = _fold_bn(P["wm"], P["bn_m"])
    w11, b11 = _fold_bn(P["w11"], P["bn11"])
    w12, b12 = _fold_bn(P["w12"], P["bn12"])
    w21, b21 = _fold_bn(P["w21"], P["bn21"])
    w22, b22 = _fold_bn(P["w22"], P["bn22"])

    # Pool compaction matrices (even positions only; odd matrices dropped).
    s1 = _pool_select(W, tb, mm_dtype)
    s2 = _pool_select(W // 2, tb, mm_dtype)

    # Final Linear: bake the torch Flatten(1) mapping (col = c*Lq + l) into the
    # packed stacking order (col = l*d + c) so the kernel needs no reshape.
    lq = L // 4
    wl = (P["wl"].astype(jnp.float32).reshape(E, d, lq)
          .transpose(0, 2, 1).reshape(E, lq * d).astype(mm_dtype))
    bl = P["bl"].astype(jnp.float32).reshape(E, 1)

    consts = (wap, bap,
              wm.astype(mm_dtype), bm,
              w11.astype(mm_dtype), b11,
              w12.astype(mm_dtype), b12,
              w21.astype(mm_dtype), b21,
              w22.astype(mm_dtype), b22,
              s1, s2, wl, bl)

    # Stack a/p channels (a first, then p) and pack onto the lane axis.
    xs = _pack_batch(jnp.concatenate([xa, xp], axis=1), tb)   # (nt, 2Cin, W)

    kernel = functools.partial(_freq_encoder_kernel, tb=tb, mm_dtype=mm_dtype)

    def run(const_bufs):
        def const_spec(arr):
            zeros = (0,) * arr.ndim
            if const_bufs is None:
                return pl.BlockSpec(arr.shape, lambda i: zeros)
            return pl.BlockSpec(arr.shape, lambda i: zeros,
                                pipeline_mode=pl.Buffered(const_bufs))

        return pl.pallas_call(
            kernel,
            out_shape=jax.ShapeDtypeStruct((nt, E, tb), jnp.float32),
            grid=(nt,),
            in_specs=[pl.BlockSpec((1, 2 * cin, W), lambda i: (i, 0, 0))]
                     + [const_spec(a) for a in consts],
            out_specs=pl.BlockSpec((1, E, tb), lambda i: (i, 0, 0)),
            compiler_params=pltpu.CompilerParams(
                dimension_semantics=("parallel",),
                vmem_limit_bytes=32 * 1024 * 1024),
        )(xs, *consts)

    try:
        out_t = run(1)      # grid-invariant constants: single buffer (saves VMEM)
    except Exception:
        out_t = run(None)   # fallback if pl.Buffered(1) is unsupported here

    out = out_t.transpose(0, 2, 1).reshape(b_pad, E)
    return out[:B]


# ------------------------- pure-JAX reference (checking) ---------------------
def _conv1d_ref(x, w, pad):
    return lax.conv_general_dilated(
        x, w, window_strides=(1,), padding=[(pad, pad)],
        dimension_numbers=("NCH", "OIH", "NCH"),
        precision=lax.Precision.HIGHEST)


def _bn_ref(x, bn, eps=_BN_EPS):
    gamma, beta, mean, var = bn
    scale = gamma / jnp.sqrt(var + eps)
    return x * scale[None, :, None] + (beta - mean * scale)[None, :, None]


def _maxpool2_ref(x):
    b, c, l = x.shape
    return x.reshape(b, c, l // 2, 2).max(axis=-1)


def freq_encoder_ref(xa, xp, P):
    def cbr(x, w, bn, pad, relu=True):
        y = _bn_ref(_conv1d_ref(x, w, pad), bn)
        return jnp.maximum(y, 0.0) if relu else y

    ca = cbr(xa, P["wa"], P["bn_a"], 2)
    cp = cbr(xp, P["wp"], P["bn_p"], 2)
    merge = cbr(jnp.concatenate([ca, cp], axis=1), P["wm"], P["bn_m"], 2, relu=False)
    c1 = cbr(merge, P["w11"], P["bn11"], 2)
    emb = cbr(c1, P["w12"], P["bn12"], 1, relu=False)
    t = jnp.maximum(merge + emb, 0.0)
    t = cbr(t, P["w21"], P["bn21"], 1)
    t = _maxpool2_ref(t)
    t = cbr(t, P["w22"], P["bn22"], 1)
    t = _maxpool2_ref(t)
    flat = t.reshape(t.shape[0], -1)
    return jnp.dot(flat, P["wl"].T, precision=lax.Precision.HIGHEST) + P["bl"]


if __name__ == "__main__":
    # Small config exercising the batch tiling: 16 sequences of length 16 packed
    # 8 per grid step -> 128 live lanes per matmul, 2 (even) grid steps.
    B, in_dim, d_model, emb_dim, n_freq = 16, 4, 32, 32, 16

    key = jax.random.PRNGKey(0)
    keys = iter(jax.random.split(key, 64))

    def conv_w(cout, cin, k):
        return 0.2 * jax.random.normal(next(keys), (cout, cin, k), jnp.float32)

    def bn_p(c):
        gamma = 1.0 + 0.1 * jax.random.normal(next(keys), (c,), jnp.float32)
        beta = 0.1 * jax.random.normal(next(keys), (c,), jnp.float32)
        mean = 0.1 * jax.random.normal(next(keys), (c,), jnp.float32)
        var = 0.5 + jax.random.uniform(next(keys), (c,), jnp.float32)
        return (gamma, beta, mean, var)

    P = dict(
        wa=conv_w(d_model, in_dim, 5), bn_a=bn_p(d_model),
        wp=conv_w(d_model, in_dim, 5), bn_p=bn_p(d_model),
        wm=conv_w(d_model, 2 * d_model, 5), bn_m=bn_p(d_model),
        w11=conv_w(d_model, d_model, 5), bn11=bn_p(d_model),
        w12=conv_w(emb_dim, d_model, 3), bn12=bn_p(emb_dim),
        w21=conv_w(d_model, d_model, 3), bn21=bn_p(d_model),
        w22=conv_w(d_model, d_model, 3), bn22=bn_p(d_model),
        wl=0.2 * jax.random.normal(next(keys),
                                   (emb_dim, d_model * n_freq // 4), jnp.float32),
        bl=0.1 * jax.random.normal(next(keys), (emb_dim,), jnp.float32),
    )

    xa = jax.random.normal(next(keys), (B, in_dim, n_freq), jnp.float32)
    xp = jax.random.normal(next(keys), (B, in_dim, n_freq), jnp.float32)

    ref = freq_encoder_ref(xa, xp, P)

    # Exact-structure check: f32 matmul path must match the f32 reference tightly.
    out_f32 = jax.block_until_ready(
        freq_encoder_pallas(xa, xp, P, batch_tile=8, mm_dtype=jnp.float32))
    assert out_f32.shape == (B, emb_dim), out_f32.shape
    err_f32 = float(jnp.max(jnp.abs(out_f32 - ref)))
    assert jnp.allclose(out_f32, ref, atol=5e-3, rtol=5e-3), err_f32

    # Production path: bf16 matmul operands, f32 accumulation / elementwise.
    out_bf16 = jax.block_until_ready(
        freq_encoder_pallas(xa, xp, P, batch_tile=8, mm_dtype=jnp.bfloat16))
    rel = float(jnp.max(jnp.abs(out_bf16 - ref)) /
                jnp.maximum(jnp.max(jnp.abs(ref)), 1e-6))
    assert rel < 5e-2, rel

    print("KERNEL_OK")
</pallas_src>

<mosaic_0001>
module attributes {stable_mosaic.version = 11 : i64} {
  func.func @_freq_encoder_kernel(%arg0: i32, %arg1: memref<1x8x128xf32, #tpu.memory_space<vmem>>, %arg2: memref<64x40xf32, #tpu.memory_space<vmem>>, %arg3: memref<64x1xf32, #tpu.memory_space<vmem>>, %arg4: memref<32x320xf32, #tpu.memory_space<vmem>>, %arg5: memref<32x1xf32, #tpu.memory_space<vmem>>, %arg6: memref<32x160xf32, #tpu.memory_space<vmem>>, %arg7: memref<32x1xf32, #tpu.memory_space<vmem>>, %arg8: memref<32x96xf32, #tpu.memory_space<vmem>>, %arg9: memref<32x1xf32, #tpu.memory_space<vmem>>, %arg10: memref<32x96xf32, #tpu.memory_space<vmem>>, %arg11: memref<32x1xf32, #tpu.memory_space<vmem>>, %arg12: memref<32x96xf32, #tpu.memory_space<vmem>>, %arg13: memref<32x1xf32, #tpu.memory_space<vmem>>, %arg14: memref<128x64xf32, #tpu.memory_space<vmem>>, %arg15: memref<64x32xf32, #tpu.memory_space<vmem>>, %arg16: memref<32x128xf32, #tpu.memory_space<vmem>>, %arg17: memref<32x1xf32, #tpu.memory_space<vmem>>, %arg18: memref<1x32x8xf32, #tpu.memory_space<vmem>>) attributes {dimension_semantics = [#tpu.dimension_semantics<parallel>], iteration_bounds = array<i64: 2>, scalar_prefetch = 0 : i64, scratch_operands = 0 : i64, tpu.core_type = #tpu.core_type<tc>, window_params = [{transform_indices = @transform_0, window_bounds = array<i64: 1, 8, 128>}, {pipeline_mode = #tpu.pipeline_mode<synchronous>, transform_indices = @transform_1, window_bounds = array<i64: 64, 40>}, {pipeline_mode = #tpu.pipeline_mode<synchronous>, transform_indices = @transform_2, window_bounds = array<i64: 64, 1>}, {pipeline_mode = #tpu.pipeline_mode<synchronous>, transform_indices = @transform_3, window_bounds = array<i64: 32, 320>}, {pipeline_mode = #tpu.pipeline_mode<synchronous>, transform_indices = @transform_4, window_bounds = array<i64: 32, 1>}, {pipeline_mode = #tpu.pipeline_mode<synchronous>, transform_indices = @transform_5, window_bounds = array<i64: 32, 160>}, {pipeline_mode = #tpu.pipeline_mode<synchronous>, transform_indices = @transform_6, window_bounds = array<i64: 32, 1>}, {pipeline_mode = #tpu.pipeline_mode<synchronous>, transform_indices = @transform_7, window_bounds = array<i64: 32, 96>}, {pipeline_mode = #tpu.pipeline_mode<synchronous>, transform_indices = @transform_8, window_bounds = array<i64: 32, 1>}, {pipeline_mode = #tpu.pipeline_mode<synchronous>, transform_indices = @transform_9, window_bounds = array<i64: 32, 96>}, {pipeline_mode = #tpu.pipeline_mode<synchronous>, transform_indices = @transform_10, window_bounds = array<i64: 32, 1>}, {pipeline_mode = #tpu.pipeline_mode<synchronous>, transform_indices = @transform_11, window_bounds = array<i64: 32, 96>}, {pipeline_mode = #tpu.pipeline_mode<synchronous>, transform_indices = @transform_12, window_bounds = array<i64: 32, 1>}, {pipeline_mode = #tpu.pipeline_mode<synchronous>, transform_indices = @transform_13, window_bounds = array<i64: 128, 64>}, {pipeline_mode = #tpu.pipeline_mode<synchronous>, transform_indices = @transform_14, window_bounds = array<i64: 64, 32>}, {pipeline_mode = #tpu.pipeline_mode<synchronous>, transform_indices = @transform_15, window_bounds = array<i64: 32, 128>}, {pipeline_mode = #tpu.pipeline_mode<synchronous>, transform_indices = @transform_16, window_bounds = array<i64: 32, 1>}, {transform_indices = @transform_17, window_bounds = array<i64: 1, 32, 8>}]} {
    %c0 = arith.constant 0 : index
    %c0_0 = arith.constant 0 : index
    %c0_1 = arith.constant 0 : index
    %0 = vector.load %arg1[%c0, %c0_0, %c0_1] : memref<1x8x128xf32, #tpu.memory_space<vmem>>, vector<1x8x128xf32>
    %1 = vector.shape_cast %0 : vector<1x8x128xf32> to vector<8x128xf32>
    %c0_2 = arith.constant 0 : index
    %c0_3 = arith.constant 0 : index
    %2 = vector.load %arg2[%c0_2, %c0_3] : memref<64x40xf32, #tpu.memory_space<vmem>>, vector<64x40xf32>
    %c0_4 = arith.constant 0 : index
    %c0_5 = arith.constant 0 : index
    %3 = vector.load %arg3[%c0_4, %c0_5] : memref<64x1xf32, #tpu.memory_space<vmem>>, vector<64x1xf32>
    %cst = arith.constant 0.000000e+00 : f32
    %4 = vector.broadcast %cst : f32 to vector<8x16xf32>
    %5 = vector.extract_strided_slice %1 {offsets = [0, 0], sizes = [8, 112], strides = [1, 1]} : vector<8x128xf32> to vector<8x112xf32>
    %6 = tpu.concatenate %4, %5 in 1 : vector<8x16xf32>, vector<8x112xf32> -> vector<8x128xf32>
    %cst_6 = arith.constant 0.000000e+00 : f32
    %7 = vector.broadcast %cst_6 : f32 to vector<8x8xf32>
    %8 = vector.extract_strided_slice %1 {offsets = [0, 0], sizes = [8, 120], strides = [1, 1]} : vector<8x128xf32> to vector<8x120xf32>
    %9 = tpu.concatenate %7, %8 in 1 : vector<8x8xf32>, vector<8x120xf32> -> vector<8x128xf32>
    %cst_7 = arith.constant 0.000000e+00 : f32
    %10 = vector.broadcast %cst_7 : f32 to vector<8x8xf32>
    %11 = vector.extract_strided_slice %1 {offsets = [0, 8], sizes = [8, 120], strides = [1, 1]} : vector<8x128xf32> to vector<8x120xf32>
    %12 = tpu.concatenate %11, %10 in 1 : vector<8x120xf32>, vector<8x8xf32> -> vector<8x128xf32>
    %cst_8 = arith.constant 0.000000e+00 : f32
    %13 = vector.broadcast %cst_8 : f32 to vector<8x16xf32>
    %14 = vector.extract_strided_slice %1 {offsets = [0, 16], sizes = [8, 112], strides = [1, 1]} : vector<8x128xf32> to vector<8x112xf32>
    %15 = tpu.concatenate %14, %13 in 1 : vector<8x112xf32>, vector<8x16xf32> -> vector<8x128xf32>
    %16 = tpu.concatenate %6, %9, %1, %12, %15 in 0 : vector<8x128xf32>, vector<8x128xf32>, vector<8x128xf32>, vector<8x128xf32>, vector<8x128xf32> -> vector<40x128xf32>
    %cst_9 = arith.constant dense<0.000000e+00> : vector<64x128xf32>
    %17 = tpu.matmul %2, %16, %cst_9 {dimension_numbers = #tpu.dot_dimension_numbers<[1], [0], [0], [1], [0, 0, 1, 1], [], []>} : vector<64x40xf32>, vector<40x128xf32>, vector<64x128xf32> -> vector<64x128xf32>
    %18 = vector.broadcast %3 : vector<64x1xf32> to vector<64x128xf32>
    %19 = arith.addf %17, %18 : vector<64x128xf32>
    %cst_10 = arith.constant 0.000000e+00 : f32
    %20 = vector.broadcast %cst_10 : f32 to vector<64x128xf32>
    %21 = arith.maximumf %19, %20 : vector<64x128xf32>
    %c0_11 = arith.constant 0 : index
    %c0_12 = arith.constant 0 : index
    %22 = vector.load %arg4[%c0_11, %c0_12] : memref<32x320xf32, #tpu.memory_space<vmem>>, vector<32x320xf32>
    %c0_13 = arith.constant 0 : index
    %c0_14 = arith.constant 0 : index
    %23 = vector.load %arg5[%c0_13, %c0_14] : memref<32x1xf32, #tpu.memory_space<vmem>>, vector<32x1xf32>
    %cst_15 = arith.constant 0.000000e+00 : f32
    %24 = vector.broadcast %cst_15 : f32 to vector<64x16xf32>
    %25 = vector.extract_strided_slice %21 {offsets = [0, 0], sizes = [64, 112], strides = [1, 1]} : vector<64x128xf32> to vector<64x112xf32>
    %26 = tpu.concatenate %24, %25 in 1 : vector<64x16xf32>, vector<64x112xf32> -> vector<64x128xf32>
    %cst_16 = arith.constant 0.000000e+00 : f32
    %27 = vector.broadcast %cst_16 : f32 to vector<64x8xf32>
    %28 = vector.extract_strided_slice %21 {offsets = [0, 0], sizes = [64, 120], strides = [1, 1]} : vector<64x128xf32> to vector<64x120xf32>
    %29 = tpu.concatenate %27, %28 in 1 : vector<64x8xf32>, vector<64x120xf32> -> vector<64x128xf32>
    %cst_17 = arith.constant 0.000000e+00 : f32
    %30 = vector.broadcast %cst_17 : f32 to vector<64x8xf32>
    %31 = vector.extract_strided_slice %21 {offsets = [0, 8], sizes = [64, 120], strides = [1, 1]} : vector<64x128xf32> to vector<64x120xf32>
    %32 = tpu.concatenate %31, %30 in 1 : vector<64x120xf32>, vector<64x8xf32> -> vector<64x128xf32>
    %cst_18 = arith.constant 0.000000e+00 : f32
    %33 = vector.broadcast %cst_18 : f32 to vector<64x16xf32>
    %34 = vector.extract_strided_slice %21 {offsets = [0, 16], sizes = [64, 112], strides = [1, 1]} : vector<64x128xf32> to vector<64x112xf32>
    %35 = tpu.concatenate %34, %33 in 1 : vector<64x112xf32>, vector<64x16xf32> -> vector<64x128xf32>
    %36 = tpu.concatenate %26, %29, %21, %32, %35 in 0 : vector<64x128xf32>, vector<64x128xf32>, vector<64x128xf32>, vector<64x128xf32>, vector<64x128xf32> -> vector<320x128xf32>
    %cst_19 = arith.constant dense<0.000000e+00> : vector<32x128xf32>
    %37 = tpu.matmul %22, %36, %cst_19 {dimension_numbers = #tpu.dot_dimension_numbers<[1], [0], [0], [1], [0, 0, 1, 1], [], []>} : vector<32x320xf32>, vector<320x128xf32>, vector<32x128xf32> -> vector<32x128xf32>
    %38 = vector.broadcast %23 : vector<32x1xf32> to vector<32x128xf32>
    %39 = arith.addf %37, %38 : vector<32x128xf32>
    %c0_20 = arith.constant 0 : index
    %c0_21 = arith.constant 0 : index
    %40 = vector.load %arg6[%c0_20, %c0_21] : memref<32x160xf32, #tpu.memory_space<vmem>>, vector<32x160xf32>
    %c0_22 = arith.constant 0 : index
    %c0_23 = arith.constant 0 : index
    %41 = vector.load %arg7[%c0_22, %c0_23] : memref<32x1xf32, #tpu.memory_space<vmem>>, vector<32x1xf32>
    %cst_24 = arith.constant 0.000000e+00 : f32
    %42 = vector.broadcast %cst_24 : f32 to vector<32x16xf32>
    %43 = vector.extract_strided_slice %39 {offsets = [0, 0], sizes = [32, 112], strides = [1, 1]} : vector<32x128xf32> to vector<32x112xf32>
    %44 = tpu.concatenate %42, %43 in 1 : vector<32x16xf32>, vector<32x112xf32> -> vector<32x128xf32>
    %cst_25 = arith.constant 0.000000e+00 : f32
    %45 = vector.broadcast %cst_25 : f32 to vector<32x8xf32>
    %46 = vector.extract_strided_slice %39 {offsets = [0, 0], sizes = [32, 120], strides = [1, 1]} : vector<32x128xf32> to vector<32x120xf32>
    %47 = tpu.concatenate %45, %46 in 1 : vector<32x8xf32>, vector<32x120xf32> -> vector<32x128xf32>
    %cst_26 = arith.constant 0.000000e+00 : f32
    %48 = vector.broadcast %cst_26 : f32 to vector<32x8xf32>
    %49 = vector.extract_strided_slice %39 {offsets = [0, 8], sizes = [32, 120], strides = [1, 1]} : vector<32x128xf32> to vector<32x120xf32>
    %50 = tpu.concatenate %49, %48 in 1 : vector<32x120xf32>, vector<32x8xf32> -> vector<32x128xf32>
    %cst_27 = arith.constant 0.000000e+00 : f32
    %51 = vector.broadcast %cst_27 : f32 to vector<32x16xf32>
    %52 = vector.extract_strided_slice %39 {offsets = [0, 16], sizes = [32, 112], strides = [1, 1]} : vector<32x128xf32> to vector<32x112xf32>
    %53 = tpu.concatenate %52, %51 in 1 : vector<32x112xf32>, vector<32x16xf32> -> vector<32x128xf32>
    %54 = tpu.concatenate %44, %47, %39, %50, %53 in 0 : vector<32x128xf32>, vector<32x128xf32>, vector<32x128xf32>, vector<32x128xf32>, vector<32x128xf32> -> vector<160x128xf32>
    %cst_28 = arith.constant dense<0.000000e+00> : vector<32x128xf32>
    %55 = tpu.matmul %40, %54, %cst_28 {dimension_numbers = #tpu.dot_dimension_numbers<[1], [0], [0], [1], [0, 0, 1, 1], [], []>} : vector<32x160xf32>, vector<160x128xf32>, vector<32x128xf32> -> vector<32x128xf32>
    %56 = vector.broadcast %41 : vector<32x1xf32> to vector<32x128xf32>
    %57 = arith.addf %55, %56 : vector<32x128xf32>
    %cst_29 = arith.constant 0.000000e+00 : f32
    %58 = vector.broadcast %cst_29 : f32 to vector<32x128xf32>
    %59 = arith.maximumf %57, %58 : vector<32x128xf32>
    %c0_30 = arith.constant 0 : index
    %c0_31 = arith.constant 0 : index
    %60 = vector.load %arg8[%c0_30, %c0_31] : memref<32x96xf32, #tpu.memory_space<vmem>>, vector<32x96xf32>
    %c0_32 = arith.constant 0 : index
    %c0_33 = arith.constant 0 : index
    %61 = vector.load %arg9[%c0_32, %c0_33] : memref<32x1xf32, #tpu.memory_space<vmem>>, vector<32x1xf32>
    %cst_34 = arith.constant 0.000000e+00 : f32
    %62 = vector.broadcast %cst_34 : f32 to vector<32x8xf32>
    %63 = vector.extract_strided_slice %59 {offsets = [0, 0], sizes = [32, 120], strides = [1, 1]} : vector<32x128xf32> to vector<32x120xf32>
    %64 = tpu.concatenate %62, %63 in 1 : vector<32x8xf32>, vector<32x120xf32> -> vector<32x128xf32>
    %cst_35 = arith.constant 0.000000e+00 : f32
    %65 = vector.broadcast %cst_35 : f32 to vector<32x8xf32>
    %66 = vector.extract_strided_slice %59 {offsets = [0, 8], sizes = [32, 120], strides = [1, 1]} : vector<32x128xf32> to vector<32x120xf32>
    %67 = tpu.concatenate %66, %65 in 1 : vector<32x120xf32>, vector<32x8xf32> -> vector<32x128xf32>
    %68 = tpu.concatenate %64, %59, %67 in 0 : vector<32x128xf32>, vector<32x128xf32>, vector<32x128xf32> -> vector<96x128xf32>
    %cst_36 = arith.constant dense<0.000000e+00> : vector<32x128xf32>
    %69 = tpu.matmul %60, %68, %cst_36 {dimension_numbers = #tpu.dot_dimension_numbers<[1], [0], [0], [1], [0, 0, 1, 1], [], []>} : vector<32x96xf32>, vector<96x128xf32>, vector<32x128xf32> -> vector<32x128xf32>
    %70 = vector.broadcast %61 : vector<32x1xf32> to vector<32x128xf32>
    %71 = arith.addf %69, %70 : vector<32x128xf32>
    %72 = arith.addf %39, %71 : vector<32x128xf32>
    %cst_37 = arith.constant 0.000000e+00 : f32
    %73 = vector.broadcast %cst_37 : f32 to vector<32x128xf32>
    %74 = arith.maximumf %72, %73 : vector<32x128xf32>
    %c0_38 = arith.constant 0 : index
    %c0_39 = arith.constant 0 : index
    %75 = vector.load %arg10[%c0_38, %c0_39] : memref<32x96xf32, #tpu.memory_space<vmem>>, vector<32x96xf32>
    %c0_40 = arith.constant 0 : index
    %c0_41 = arith.constant 0 : index
    %76 = vector.load %arg11[%c0_40, %c0_41] : memref<32x1xf32, #tpu.memory_space<vmem>>, vector<32x1xf32>
    %cst_42 = arith.constant 0.000000e+00 : f32
    %77 = vector.broadcast %cst_42 : f32 to vector<32x8xf32>
    %78 = vector.extract_strided_slice %74 {offsets = [0, 0], sizes = [32, 120], strides = [1, 1]} : vector<32x128xf32> to vector<32x120xf32>
    %79 = tpu.concatenate %77, %78 in 1 : vector<32x8xf32>, vector<32x120xf32> -> vector<32x128xf32>
    %cst_43 = arith.constant 0.000000e+00 : f32
    %80 = vector.broadcast %cst_43 : f32 to vector<32x8xf32>
    %81 = vector.extract_strided_slice %74 {offsets = [0, 8], sizes = [32, 120], strides = [1, 1]} : vector<32x128xf32> to vector<32x120xf32>
    %82 = tpu.concatenate %81, %80 in 1 : vector<32x120xf32>, vector<32x8xf32> -> vector<32x128xf32>
    %83 = tpu.concatenate %79, %74, %82 in 0 : vector<32x128xf32>, vector<32x128xf32>, vector<32x128xf32> -> vector<96x128xf32>
    %cst_44 = arith.constant dense<0.000000e+00> : vector<32x128xf32>
    %84 = tpu.matmul %75, %83, %cst_44 {dimension_numbers = #tpu.dot_dimension_numbers<[1], [0], [0], [1], [0, 0, 1, 1], [], []>} : vector<32x96xf32>, vector<96x128xf32>, vector<32x128xf32> -> vector<32x128xf32>
    %85 = vector.broadcast %76 : vector<32x1xf32> to vector<32x128xf32>
    %86 = arith.addf %84, %85 : vector<32x128xf32>
    %cst_45 = arith.constant 0.000000e+00 : f32
    %87 = vector.broadcast %cst_45 : f32 to vector<32x128xf32>
    %88 = arith.maximumf %86, %87 : vector<32x128xf32>
    %c0_46 = arith.constant 0 : index
    %c0_47 = arith.constant 0 : index
    %89 = vector.load %arg14[%c0_46, %c0_47] : memref<128x64xf32, #tpu.memory_space<vmem>>, vector<128x64xf32>
    %cst_48 = arith.constant 0.000000e+00 : f32
    %90 = vector.broadcast %cst_48 : f32 to vector<32x8xf32>
    %91 = vector.extract_strided_slice %88 {offsets = [0, 8], sizes = [32, 120], strides = [1, 1]} : vector<32x128xf32> to vector<32x120xf32>
    %92 = tpu.concatenate %91, %90 in 1 : vector<32x120xf32>, vector<32x8xf32> -> vector<32x128xf32>
    %93 = arith.maximumf %88, %92 : vector<32x128xf32>
    %cst_49 = arith.constant dense<0.000000e+00> : vector<32x64xf32>
    %94 = tpu.matmul %93, %89, %cst_49 {dimension_numbers = #tpu.dot_dimension_numbers<[1], [0], [0], [1], [0, 0, 1, 1], [], []>} : vector<32x128xf32>, vector<128x64xf32>, vector<32x64xf32> -> vector<32x64xf32>
    %c0_50 = arith.constant 0 : index
    %c0_51 = arith.constant 0 : index
    %95 = vector.load %arg12[%c0_50, %c0_51] : memref<32x96xf32, #tpu.memory_space<vmem>>, vector<32x96xf32>
    %c0_52 = arith.constant 0 : index
    %c0_53 = arith.constant 0 : index
    %96 = vector.load %arg13[%c0_52, %c0_53] : memref<32x1xf32, #tpu.memory_space<vmem>>, vector<32x1xf32>
    %cst_54 = arith.constant 0.000000e+00 : f32
    %97 = vector.broadcast %cst_54 : f32 to vector<32x8xf32>
    %98 = vector.extract_strided_slice %94 {offsets = [0, 0], sizes = [32, 56], strides = [1, 1]} : vector<32x64xf32> to vector<32x56xf32>
    %99 = tpu.concatenate %97, %98 in 1 : vector<32x8xf32>, vector<32x56xf32> -> vector<32x64xf32>
    %cst_55 = arith.constant 0.000000e+00 : f32
    %100 = vector.broadcast %cst_55 : f32 to vector<32x8xf32>
    %101 = vector.extract_strided_slice %94 {offsets = [0, 8], sizes = [32, 56], strides = [1, 1]} : vector<32x64xf32> to vector<32x56xf32>
    %102 = tpu.concatenate %101, %100 in 1 : vector<32x56xf32>, vector<32x8xf32> -> vector<32x64xf32>
    %103 = tpu.concatenate %99, %94, %102 in 0 : vector<32x64xf32>, vector<32x64xf32>, vector<32x64xf32> -> vector<96x64xf32>
    %cst_56 = arith.constant dense<0.000000e+00> : vector<32x64xf32>
    %104 = tpu.matmul %95, %103, %cst_56 {dimension_numbers = #tpu.dot_dimension_numbers<[1], [0], [0], [1], [0, 0, 1, 1], [], []>} : vector<32x96xf32>, vector<96x64xf32>, vector<32x64xf32> -> vector<32x64xf32>
    %105 = vector.broadcast %96 : vector<32x1xf32> to vector<32x64xf32>
    %106 = arith.addf %104, %105 : vector<32x64xf32>
    %cst_57 = arith.constant 0.000000e+00 : f32
    %107 = vector.broadcast %cst_57 : f32 to vector<32x64xf32>
    %108 = arith.maximumf %106, %107 : vector<32x64xf32>
    %c0_58 = arith.constant 0 : index
    %c0_59 = arith.constant 0 : index
    %109 = vector.load %arg15[%c0_58, %c0_59] : memref<64x32xf32, #tpu.memory_space<vmem>>, vector<64x32xf32>
    %cst_60 = arith.constant 0.000000e+00 : f32
    %110 = vector.broadcast %cst_60 : f32 to vector<32x8xf32>
    %111 = vector.extract_strided_slice %108 {offsets = [0, 8], sizes = [32, 56], strides = [1, 1]} : vector<32x64xf32> to vector<32x56xf32>
    %112 = tpu.concatenate %111, %110 in 1 : vector<32x56xf32>, vector<32x8xf32> -> vector<32x64xf32>
    %113 = arith.maximumf %108, %112 : vector<32x64xf32>
    %cst_61 = arith.constant dense<0.000000e+00> : vector<32x32xf32>
    %114 = tpu.matmul %113, %109, %cst_61 {dimension_numbers = #tpu.dot_dimension_numbers<[1], [0], [0], [1], [0, 0, 1, 1], [], []>} : vector<32x64xf32>, vector<64x32xf32>, vector<32x32xf32> -> vector<32x32xf32>
    %c0_62 = arith.constant 0 : index
    %c0_63 = arith.constant 0 : index
    %115 = vector.load %arg16[%c0_62, %c0_63] : memref<32x128xf32, #tpu.memory_space<vmem>>, vector<32x128xf32>
    %c0_64 = arith.constant 0 : index
    %c0_65 = arith.constant 0 : index
    %116 = vector.load %arg17[%c0_64, %c0_65] : memref<32x1xf32, #tpu.memory_space<vmem>>, vector<32x1xf32>
    %117 = vector.extract_strided_slice %114 {offsets = [0, 0], sizes = [32, 8], strides = [1, 1]} : vector<32x32xf32> to vector<32x8xf32>
    %118 = vector.extract_strided_slice %114 {offsets = [0, 8], sizes = [32, 8], strides = [1, 1]} : vector<32x32xf32> to vector<32x8xf32>
    %119 = vector.extract_strided_slice %114 {offsets = [0, 16], sizes = [32, 8], strides = [1, 1]} : vector<32x32xf32> to vector<32x8xf32>
    %120 = vector.extract_strided_slice %114 {offsets = [0, 24], sizes = [32, 8], strides = [1, 1]} : vector<32x32xf32> to vector<32x8xf32>
    %121 = tpu.concatenate %117, %118, %119, %120 in 0 : vector<32x8xf32>, vector<32x8xf32>, vector<32x8xf32>, vector<32x8xf32> -> vector<128x8xf32>
    %cst_66 = arith.constant dense<0.000000e+00> : vector<32x8xf32>
    %122 = tpu.matmul %115, %121, %cst_66 {dimension_numbers = #tpu.dot_dimension_numbers<[1], [0], [0], [1], [0, 0, 1, 1], [], []>} : vector<32x128xf32>, vector<128x8xf32>, vector<32x8xf32> -> vector<32x8xf32>
    %123 = vector.broadcast %116 : vector<32x1xf32> to vector<32x8xf32>
    %124 = arith.addf %122, %123 : vector<32x8xf32>
    %c0_67 = arith.constant 0 : index
    %c0_68 = arith.constant 0 : index
    %c0_69 = arith.constant 0 : index
    %125 = vector.load %arg18[%c0_67, %c0_68, %c0_69] : memref<1x32x8xf32, #tpu.memory_space<vmem>>, vector<1x32x8xf32>
    %126 = vector.shape_cast %125 : vector<1x32x8xf32> to vector<32x8xf32>
    %127 = vector.shape_cast %124 : vector<32x8xf32> to vector<1x32x8xf32>
    tpu.vector_store %arg18[%c0_67, %c0_68, %c0_69], %127 {strides = array<i32>} : memref<1x32x8xf32, #tpu.memory_space<vmem>>, vector<1x32x8xf32>,
    return
  }
  func.func @transform_0(%arg0: i32) -> (i32, i32, i32) {
    %c0_i32 = arith.constant 0 : i32
    %c0_i32_0 = arith.constant 0 : i32
    %c0_i32_1 = arith.constant 0 : i32
    return %arg0, %c0_i32, %c0_i32_0 : i32, i32, i32
  }
  func.func @transform_1(%arg0: i32) -> (i32, i32) {
    %c0_i32 = arith.constant 0 : i32
    %c0_i32_0 = arith.constant 0 : i32
    %c0_i32_1 = arith.constant 0 : i32
    return %c0_i32, %c0_i32_0 : i32, i32
  }
  func.func @transform_2(%arg0: i32) -> (i32, i32) {
    %c0_i32 = arith.constant 0 : i32
    %c0_i32_0 = arith.constant 0 : i32
    %c0_i32_1 = arith.constant 0 : i32
    return %c0_i32, %c0_i32_0 : i32, i32
  }
  func.func @transform_3(%arg0: i32) -> (i32, i32) {
    %c0_i32 = arith.constant 0 : i32
    %c0_i32_0 = arith.constant 0 : i32
    %c0_i32_1 = arith.constant 0 : i32
    return %c0_i32, %c0_i32_0 : i32, i32
  }
  func.func @transform_4(%arg0: i32) -> (i32, i32) {
    %c0_i32 = arith.constant 0 : i32
    %c0_i32_0 = arith.constant 0 : i32
    %c0_i32_1 = arith.constant 0 : i32
    return %c0_i32, %c0_i32_0 : i32, i32
  }
  func.func @transform_5(%arg0: i32) -> (i32, i32) {
    %c0_i32 = arith.constant 0 : i32
    %c0_i32_0 = arith.constant 0 : i32
    %c0_i32_1 = arith.constant 0 : i32
    return %c0_i32, %c0_i32_0 : i32, i32
  }
  func.func @transform_6(%arg0: i32) -> (i32, i32) {
    %c0_i32 = arith.constant 0 : i32
    %c0_i32_0 = arith.constant 0 : i32
    %c0_i32_1 = arith.constant 0 : i32
    return %c0_i32, %c0_i32_0 : i32, i32
  }
  func.func @transform_7(%arg0: i32) -> (i32, i32) {
    %c0_i32 = arith.constant 0 : i32
    %c0_i32_0 = arith.constant 0 : i32
    %c0_i32_1 = arith.constant 0 : i32
    return %c0_i32, %c0_i32_0 : i32, i32
  }
  func.func @transform_8(%arg0: i32) -> (i32, i32) {
    %c0_i32 = arith.constant 0 : i32
    %c0_i32_0 = arith.constant 0 : i32
    %c0_i32_1 = arith.constant 0 : i32
    return %c0_i32, %c0_i32_0 : i32, i32
  }
  func.func @transform_9(%arg0: i32) -> (i32, i32) {
    %c0_i32 = arith.constant 0 : i32
    %c0_i32_0 = arith.constant 0 : i32
    %c0_i32_1 = arith.constant 0 : i32
    return %c0_i32, %c0_i32_0 : i32, i32
  }
  func.func @transform_10(%arg0: i32) -> (i32, i32) {
    %c0_i32 = arith.constant 0 : i32
    %c0_i32_0 = arith.constant 0 : i32
    %c0_i32_1 = arith.constant 0 : i32
    return %c0_i32, %c0_i32_0 : i32, i32
  }
  func.func @transform_11(%arg0: i32) -> (i32, i32) {
    %c0_i32 = arith.constant 0 : i32
    %c0_i32_0 = arith.constant 0 : i32
    %c0_i32_1 = arith.constant 0 : i32
    return %c0_i32, %c0_i32_0 : i32, i32
  }
  func.func @transform_12(%arg0: i32) -> (i32, i32) {
    %c0_i32 = arith.constant 0 : i32
    %c0_i32_0 = arith.constant 0 : i32
    %c0_i32_1 = arith.constant 0 : i32
    return %c0_i32, %c0_i32_0 : i32, i32
  }
  func.func @transform_13(%arg0: i32) -> (i32, i32) {
    %c0_i32 = arith.constant 0 : i32
    %c0_i32_0 = arith.constant 0 : i32
    %c0_i32_1 = arith.constant 0 : i32
    return %c0_i32, %c0_i32_0 : i32, i32
  }
  func.func @transform_14(%arg0: i32) -> (i32, i32) {
    %c0_i32 = arith.constant 0 : i32
    %c0_i32_0 = arith.constant 0 : i32
    %c0_i32_1 = arith.constant 0 : i32
    return %c0_i32, %c0_i32_0 : i32, i32
  }
  func.func @transform_15(%arg0: i32) -> (i32, i32) {
    %c0_i32 = arith.constant 0 : i32
    %c0_i32_0 = arith.constant 0 : i32
    %c0_i32_1 = arith.constant 0 : i32
    return %c0_i32, %c0_i32_0 : i32, i32
  }
  func.func @transform_16(%arg0: i32) -> (i32, i32) {
    %c0_i32 = arith.constant 0 : i32
    %c0_i32_0 = arith.constant 0 : i32
    %c0_i32_1 = arith.constant 0 : i32
    return %c0_i32, %c0_i32_0 : i32, i32
  }
  func.func @transform_17(%arg0: i32) -> (i32, i32, i32) {
    %c0_i32 = arith.constant 0 : i32
    %c0_i32_0 = arith.constant 0 : i32
    %c0_i32_1 = arith.constant 0 : i32
    return %arg0, %c0_i32, %c0_i32_0 : i32, i32, i32
  }
}

module attributes {stable_mosaic.version = 11 : i64} {
  func.func @_freq_encoder_kernel(%arg0: i32, %arg1: memref<1x8x128xf32, #tpu.memory_space<vmem>>, %arg2: memref<64x40xf32, #tpu.memory_space<vmem>>, %arg3: memref<64x1xf32, #tpu.memory_space<vmem>>, %arg4: memref<32x320xf32, #tpu.memory_space<vmem>>, %arg5: memref<32x1xf32, #tpu.memory_space<vmem>>, %arg6: memref<32x160xf32, #tpu.memory_space<vmem>>, %arg7: memref<32x1xf32, #tpu.memory_space<vmem>>, %arg8: memref<32x96xf32, #tpu.memory_space<vmem>>, %arg9: memref<32x1xf32, #tpu.memory_space<vmem>>, %arg10: memref<32x96xf32, #tpu.memory_space<vmem>>, %arg11: memref<32x1xf32, #tpu.memory_space<vmem>>, %arg12: memref<32x96xf32, #tpu.memory_space<vmem>>, %arg13: memref<32x1xf32, #tpu.memory_space<vmem>>, %arg14: memref<128x64xf32, #tpu.memory_space<vmem>>, %arg15: memref<64x32xf32, #tpu.memory_space<vmem>>, %arg16: memref<32x128xf32, #tpu.memory_space<vmem>>, %arg17: memref<32x1xf32, #tpu.memory_space<vmem>>, %arg18: memref<1x32x8xf32, #tpu.memory_space<vmem>>) attributes {dimension_semantics = [#tpu.dimension_semantics<parallel>], iteration_bounds = array<i64: 2>, scalar_prefetch = 0 : i64, scratch_operands = 0 : i64, tpu.core_type = #tpu.core_type<tc>, window_params = [{transform_indices = @transform_0, window_bounds = array<i64: 1, 8, 128>}, {pipeline_mode = #tpu.pipeline_mode<synchronous>, transform_indices = @transform_1, window_bounds = array<i64: 64, 40>}, {pipeline_mode = #tpu.pipeline_mode<synchronous>, transform_indices = @transform_2, window_bounds = array<i64: 64, 1>}, {pipeline_mode = #tpu.pipeline_mode<synchronous>, transform_indices = @transform_3, window_bounds = array<i64: 32, 320>}, {pipeline_mode = #tpu.pipeline_mode<synchronous>, transform_indices = @transform_4, window_bounds = array<i64: 32, 1>}, {pipeline_mode = #tpu.pipeline_mode<synchronous>, transform_indices = @transform_5, window_bounds = array<i64: 32, 160>}, {pipeline_mode = #tpu.pipeline_mode<synchronous>, transform_indices = @transform_6, window_bounds = array<i64: 32, 1>}, {pipeline_mode = #tpu.pipeline_mode<synchronous>, transform_indices = @transform_7, window_bounds = array<i64: 32, 96>}, {pipeline_mode = #tpu.pipeline_mode<synchronous>, transform_indices = @transform_8, window_bounds = array<i64: 32, 1>}, {pipeline_mode = #tpu.pipeline_mode<synchronous>, transform_indices = @transform_9, window_bounds = array<i64: 32, 96>}, {pipeline_mode = #tpu.pipeline_mode<synchronous>, transform_indices = @transform_10, window_bounds = array<i64: 32, 1>}, {pipeline_mode = #tpu.pipeline_mode<synchronous>, transform_indices = @transform_11, window_bounds = array<i64: 32, 96>}, {pipeline_mode = #tpu.pipeline_mode<synchronous>, transform_indices = @transform_12, window_bounds = array<i64: 32, 1>}, {pipeline_mode = #tpu.pipeline_mode<synchronous>, transform_indices = @transform_13, window_bounds = array<i64: 128, 64>}, {pipeline_mode = #tpu.pipeline_mode<synchronous>, transform_indices = @transform_14, window_bounds = array<i64: 64, 32>}, {pipeline_mode = #tpu.pipeline_mode<synchronous>, transform_indices = @transform_15, window_bounds = array<i64: 32, 128>}, {pipeline_mode = #tpu.pipeline_mode<synchronous>, transform_indices = @transform_16, window_bounds = array<i64: 32, 1>}, {transform_indices = @transform_17, window_bounds = array<i64: 1, 32, 8>}]} {
    %c0 = arith.constant 0 : index
    %c0_0 = arith.constant 0 : index
    %c0_1 = arith.constant 0 : index
    %0 = vector.load %arg1[%c0, %c0_0, %c0_1] : memref<1x8x128xf32, #tpu.memory_space<vmem>>, vector<1x8x128xf32>
    %1 = vector.shape_cast %0 : vector<1x8x128xf32> to vector<8x128xf32>
    %c0_2 = arith.constant 0 : index
    %c0_3 = arith.constant 0 : index
    %2 = vector.load %arg2[%c0_2, %c0_3] : memref<64x40xf32, #tpu.memory_space<vmem>>, vector<64x40xf32>
    %c0_4 = arith.constant 0 : index
    %c0_5 = arith.constant 0 : index
    %3 = vector.load %arg3[%c0_4, %c0_5] : memref<64x1xf32, #tpu.memory_space<vmem>>, vector<64x1xf32>
    %cst = arith.constant 0.000000e+00 : f32
    %4 = vector.broadcast %cst : f32 to vector<8x16xf32>
    %5 = vector.extract_strided_slice %1 {offsets = [0, 0], sizes = [8, 112], strides = [1, 1]} : vector<8x128xf32> to vector<8x112xf32>
    %6 = tpu.concatenate %4, %5 in 1 : vector<8x16xf32>, vector<8x112xf32> -> vector<8x128xf32>
    %cst_6 = arith.constant 0.000000e+00 : f32
    %7 = vector.broadcast %cst_6 : f32 to vector<8x8xf32>
    %8 = vector.extract_strided_slice %1 {offsets = [0, 0], sizes = [8, 120], strides = [1, 1]} : vector<8x128xf32> to vector<8x120xf32>
    %9 = tpu.concatenate %7, %8 in 1 : vector<8x8xf32>, vector<8x120xf32> -> vector<8x128xf32>
    %cst_7 = arith.constant 0.000000e+00 : f32
    %10 = vector.broadcast %cst_7 : f32 to vector<8x8xf32>
    %11 = vector.extract_strided_slice %1 {offsets = [0, 8], sizes = [8, 120], strides = [1, 1]} : vector<8x128xf32> to vector<8x120xf32>
    %12 = tpu.concatenate %11, %10 in 1 : vector<8x120xf32>, vector<8x8xf32> -> vector<8x128xf32>
    %cst_8 = arith.constant 0.000000e+00 : f32
    %13 = vector.broadcast %cst_8 : f32 to vector<8x16xf32>
    %14 = vector.extract_strided_slice %1 {offsets = [0, 16], sizes = [8, 112], strides = [1, 1]} : vector<8x128xf32> to vector<8x112xf32>
    %15 = tpu.concatenate %14, %13 in 1 : vector<8x112xf32>, vector<8x16xf32> -> vector<8x128xf32>
    %16 = tpu.concatenate %6, %9, %1, %12, %15 in 0 : vector<8x128xf32>, vector<8x128xf32>, vector<8x128xf32>, vector<8x128xf32>, vector<8x128xf32> -> vector<40x128xf32>
    %cst_9 = arith.constant dense<0.000000e+00> : vector<64x128xf32>
    %17 = tpu.matmul %2, %16, %cst_9 {dimension_numbers = #tpu.dot_dimension_numbers<[1], [0], [0], [1], [0, 0, 1, 1], [], []>} : vector<64x40xf32>, vector<40x128xf32>, vector<64x128xf32> -> vector<64x128xf32>
    %18 = vector.broadcast %3 : vector<64x1xf32> to vector<64x128xf32>
    %19 = arith.addf %17, %18 : vector<64x128xf32>
    %cst_10 = arith.constant 0.000000e+00 : f32
    %20 = vector.broadcast %cst_10 : f32 to vector<64x128xf32>
    %21 = arith.maximumf %19, %20 : vector<64x128xf32>
    %c0_11 = arith.constant 0 : index
    %c0_12 = arith.constant 0 : index
    %22 = vector.load %arg4[%c0_11, %c0_12] : memref<32x320xf32, #tpu.memory_space<vmem>>, vector<32x320xf32>
    %c0_13 = arith.constant 0 : index
    %c0_14 = arith.constant 0 : index
    %23 = vector.load %arg5[%c0_13, %c0_14] : memref<32x1xf32, #tpu.memory_space<vmem>>, vector<32x1xf32>
    %cst_15 = arith.constant 0.000000e+00 : f32
    %24 = vector.broadcast %cst_15 : f32 to vector<64x16xf32>
    %25 = vector.extract_strided_slice %21 {offsets = [0, 0], sizes = [64, 112], strides = [1, 1]} : vector<64x128xf32> to vector<64x112xf32>
    %26 = tpu.concatenate %24, %25 in 1 : vector<64x16xf32>, vector<64x112xf32> -> vector<64x128xf32>
    %cst_16 = arith.constant 0.000000e+00 : f32
    %27 = vector.broadcast %cst_16 : f32 to vector<64x8xf32>
    %28 = vector.extract_strided_slice %21 {offsets = [0, 0], sizes = [64, 120], strides = [1, 1]} : vector<64x128xf32> to vector<64x120xf32>
    %29 = tpu.concatenate %27, %28 in 1 : vector<64x8xf32>, vector<64x120xf32> -> vector<64x128xf32>
    %cst_17 = arith.constant 0.000000e+00 : f32
    %30 = vector.broadcast %cst_17 : f32 to vector<64x8xf32>
    %31 = vector.extract_strided_slice %21 {offsets = [0, 8], sizes = [64, 120], strides = [1, 1]} : vector<64x128xf32> to vector<64x120xf32>
    %32 = tpu.concatenate %31, %30 in 1 : vector<64x120xf32>, vector<64x8xf32> -> vector<64x128xf32>
    %cst_18 = arith.constant 0.000000e+00 : f32
    %33 = vector.broadcast %cst_18 : f32 to vector<64x16xf32>
    %34 = vector.extract_strided_slice %21 {offsets = [0, 16], sizes = [64, 112], strides = [1, 1]} : vector<64x128xf32> to vector<64x112xf32>
    %35 = tpu.concatenate %34, %33 in 1 : vector<64x112xf32>, vector<64x16xf32> -> vector<64x128xf32>
    %36 = tpu.concatenate %26, %29, %21, %32, %35 in 0 : vector<64x128xf32>, vector<64x128xf32>, vector<64x128xf32>, vector<64x128xf32>, vector<64x128xf32> -> vector<320x128xf32>
    %cst_19 = arith.constant dense<0.000000e+00> : vector<32x128xf32>
    %37 = tpu.matmul %22, %36, %cst_19 {dimension_numbers = #tpu.dot_dimension_numbers<[1], [0], [0], [1], [0, 0, 1, 1], [], []>} : vector<32x320xf32>, vector<320x128xf32>, vector<32x128xf32> -> vector<32x128xf32>
    %38 = vector.broadcast %23 : vector<32x1xf32> to vector<32x128xf32>
    %39 = arith.addf %37, %38 : vector<32x128xf32>
    %c0_20 = arith.constant 0 : index
    %c0_21 = arith.constant 0 : index
    %40 = vector.load %arg6[%c0_20, %c0_21] : memref<32x160xf32, #tpu.memory_space<vmem>>, vector<32x160xf32>
    %c0_22 = arith.constant 0 : index
    %c0_23 = arith.constant 0 : index
    %41 = vector.load %arg7[%c0_22, %c0_23] : memref<32x1xf32, #tpu.memory_space<vmem>>, vector<32x1xf32>
    %cst_24 = arith.constant 0.000000e+00 : f32
    %42 = vector.broadcast %cst_24 : f32 to vector<32x16xf32>
    %43 = vector.extract_strided_slice %39 {offsets = [0, 0], sizes = [32, 112], strides = [1, 1]} : vector<32x128xf32> to vector<32x112xf32>
    %44 = tpu.concatenate %42, %43 in 1 : vector<32x16xf32>, vector<32x112xf32> -> vector<32x128xf32>
    %cst_25 = arith.constant 0.000000e+00 : f32
    %45 = vector.broadcast %cst_25 : f32 to vector<32x8xf32>
    %46 = vector.extract_strided_slice %39 {offsets = [0, 0], sizes = [32, 120], strides = [1, 1]} : vector<32x128xf32> to vector<32x120xf32>
    %47 = tpu.concatenate %45, %46 in 1 : vector<32x8xf32>, vector<32x120xf32> -> vector<32x128xf32>
    %cst_26 = arith.constant 0.000000e+00 : f32
    %48 = vector.broadcast %cst_26 : f32 to vector<32x8xf32>
    %49 = vector.extract_strided_slice %39 {offsets = [0, 8], sizes = [32, 120], strides = [1, 1]} : vector<32x128xf32> to vector<32x120xf32>
    %50 = tpu.concatenate %49, %48 in 1 : vector<32x120xf32>, vector<32x8xf32> -> vector<32x128xf32>
    %cst_27 = arith.constant 0.000000e+00 : f32
    %51 = vector.broadcast %cst_27 : f32 to vector<32x16xf32>
    %52 = vector.extract_strided_slice %39 {offsets = [0, 16], sizes = [32, 112], strides = [1, 1]} : vector<32x128xf32> to vector<32x112xf32>
    %53 = tpu.concatenate %52, %51 in 1 : vector<32x112xf32>, vector<32x16xf32> -> vector<32x128xf32>
    %54 = tpu.concatenate %44, %47, %39, %50, %53 in 0 : vector<32x128xf32>, vector<32x128xf32>, vector<32x128xf32>, vector<32x128xf32>, vector<32x128xf32> -> vector<160x128xf32>
    %cst_28 = arith.constant dense<0.000000e+00> : vector<32x128xf32>
    %55 = tpu.matmul %40, %54, %cst_28 {dimension_numbers = #tpu.dot_dimension_numbers<[1], [0], [0], [1], [0, 0, 1, 1], [], []>} : vector<32x160xf32>, vector<160x128xf32>, vector<32x128xf32> -> vector<32x128xf32>
    %56 = vector.broadcast %41 : vector<32x1xf32> to vector<32x128xf32>
    %57 = arith.addf %55, %56 : vector<32x128xf32>
    %cst_29 = arith.constant 0.000000e+00 : f32
    %58 = vector.broadcast %cst_29 : f32 to vector<32x128xf32>
    %59 = arith.maximumf %57, %58 : vector<32x128xf32>
    %c0_30 = arith.constant 0 : index
    %c0_31 = arith.constant 0 : index
    %60 = vector.load %arg8[%c0_30, %c0_31] : memref<32x96xf32, #tpu.memory_space<vmem>>, vector<32x96xf32>
    %c0_32 = arith.constant 0 : index
    %c0_33 = arith.constant 0 : index
    %61 = vector.load %arg9[%c0_32, %c0_33] : memref<32x1xf32, #tpu.memory_space<vmem>>, vector<32x1xf32>
    %cst_34 = arith.constant 0.000000e+00 : f32
    %62 = vector.broadcast %cst_34 : f32 to vector<32x8xf32>
    %63 = vector.extract_strided_slice %59 {offsets = [0, 0], sizes = [32, 120], strides = [1, 1]} : vector<32x128xf32> to vector<32x120xf32>
    %64 = tpu.concatenate %62, %63 in 1 : vector<32x8xf32>, vector<32x120xf32> -> vector<32x128xf32>
    %cst_35 = arith.constant 0.000000e+00 : f32
    %65 = vector.broadcast %cst_35 : f32 to vector<32x8xf32>
    %66 = vector.extract_strided_slice %59 {offsets = [0, 8], sizes = [32, 120], strides = [1, 1]} : vector<32x128xf32> to vector<32x120xf32>
    %67 = tpu.concatenate %66, %65 in 1 : vector<32x120xf32>, vector<32x8xf32> -> vector<32x128xf32>
    %68 = tpu.concatenate %64, %59, %67 in 0 : vector<32x128xf32>, vector<32x128xf32>, vector<32x128xf32> -> vector<96x128xf32>
    %cst_36 = arith.constant dense<0.000000e+00> : vector<32x128xf32>
    %69 = tpu.matmul %60, %68, %cst_36 {dimension_numbers = #tpu.dot_dimension_numbers<[1], [0], [0], [1], [0, 0, 1, 1], [], []>} : vector<32x96xf32>, vector<96x128xf32>, vector<32x128xf32> -> vector<32x128xf32>
    %70 = vector.broadcast %61 : vector<32x1xf32> to vector<32x128xf32>
    %71 = arith.addf %69, %70 : vector<32x128xf32>
    %72 = arith.addf %39, %71 : vector<32x128xf32>
    %cst_37 = arith.constant 0.000000e+00 : f32
    %73 = vector.broadcast %cst_37 : f32 to vector<32x128xf32>
    %74 = arith.maximumf %72, %73 : vector<32x128xf32>
    %c0_38 = arith.constant 0 : index
    %c0_39 = arith.constant 0 : index
    %75 = vector.load %arg10[%c0_38, %c0_39] : memref<32x96xf32, #tpu.memory_space<vmem>>, vector<32x96xf32>
    %c0_40 = arith.constant 0 : index
    %c0_41 = arith.constant 0 : index
    %76 = vector.load %arg11[%c0_40, %c0_41] : memref<32x1xf32, #tpu.memory_space<vmem>>, vector<32x1xf32>
    %cst_42 = arith.constant 0.000000e+00 : f32
    %77 = vector.broadcast %cst_42 : f32 to vector<32x8xf32>
    %78 = vector.extract_strided_slice %74 {offsets = [0, 0], sizes = [32, 120], strides = [1, 1]} : vector<32x128xf32> to vector<32x120xf32>
    %79 = tpu.concatenate %77, %78 in 1 : vector<32x8xf32>, vector<32x120xf32> -> vector<32x128xf32>
    %cst_43 = arith.constant 0.000000e+00 : f32
    %80 = vector.broadcast %cst_43 : f32 to vector<32x8xf32>
    %81 = vector.extract_strided_slice %74 {offsets = [0, 8], sizes = [32, 120], strides = [1, 1]} : vector<32x128xf32> to vector<32x120xf32>
    %82 = tpu.concatenate %81, %80 in 1 : vector<32x120xf32>, vector<32x8xf32> -> vector<32x128xf32>
    %83 = tpu.concatenate %79, %74, %82 in 0 : vector<32x128xf32>, vector<32x128xf32>, vector<32x128xf32> -> vector<96x128xf32>
    %cst_44 = arith.constant dense<0.000000e+00> : vector<32x128xf32>
    %84 = tpu.matmul %75, %83, %cst_44 {dimension_numbers = #tpu.dot_dimension_numbers<[1], [0], [0], [1], [0, 0, 1, 1], [], []>} : vector<32x96xf32>, vector<96x128xf32>, vector<32x128xf32> -> vector<32x128xf32>
    %85 = vector.broadcast %76 : vector<32x1xf32> to vector<32x128xf32>
    %86 = arith.addf %84, %85 : vector<32x128xf32>
    %cst_45 = arith.constant 0.000000e+00 : f32
    %87 = vector.broadcast %cst_45 : f32 to vector<32x128xf32>
    %88 = arith.maximumf %86, %87 : vector<32x128xf32>
    %c0_46 = arith.constant 0 : index
    %c0_47 = arith.constant 0 : index
    %89 = vector.load %arg14[%c0_46, %c0_47] : memref<128x64xf32, #tpu.memory_space<vmem>>, vector<128x64xf32>
    %cst_48 = arith.constant 0.000000e+00 : f32
    %90 = vector.broadcast %cst_48 : f32 to vector<32x8xf32>
    %91 = vector.extract_strided_slice %88 {offsets = [0, 8], sizes = [32, 120], strides = [1, 1]} : vector<32x128xf32> to vector<32x120xf32>
    %92 = tpu.concatenate %91, %90 in 1 : vector<32x120xf32>, vector<32x8xf32> -> vector<32x128xf32>
    %93 = arith.maximumf %88, %92 : vector<32x128xf32>
    %cst_49 = arith.constant dense<0.000000e+00> : vector<32x64xf32>
    %94 = tpu.matmul %93, %89, %cst_49 {dimension_numbers = #tpu.dot_dimension_numbers<[1], [0], [0], [1], [0, 0, 1, 1], [], []>} : vector<32x128xf32>, vector<128x64xf32>, vector<32x64xf32> -> vector<32x64xf32>
    %c0_50 = arith.constant 0 : index
    %c0_51 = arith.constant 0 : index
    %95 = vector.load %arg12[%c0_50, %c0_51] : memref<32x96xf32, #tpu.memory_space<vmem>>, vector<32x96xf32>
    %c0_52 = arith.constant 0 : index
    %c0_53 = arith.constant 0 : index
    %96 = vector.load %arg13[%c0_52, %c0_53] : memref<32x1xf32, #tpu.memory_space<vmem>>, vector<32x1xf32>
    %cst_54 = arith.constant 0.000000e+00 : f32
    %97 = vector.broadcast %cst_54 : f32 to vector<32x8xf32>
    %98 = vector.extract_strided_slice %94 {offsets = [0, 0], sizes = [32, 56], strides = [1, 1]} : vector<32x64xf32> to vector<32x56xf32>
    %99 = tpu.concatenate %97, %98 in 1 : vector<32x8xf32>, vector<32x56xf32> -> vector<32x64xf32>
    %cst_55 = arith.constant 0.000000e+00 : f32
    %100 = vector.broadcast %cst_55 : f32 to vector<32x8xf32>
    %101 = vector.extract_strided_slice %94 {offsets = [0, 8], sizes = [32, 56], strides = [1, 1]} : vector<32x64xf32> to vector<32x56xf32>
    %102 = tpu.concatenate %101, %100 in 1 : vector<32x56xf32>, vector<32x8xf32> -> vector<32x64xf32>
    %103 = tpu.concatenate %99, %94, %102 in 0 : vector<32x64xf32>, vector<32x64xf32>, vector<32x64xf32> -> vector<96x64xf32>
    %cst_56 = arith.constant dense<0.000000e+00> : vector<32x64xf32>
    %104 = tpu.matmul %95, %103, %cst_56 {dimension_numbers = #tpu.dot_dimension_numbers<[1], [0], [0], [1], [0, 0, 1, 1], [], []>} : vector<32x96xf32>, vector<96x64xf32>, vector<32x64xf32> -> vector<32x64xf32>
    %105 = vector.broadcast %96 : vector<32x1xf32> to vector<32x64xf32>
    %106 = arith.addf %104, %105 : vector<32x64xf32>
    %cst_57 = arith.constant 0.000000e+00 : f32
    %107 = vector.broadcast %cst_57 : f32 to vector<32x64xf32>
    %108 = arith.maximumf %106, %107 : vector<32x64xf32>
    %c0_58 = arith.constant 0 : index
    %c0_59 = arith.constant 0 : index
    %109 = vector.load %arg15[%c0_58, %c0_59] : memref<64x32xf32, #tpu.memory_space<vmem>>, vector<64x32xf32>
    %cst_60 = arith.constant 0.000000e+00 : f32
    %110 = vector.broadcast %cst_60 : f32 to vector<32x8xf32>
    %111 = vector.extract_strided_slice %108 {offsets = [0, 8], sizes = [32, 56], strides = [1, 1]} : vector<32x64xf32> to vector<32x56xf32>
    %112 = tpu.concatenate %111, %110 in 1 : vector<32x56xf32>, vector<32x8xf32> -> vector<32x64xf32>
    %113 = arith.maximumf %108, %112 : vector<32x64xf32>
    %cst_61 = arith.constant dense<0.000000e+00> : vector<32x32xf32>
    %114 = tpu.matmul %113, %109, %cst_61 {dimension_numbers = #tpu.dot_dimension_numbers<[1], [0], [0], [1], [0, 0, 1, 1], [], []>} : vector<32x64xf32>, vector<64x32xf32>, vector<32x32xf32> -> vector<32x32xf32>
    %c0_62 = arith.constant 0 : index
    %c0_63 = arith.constant 0 : index
    %115 = vector.load %arg16[%c0_62, %c0_63] : memref<32x128xf32, #tpu.memory_space<vmem>>, vector<32x128xf32>
    %c0_64 = arith.constant 0 : index
    %c0_65 = arith.constant 0 : index
    %116 = vector.load %arg17[%c0_64, %c0_65] : memref<32x1xf32, #tpu.memory_space<vmem>>, vector<32x1xf32>
    %117 = vector.extract_strided_slice %114 {offsets = [0, 0], sizes = [32, 8], strides = [1, 1]} : vector<32x32xf32> to vector<32x8xf32>
    %118 = vector.extract_strided_slice %114 {offsets = [0, 8], sizes = [32, 8], strides = [1, 1]} : vector<32x32xf32> to vector<32x8xf32>
    %119 = vector.extract_strided_slice %114 {offsets = [0, 16], sizes = [32, 8], strides = [1, 1]} : vector<32x32xf32> to vector<32x8xf32>
    %120 = vector.extract_strided_slice %114 {offsets = [0, 24], sizes = [32, 8], strides = [1, 1]} : vector<32x32xf32> to vector<32x8xf32>
    %121 = tpu.concatenate %117, %118, %119, %120 in 0 : vector<32x8xf32>, vector<32x8xf32>, vector<32x8xf32>, vector<32x8xf32> -> vector<128x8xf32>
    %cst_66 = arith.constant dense<0.000000e+00> : vector<32x8xf32>
    %122 = tpu.matmul %115, %121, %cst_66 {dimension_numbers = #tpu.dot_dimension_numbers<[1], [0], [0], [1], [0, 0, 1, 1], [], []>} : vector<32x128xf32>, vector<128x8xf32>, vector<32x8xf32> -> vector<32x8xf32>
    %123 = vector.broadcast %116 : vector<32x1xf32> to vector<32x8xf32>
    %124 = arith.addf %122, %123 : vector<32x8xf32>
    %c0_67 = arith.constant 0 : index
    %c0_68 = arith.constant 0 : index
    %c0_69 = arith.constant 0 : index
    %125 = vector.load %arg18[%c0_67, %c0_68, %c0_69] : memref<1x32x8xf32, #tpu.memory_space<vmem>>, vector<1x32x8xf32>
    %126 = vector.shape_cast %125 : vector<1x32x8xf32> to vector<32x8xf32>
    %127 = vector.shape_cast %124 : vector<32x8xf32> to vector<1x32x8xf32>
    tpu.vector_store %arg18[%c0_67, %c0_68, %c0_69], %127 {strides = array<i32>} : memref<1x32x8xf32, #tpu.memory_space<vmem>>, vector<1x32x8xf32>,
    return
  }
  func.func @transform_0(%arg0: i32) -> (i32, i32, i32) {
    %c0_i32 = arith.constant 0 : i32
    %c0_i32_0 = arith.constant 0 : i32
    %c0_i32_1 = arith.constant 0 : i32
    return %arg0, %c0_i32, %c0_i32_0 : i32, i32, i32
  }
  func.func @transform_1(%arg0: i32) -> (i32, i32) {
    %c0_i32 = arith.constant 0 : i32
    %c0_i32_0 = arith.constant 0 : i32
    %c0_i32_1 = arith.constant 0 : i32
    return %c0_i32, %c0_i32_0 : i32, i32
  }
  func.func @transform_2(%arg0: i32) -> (i32, i32) {
    %c0_i32 = arith.constant 0 : i32
    %c0_i32_0 = arith.constant 0 : i32
    %c0_i32_1 = arith.constant 0 : i32
    return %c0_i32, %c0_i32_0 : i32, i32
  }
  func.func @transform_3(%arg0: i32) -> (i32, i32) {
    %c0_i32 = arith.constant 0 : i32
    %c0_i32_0 = arith.constant 0 : i32
    %c0_i32_1 = arith.constant 0 : i32
    return %c0_i32, %c0_i32_0 : i32, i32
  }
  func.func @transform_4(%arg0: i32) -> (i32, i32) {
    %c0_i32 = arith.constant 0 : i32
    %c0_i32_0 = arith.constant 0 : i32
    %c0_i32_1 = arith.constant 0 : i32
    return %c0_i32, %c0_i32_0 : i32, i32
  }
  func.func @transform_5(%arg0: i32) -> (i32, i32) {
    %c0_i32 = arith.constant 0 : i32
    %c0_i32_0 = arith.constant 0 : i32
    %c0_i32_1 = arith.constant 0 : i32
    return %c0_i32, %c0_i32_0 : i32, i32
  }
  func.func @transform_6(%arg0: i32) -> (i32, i32) {
    %c0_i32 = arith.constant 0 : i32
    %c0_i32_0 = arith.constant 0 : i32
    %c0_i32_1 = arith.constant 0 : i32
    return %c0_i32, %c0_i32_0 : i32, i32
  }
  func.func @transform_7(%arg0: i32) -> (i32, i32) {
    %c0_i32 = arith.constant 0 : i32
    %c0_i32_0 = arith.constant 0 : i32
    %c0_i32_1 = arith.constant 0 : i32
    return %c0_i32, %c0_i32_0 : i32, i32
  }
  func.func @transform_8(%arg0: i32) -> (i32, i32) {
    %c0_i32 = arith.constant 0 : i32
    %c0_i32_0 = arith.constant 0 : i32
    %c0_i32_1 = arith.constant 0 : i32
    return %c0_i32, %c0_i32_0 : i32, i32
  }
  func.func @transform_9(%arg0: i32) -> (i32, i32) {
    %c0_i32 = arith.constant 0 : i32
    %c0_i32_0 = arith.constant 0 : i32
    %c0_i32_1 = arith.constant 0 : i32
    return %c0_i32, %c0_i32_0 : i32, i32
  }
  func.func @transform_10(%arg0: i32) -> (i32, i32) {
    %c0_i32 = arith.constant 0 : i32
    %c0_i32_0 = arith.constant 0 : i32
    %c0_i32_1 = arith.constant 0 : i32
    return %c0_i32, %c0_i32_0 : i32, i32
  }
  func.func @transform_11(%arg0: i32) -> (i32, i32) {
    %c0_i32 = arith.constant 0 : i32
    %c0_i32_0 = arith.constant 0 : i32
    %c0_i32_1 = arith.constant 0 : i32
    return %c0_i32, %c0_i32_0 : i32, i32
  }
  func.func @transform_12(%arg0: i32) -> (i32, i32) {
    %c0_i32 = arith.constant 0 : i32
    %c0_i32_0 = arith.constant 0 : i32
    %c0_i32_1 = arith.constant 0 : i32
    return %c0_i32, %c0_i32_0 : i32, i32
  }
  func.func @transform_13(%arg0: i32) -> (i32, i32) {
    %c0_i32 = arith.constant 0 : i32
    %c0_i32_0 = arith.constant 0 : i32
    %c0_i32_1 = arith.constant 0 : i32
    return %c0_i32, %c0_i32_0 : i32, i32
  }
  func.func @transform_14(%arg0: i32) -> (i32, i32) {
    %c0_i32 = arith.constant 0 : i32
    %c0_i32_0 = arith.constant 0 : i32
    %c0_i32_1 = arith.constant 0 : i32
    return %c0_i32, %c0_i32_0 : i32, i32
  }
  func.func @transform_15(%arg0: i32) -> (i32, i32) {
    %c0_i32 = arith.constant 0 : i32
    %c0_i32_0 = arith.constant 0 : i32
    %c0_i32_1 = arith.constant 0 : i32
    return %c0_i32, %c0_i32_0 : i32, i32
  }
  func.func @transform_16(%arg0: i32) -> (i32, i32) {
    %c0_i32 = arith.constant 0 : i32
    %c0_i32_0 = arith.constant 0 : i32
    %c0_i32_1 = arith.constant 0 : i32
    return %c0_i32, %c0_i32_0 : i32, i32
  }
  func.func @transform_17(%arg0: i32) -> (i32, i32, i32) {
    %c0_i32 = arith.constant 0 : i32
    %c0_i32_0 = arith.constant 0 : i32
    %c0_i32_1 = arith.constant 0 : i32
    return %arg0, %c0_i32, %c0_i32_0 : i32, i32, i32
  }
}

</mosaic_0001>

<bundles_post_ra>
// kernel: tpu_custom_call.1
= control target key start
LH: loop header
LB: loop body
LE: loop exit
PB: predicated region body
PF: predicated region fallthrough
CT: control target
= control target key end

     0   :  { %s3482_s24 = smov 0   ;;  %s4067_s0 = inlined_call_operand.vmem [shape: f32[2,8,128], index: 0, kind: input, shape index: {}]   ;;  %s4068_s1 = inlined_call_operand.vmem [shape: f32[64,40], index: 1, kind: input, shape index: {}]   ;;  %s4069_s2 = inlined_call_operand.vmem [shape: f32[64,1], index: 2, kind: input, shape index: {}]   ;;  %s4070_s3 = inlined_call_operand.vmem [shape: f32[32,320], index: 3, kind: input, shape index: {}]   ;;  %s4071_s4 = inlined_call_operand.vmem [shape: f32[32,1], index: 4, kind: input, shape index: {}]   ;;  %s4072_s5 = inlined_call_operand.vmem [shape: f32[32,160], index: 5, kind: input, shape index: {}]   ;;  %s4073_s6 = inlined_call_operand.vmem [shape: f32[32,1], index: 6, kind: input, shape index: {}]   ;;  %s4074_s7 = inlined_call_operand.vmem [shape: f32[32,96], index: 7, kind: input, shape index: {}]   ;;  %s4075_s8 = inlined_call_operand.vmem [shape: f32[32,1], index: 8, kind: input, shape index: {}]   ;;  %s4076_s9 = inlined_call_operand.vmem [shape: f32[32,96], index: 9, kind: input, shape index: {}]   ;;  %s4077_s10 = inlined_call_operand.vmem [shape: f32[32,1], index: 10, kind: input, shape index: {}]   ;;  %s4078_s11 = inlined_call_operand.vmem [shape: f32[32,96], index: 11, kind: input, shape index: {}]   ;;  %s4079_s12 = inlined_call_operand.vmem [shape: f32[32,1], index: 12, kind: input, shape index: {}]   ;;  %s4080_s13 = inlined_call_operand.vmem [shape: f32[128,64], index: 13, kind: input, shape index: {}]   ;;  %s4081_s14 = inlined_call_operand.vmem [shape: f32[64,32], index: 14, kind: input, shape index: {}]   ;;  %s4082_s15 = inlined_call_operand.vmem [shape: f32[32,128], index: 15, kind: input, shape index: {}]   ;;  %s4083_s16 = inlined_call_operand.vmem [shape: f32[32,1], index: 16, kind: input, shape index: {}]   ;;  %s4084_s17 = inlined_call_operand.vmem [shape: f32[2,32,8], index: 17, kind: output, shape index: {}]  }
   0x1   :  { %4092 = sst [smem:[#allocation2_spill]] %s4067_s0 }
   0x2   :  { %4093 = sst [smem:[#allocation3_spill]] %s4068_s1 }
   0x3 LB: > { %s2286_s25 = sadd.s32 4294967295, %s3382_s24   ;;  %p2290_p0 = scmp.ge.s32.totalorder %s3382_s24, 1  ;;  %s3382_s24 = sphi %s3482_s24, %s27_s24  }
   0x4   : > { %p486_p1 = scmp.lt.s32.totalorder %s3382_s24, 3 }
   0x6   : > { %p487_p2 = pnand %p2290_p0, %p486_p1 }
   0x7   : > { %p537_p3 = scmp.lt.s32.totalorder (!%p487_p2), %s2286_s25, 1  ;;  %s4094_s29 = sld [smem:[#allocation2_spill]] (!%p487_p2)  ;;  %vm624_vm0 = vcmask (!%p487_p2), 326656   ;;  %v556_v2 = vld [vmem:[%s4069_s2 + $0x8] sm:$0xff] (!%p487_p2)  ;;  %v555_v3 = vld [vmem:[%s4069_s2] sm:$0xff] (!%p487_p2)  ;;  %v3388_v4 = vmov (!%p487_p2), 0  }
   0x8   : > { %490 = sbr.rel (%p487_p2) target bundleno = 3252 (0xcb4), region = 88  ;;  %s3384_s30 = smov (!%p487_p2), 16   ;;  %3155 = vset.pattern.permute.xlu1 (!%p487_p2), %v3388_v4  ;;  %3154 = vset.pattern.permute.xlu0 (!%p487_p2), %v3388_v4  ;;  %v557_v5 = vld [vmem:[%s4069_s2 + $0x10] sm:$0xff] (!%p487_p2)  ;;  %v558_v6 = vld [vmem:[%s4069_s2 + $0x18] sm:$0xff] (!%p487_p2)  ;;  %v559_v7 = vld [vmem:[%s4069_s2 + $0x20] sm:$0xff] (!%p487_p2)  ;;  %vm567_vm1 = vcmask (!%p487_p2), 130048  }
   0x9   : > { %s4090_s18 = smov (!%p487_p2), 120   ;;  %s4095_s20 = sld [smem:[#allocation3_spill]] (!%p487_p2)  ;;  %v560_v8 = vld [vmem:[%s4069_s2 + $0x28] sm:$0xff] (!%p487_p2)  ;;  %v561_v9 = vld [vmem:[%s4069_s2 + $0x30] sm:$0xff] (!%p487_p2)  ;;  %v562_v10 = vld [vmem:[%s4069_s2 + $0x38] sm:$0xff] (!%p487_p2)  ;;  %vm572_vm2 = vcmask (!%p487_p2), 64512  }
   0xa   : > { %s4088_s21 = smov (!%p487_p2), 8   ;;  %s4086_s22 = smov (!%p487_p2), 112   ;;  %vm3528_vm3 = vmneg (!%p487_p2), %vm567_vm1  ;;  %vm577_vm5 = vcmask (!%p487_p2), 982016   ;;  %vm3389_vm7 = vmmov (!%p487_p2), 1   ;;  %vm582_vm9 = vcmask (!%p487_p2), 916480   ;;  %v764_v4 = vld [vmem:[%s4070_s3 + $0x10] sm:$0xff] (!%p487_p2) }
   0xb   : > { %vm3533_vm4 = vmneg (!%p487_p2), %vm572_vm2  ;;  %s4100_s23 = smov (!%p487_p2), 8   ;;  %s4101_s28 = smov (!%p487_p2), 112   ;;  %vm934_vm10 = vcmask (!%p487_p2), 523264   ;;  %vm1217_vm15 = vcmask (!%p487_p2), 261120   ;;  %vm1819_vm1 = vcmask (!%p487_p2), 457728  }
   0xc   : > { %vm2845_vm6 = vmpackc.low (!%p487_p2), %vm3533_vm4, %vm3528_vm3 }
   0xd   : > { %vm2851_vm8 = vmpackc.low (!%p487_p2), %vm577_vm5, %vm3389_vm7 }
   0xe   : > { %vm3610_vm11 = vmpackc.low (!%p487_p2), %vm3528_vm3, %vm3528_vm3 }
   0xf   : > { %s4112_s25 = smov (!%p537_p3, %s2286_s25), 1  ;;  %v547_v1 = vld [vmem:[%s4095_s20] sm:$0xff]  ;;  %v548_v19 = vld [vmem:[%s4095_s20 + $0x8] sm:$0xff]  ;;  %v549_v20 = vld [vmem:[%s4095_s20 + $0x10] sm:$0xff] }
  0x10   : > { %s2291_s26 = sshll.u32 %s4112_s25, 3  ;;  %2622 = vmatprep.mubr.msk.f32.mxu0 %vm624_vm0, %v547_v1  ;;  %v550_v21 = vld [vmem:[%s4095_s20 + $0x18] sm:$0xff]  ;;  %v551_v22 = vld [vmem:[%s4095_s20 + $0x20] sm:$0xff]  ;;  %v552_v23 = vld [vmem:[%s4095_s20 + $0x28] sm:$0xff] }
  0x11   : > { %s540_s0 = scalar_lea.vmem %s4094_s29, %s2291_s26  ;;  %v553_v24 = vld [vmem:[%s4095_s20 + $0x30] sm:$0xff]  ;;  %v554_v25 = vld [vmem:[%s4095_s20 + $0x38] sm:$0xff]  ;;  %vm3622_vm12 = vmpackc.low %vm577_vm5, %vm577_vm5  ;;  %s2442_s29 = sshll.u32 %s4112_s25, 5 }
  0x12   : > { %v546_v0 = vld [vmem:[%s540_s0] sm:$0xff]  ;;  %vm3631_vm13 = vmpackc.low %vm3533_vm4, %vm3533_vm4  ;;  %s545_s0 = scalar_lea.vmem %s4084_s17, %s2442_s29 }
  0x13   : > { %564 = vrot.lane.b32.xlu0 %v546_v0, %s3384_s30  ;;  %574 = vrot.lane.b32.xlu1 %v546_v0, %s4090_s18  ;;  %vm3649_vm14 = vmpackc.low %vm582_vm9, %vm582_vm9 }
  0x14   : > { %vm3079_vm3 = vmpackc.low %vm1819_vm1, %vm1819_vm1 }
  0x17   : > { %569 = vrot.lane.b32.xlu0 %v546_v0, %s4088_s21  ;;  %579 = vrot.lane.b32.xlu1 %v546_v0, %s4086_s22 }
  0x1b   : > { %591 = vperm.xlu1 %3155, %v556_v2   ;;  %586 = vperm.xlu0 %3154, %v555_v3   ;;  %v763_v2 = vld [vmem:[%s4070_s3 + $0x8] sm:$0xff]  ;;  %v774_v3 = vld [vmem:[%s4071_s4] sm:$0xff] }
  0x1c   : > { %1011 = vmatprep.mubr.f32.mxu1 %v763_v2 }
  0x1f   : > { %596 = vperm.xlu1 %3155, %v557_v5   ;;  %601 = vperm.xlu0 %3154, %v558_v6   ;;  %v776_v5 = vld [vmem:[%s4071_s4 + $0x10] sm:$0xff]  ;;  %v775_v6 = vld [vmem:[%s4071_s4 + $0x8] sm:$0xff] }
  0x23   : > { %606 = vperm.xlu1 %3155, %v559_v7   ;;  %611 = vperm.xlu0 %3154, %v560_v8   ;;  %v777_v7 = vld [vmem:[%s4071_s4 + $0x18] sm:$0xff] }
  0x27   : > { %616 = vperm.xlu1 %3155, %v561_v9   ;;  %621 = vperm.xlu0 %3154, %v562_v10  }
  0x85   : > { %v565_v11 = vpop.permute.xlu0 %564  ;;  %v575_v14 = vpop.permute.xlu1 %574 }
  0x86   : > { %v2850_v17 = vpack.c.bf16 %v575_v14, %v546_v0 }
  0x89   : > { %v570_v15 = vpop.permute.xlu0 %569  ;;  %v580_v18 = vpop.permute.xlu1 %579 }
  0x8a   : > { %v2844_v16 = vpack.c.bf16 %v570_v15, %v565_v11 }
  0x8c   : > { %2846 = vmatprep.subr.msk.bf16.mxu0 %vm2845_vm6, %v2844_v16 }
  0x8d   : > { %2849 = vmatpush3.bf16.msk.msra.mxu0 %vm2845_vm6, %v2844_v16 }
  0x8e   : > { %2852 = vmatprep.subr.msk.bf16.mxu0 %vm2851_vm8, %v2850_v17 }
  0x91   : > { %2855 = vmatpush3.bf16.msk.msra.mxu0 %vm2851_vm8, %v2850_v17 }
  0x92   : > { %2620 = vmatprep.subr.msk.mxu0 %vm582_vm9, %v580_v18 }
  0x95   : > { %2621 = vmatpush3.msk.msra.mxu0 %vm582_vm9, %v580_v18 }
  0x96   : > { %2623 = vmatmul.mubr.msk.f32.vlgmr.msra.gmra.mrb[0].mxu0 %vm624_vm0, %v548_v19 }
  0x97   : > { %2625 = vmatprep.mubr.msk.f32.mxu0 %vm624_vm0, %v549_v20 }
  0x9a   : > { %2626 = vmatmul.mubr.msk.f32.gmra.mrb[2].mxu0 %vm624_vm0, %v550_v21  ;;  %v587_v26 = vpop.permute.xlu0 %586  ;;  %v592_v27 = vpop.permute.xlu1 %591 }
  0x9b   : > { %2628 = vmatprep.mubr.msk.f32.mxu0 %vm624_vm0, %v551_v22 }
  0x9e   : > { %2629 = vmatmul.mubr.msk.f32.gmra.mrb[4].mxu0 %vm624_vm0, %v552_v23  ;;  %v602_v28 = vpop.permute.xlu0 %601  ;;  %v597_v30 = vpop.permute.xlu1 %596 }
  0x9f   : > { %2631 = vmatprep.mubr.msk.f32.mxu0 %vm624_vm0, %v553_v24 }
  0xa2   : > { %2632 = vmatmul.mubr.msk.f32.gmra.mrb[6].mxu0 %vm624_vm0, %v554_v25  ;;  %v612_v39 = vpop.permute.xlu0 %611  ;;  %v607_v43 = vpop.permute.xlu1 %606  ;;  %vm1383_vm0 = vcmask 785408  }
  0xa3   : > { %2650 = vmatprep.mubr.msk.f32.mxu0 %vm934_vm10, %v764_v4 }
  0xa6   : > { %v622_v53 = vpop.permute.xlu0 %621  ;;  %v617_v56 = vpop.permute.xlu1 %616 }
 0x169   : > { %v2624_v29 = vpop.f32.mrb[0].mxu0 }
 0x16a   : > { %v721_v31 = vadd.f32 %v2624_v29, %v592_v27  ;;  %v715_v32 = vpop.f32.mrb[1].mxu0 }
 0x16b   : > { %v716_v33 = vadd.f32 %v715_v32, %v587_v26 }
 0x16c   : > { %v755_v34 = vmax.f32 %v721_v31, 0.0 }
 0x16d   : > { %v754_v35 = vmax.f32 %v716_v33, 0.0  ;;  %v2627_v36 = vpop.f32.mrb[2].mxu0 }
 0x16e   : > { %v731_v37 = vadd.f32 %v2627_v36, %v602_v28  ;;  %v725_v38 = vpop.f32.mrb[3].mxu0  ;;  %v1654_v28 = vld [vmem:[%s4080_s13] sm:$0xff] }
 0x16f   : > { %v726_v40 = vadd.f32 %v725_v38, %v597_v30  ;;  %v3156_v41 = vpack.i.bf16 %v755_v34, %v754_v35  ;;  %v2856_v42 = vpack.c.bf16 %v755_v34, %v754_v35 }
 0x170   : > { %v757_v44 = vmax.f32 %v731_v37, 0.0  ;;  %v1780_v37 = vld [vmem:[%s4078_s11 + $0x8] sm:$0xff] }
 0x171   : > { %v756_v45 = vmax.f32 %v726_v40, 0.0  ;;  %v2630_v46 = vpop.f32.mrb[4].mxu0  ;;  %3157 = vrot.lane.b32.xlu1 %v3156_v41, %s3384_s30  ;;  %2857 = vmatprep.subr.bf16.mxu1 %v2856_v42 }
 0x172   : > { %v741_v47 = vadd.f32 %v2630_v46, %v612_v39  ;;  %v735_v48 = vpop.f32.mrb[5].mxu0 }
 0x173   : > { %v736_v49 = vadd.f32 %v735_v48, %v607_v43  ;;  %v3161_v50 = vpack.i.bf16 %v757_v44, %v756_v45  ;;  %v2861_v52 = vpack.c.bf16 %v757_v44, %v756_v45 }
 0x174   : > { %v759_v51 = vmax.f32 %v741_v47, 0.0 }
 0x175   : > { %v758_v54 = vmax.f32 %v736_v49, 0.0  ;;  %v2633_v55 = vpop.f32.mrb[6].mxu0  ;;  %3162 = vrot.lane.b32.xlu0 %v3161_v50, %s3384_s30 }
 0x176   : > { %v751_v57 = vadd.f32 %v2633_v55, %v622_v53  ;;  %v745_v58 = vpop.f32.mrb[7].mxu0 }
 0x177   : > { %v746_v59 = vadd.f32 %v745_v58, %v617_v56  ;;  %v3166_v60 = vpack.i.bf16 %v759_v51, %v758_v54  ;;  %v2866_v62 = vpack.c.bf16 %v759_v51, %v758_v54 }
 0x178   : > { %v761_v61 = vmax.f32 %v751_v57, 0.0 }
 0x179   : > { %v760_v63 = vmax.f32 %v746_v59, 0.0  ;;  %3167 = vrot.lane.b32.xlu1 %v3166_v60, %s3384_s30 }
 0x17b   : > { %v3176_v0 = vpack.i.bf16 %v761_v61, %v760_v63  ;;  %v2871_v1 = vpack.c.bf16 %v761_v61, %v760_v63  ;;  %v1122_v61 = vld [vmem:[%s4072_s5 + $0x28] sm:$0xff] }
 0x17d   : > { %3172 = vrot.lane.b32.xlu1 %v3156_v41, %s4090_s18  ;;  %3177 = vrot.lane.b32.xlu0 %v3176_v0, %s3384_s30 }
 0x181   : > { %3187 = vrot.lane.b32.xlu1 %v3161_v50, %s4090_s18  ;;  %3182 = vrot.lane.b32.xlu0 %v3156_v41, %s4100_s23 }
 0x185   : > { %3197 = vrot.lane.b32.xlu1 %v3166_v60, %s4090_s18  ;;  %3192 = vrot.lane.b32.xlu0 %v3161_v50, %s4100_s23 }
 0x189   : > { %3212 = vrot.lane.b32.xlu1 %v3176_v0, %s4090_s18  ;;  %3202 = vrot.lane.b32.xlu0 %v3166_v60, %s4100_s23 }
 0x18d   : > { %3217 = vrot.lane.b32.xlu1 %v3176_v0, %s4100_s23  ;;  %3207 = vrot.lane.b32.xlu0 %v3156_v41, %s4101_s28 }
 0x191   : > { %3227 = vrot.lane.b32.xlu1 %v3166_v60, %s4101_s28  ;;  %3222 = vrot.lane.b32.xlu0 %v3161_v50, %s4101_s28 }
 0x195   : > { %916 = vperm.xlu1 %3155, %v774_v3   ;;  %3232 = vrot.lane.b32.xlu0 %v3176_v0, %s4101_s28 }
 0x199   : > { %926 = vperm.xlu1 %3155, %v776_v5   ;;  %921 = vperm.xlu0 %3154, %v775_v6   ;;  %v762_v6 = vld [vmem:[%s4070_s3] sm:$0xff] }
 0x19d   : > { %931 = vperm.xlu0 %3154, %v777_v7   ;;  %v766_v7 = vld [vmem:[%s4070_s3 + $0x20] sm:$0xff] }
 0x1e3   : > { %v3158_v8 = vpop.permute.xlu1 %3157 }
 0x1e4   : > { %v3160_v9 = vunpack.i.h.bf16 %v3158_v8  ;;  %v3159_v10 = vunpack.i.l.bf16 %v3158_v8 }
 0x1e6   : > { %v2858_v14 = vpack.c.bf16 %v3160_v9, %v3159_v10 }
 0x1e7   : > { %v3163_v15 = vpop.permute.xlu0 %3162 }
 0x1e8   : > { %v3165_v16 = vunpack.i.h.bf16 %v3163_v15  ;;  %v3164_v17 = vunpack.i.l.bf16 %v3163_v15  ;;  %2860 = vmatpush3.bf16.msk.msra.mxu1 %vm3610_vm11, %v2858_v14 }
 0x1e9   : > { %2862 = vmatprep.subr.bf16.mxu1 %v2861_v52 }
 0x1ea   : > { %v2863_v18 = vpack.c.bf16 %v3165_v16, %v3164_v17  ;;  %v765_v16 = vld [vmem:[%s4070_s3 + $0x18] sm:$0xff] }
 0x1eb   : > { %v3168_v19 = vpop.permute.xlu1 %3167  ;;  %v769_v17 = vld [vmem:[%s4070_s3 + $0x38] sm:$0xff] }
 0x1ec   : > { %v3170_v20 = vunpack.i.h.bf16 %v3168_v19  ;;  %v3169_v21 = vunpack.i.l.bf16 %v3168_v19  ;;  %2865 = vmatpush3.bf16.msk.msra.mxu1 %vm3610_vm11, %v2863_v18  ;;  %v768_v19 = vld [vmem:[%s4070_s3 + $0x30] sm:$0xff] }
 0x1ed   : > { %2867 = vmatprep.subr.bf16.mxu1 %v2866_v62 }
 0x1ee   : > { %v2868_v12 = vpack.c.bf16 %v3170_v20, %v3169_v21  ;;  %v772_v20 = vld [vmem:[%s4070_s3 + $0x50] sm:$0xff]  ;;  %v771_v21 = vld [vmem:[%s4070_s3 + $0x48] sm:$0xff] }
 0x1ef   : > { %v3173_v22 = vpop.permute.xlu1 %3172  ;;  %v3178_v23 = vpop.permute.xlu0 %3177 }
 0x1f0   : > { %v3175_v24 = vunpack.i.h.bf16 %v3173_v22  ;;  %v3174_v25 = vunpack.i.l.bf16 %v3173_v22  ;;  %v3180_v26 = vunpack.i.h.bf16 %v3178_v23  ;;  %v3179_v27 = vunpack.i.l.bf16 %v3178_v23  ;;  %2870 = vmatpush3.bf16.msk.msra.mxu1 %vm3610_vm11, %v2868_v12  ;;  %v767_v12 = vld [vmem:[%s4070_s3 + $0x28] sm:$0xff]  ;;  %v770_v22 = vld [vmem:[%s4070_s3 + $0x40] sm:$0xff]  ;;  %v773_v23 = vld [vmem:[%s4070_s3 + $0x58] sm:$0xff] }
 0x1f1   : > { %2872 = vmatprep.subr.bf16.mxu1 %v2871_v1 }
 0x1f2   : > { %v2876_v29 = vpack.c.bf16 %v3175_v24, %v3174_v25  ;;  %v2873_v30 = vpack.c.bf16 %v3180_v26, %v3179_v27 }
 0x1f3   : > { %v3188_v31 = vpop.permute.xlu1 %3187  ;;  %v3183_v32 = vpop.permute.xlu0 %3182 }
 0x1f4   : > { %v3190_v33 = vunpack.i.h.bf16 %v3188_v31  ;;  %v3189_v34 = vunpack.i.l.bf16 %v3188_v31  ;;  %v3185_v35 = vunpack.i.h.bf16 %v3183_v32  ;;  %v3184_v36 = vunpack.i.l.bf16 %v3183_v32  ;;  %2875 = vmatpush3.bf16.msk.msra.mxu1 %vm3610_vm11, %v2873_v30 }
 0x1f5   : > { %2878 = vmatprep.subr.msk.bf16.mxu1 %vm3622_vm12, %v2876_v29 }
 0x1f6   : > { %v2882_v38 = vpack.c.bf16 %v3190_v33, %v3189_v34  ;;  %v2879_v39 = vpack.c.bf16 %v3185_v35, %v3184_v36  ;;  %v3390_v34 = vmov 0.0|0.0  }
 0x1f7   : > { %v3198_v40 = vpop.permute.xlu1 %3197  ;;  %v3193_v41 = vpop.permute.xlu0 %3192 }
 0x1f8   : > { %v3200_v42 = vunpack.i.h.bf16 %v3198_v40  ;;  %v3199_v43 = vunpack.i.l.bf16 %v3198_v40  ;;  %v3195_v44 = vunpack.i.h.bf16 %v3193_v41  ;;  %v3194_v45 = vunpack.i.l.bf16 %v3193_v41  ;;  %2881 = vmatpush3.bf16.msk.msra.mxu1 %vm3631_vm13, %v2879_v39 }
 0x1f9   : > { %2884 = vmatprep.subr.msk.bf16.mxu1 %vm3622_vm12, %v2882_v38 }
 0x1fa   : > { %v2888_v13 = vpack.c.bf16 %v3200_v42, %v3199_v43  ;;  %v2885_v46 = vpack.c.bf16 %v3195_v44, %v3194_v45 }
 0x1fb   : > { %v3213_v47 = vpop.permute.xlu1 %3212  ;;  %v3203_v48 = vpop.permute.xlu0 %3202 }
 0x1fc   : > { %v3215_v49 = vunpack.i.h.bf16 %v3213_v47  ;;  %v3214_v50 = vunpack.i.l.bf16 %v3213_v47  ;;  %v3205_v51 = vunpack.i.h.bf16 %v3203_v48  ;;  %v3204_v52 = vunpack.i.l.bf16 %v3203_v48  ;;  %2887 = vmatpush3.bf16.msk.msra.mxu1 %vm3631_vm13, %v2885_v46 }
 0x1fd   : > { %2890 = vmatprep.subr.msk.bf16.mxu1 %vm3622_vm12, %v2888_v13 }
 0x1fe   : > { %v2894_v53 = vpack.c.bf16 %v3215_v49, %v3214_v50  ;;  %v2891_v54 = vpack.c.bf16 %v3205_v51, %v3204_v52 }
 0x1ff   : > { %v3218_v55 = vpop.permute.xlu1 %3217  ;;  %v3208_v56 = vpop.permute.xlu0 %3207 }
 0x200   : > { %v3220_v57 = vunpack.i.h.bf16 %v3218_v55  ;;  %v3219_v58 = vunpack.i.l.bf16 %v3218_v55  ;;  %v3210_v59 = vunpack.i.h.bf16 %v3208_v56  ;;  %v3209_v60 = vunpack.i.l.bf16 %v3208_v56  ;;  %2893 = vmatpush3.bf16.msk.msra.mxu1 %vm3631_vm13, %v2891_v54  ;;  %v1125_v56 = vld [vmem:[%s4073_s6] sm:$0xff] }
 0x201   : > { %2896 = vmatprep.subr.msk.bf16.mxu1 %vm3622_vm12, %v2894_v53 }
 0x202   : > { %v2897_v62 = vpack.c.bf16 %v3220_v57, %v3219_v58  ;;  %v2900_v63 = vpack.c.bf16 %v3210_v59, %v3209_v60  ;;  %v1126_v57 = vld [vmem:[%s4073_s6 + $0x8] sm:$0xff]  ;;  %v1127_v58 = vld [vmem:[%s4073_s6 + $0x10] sm:$0xff]  ;;  %v1128_v59 = vld [vmem:[%s4073_s6 + $0x18] sm:$0xff] }
 0x203   : > { %v3228_v0 = vpop.permute.xlu1 %3227  ;;  %v3223_v1 = vpop.permute.xlu0 %3222  ;;  %v1118_v60 = vld [vmem:[%s4072_s5 + $0x8] sm:$0xff] }
 0x204   : > { %v3230_v2 = vunpack.i.h.bf16 %v3228_v0  ;;  %v3229_v3 = vunpack.i.l.bf16 %v3228_v0  ;;  %v3225_v4 = vunpack.i.h.bf16 %v3223_v1  ;;  %v3224_v5 = vunpack.i.l.bf16 %v3223_v1  ;;  %2899 = vmatpush3.bf16.msk.msra.mxu1 %vm3631_vm13, %v2897_v62  ;;  %2902 = vmatprep.subr.msk.bf16.mxu0 %vm3649_vm14, %v2900_v63 }
 0x205   : > { %2905 = vmatpush3.bf16.msk.msra.mxu0 %vm3649_vm14, %v2900_v63 }
 0x206   : > { %v2906_v8 = vpack.c.bf16 %v3225_v4, %v3224_v5  ;;  %v2912_v10 = vpack.c.bf16 %v3230_v2, %v3229_v3 }
 0x207   : > { %v3233_v9 = vpop.permute.xlu0 %3232  ;;  %1012 = vmatmul.mubr.f32.vlgmr.msra.gmra.mrb[0].mxu1 %v762_v6 }
 0x208   : > { %v3235_v14 = vunpack.i.h.bf16 %v3233_v9  ;;  %v3234_v15 = vunpack.i.l.bf16 %v3233_v9  ;;  %2908 = vmatprep.subr.msk.bf16.mxu0 %vm3649_vm14, %v2906_v8  ;;  %1016 = vmatprep.mubr.f32.mxu1 %v766_v7 }
 0x209   : > { %2911 = vmatpush3.bf16.msk.msra.mxu0 %vm3649_vm14, %v2906_v8 }
 0x20a   : > { %2914 = vmatprep.subr.msk.bf16.mxu0 %vm3649_vm14, %v2912_v10  ;;  %v2918_v18 = vpack.c.bf16 %v3235_v14, %v3234_v15 }
 0x20b   : > { %1017 = vmatmul.mubr.f32.gmra.mrb[2].mxu1 %v765_v16 }
 0x20c   : > { %1021 = vmatprep.mubr.f32.mxu1 %v769_v17 }
 0x20d   : > { %2917 = vmatpush3.bf16.msk.msra.mxu0 %vm3649_vm14, %v2912_v10 }
 0x20e   : > { %2920 = vmatprep.subr.msk.bf16.mxu0 %vm3649_vm14, %v2918_v18 }
 0x20f   : > { %1022 = vmatmul.mubr.f32.gmra.mrb[4].mxu1 %v768_v19 }
 0x210   : > { %1026 = vmatprep.mubr.f32.mxu1 %v772_v20 }
 0x211   : > { %2923 = vmatpush3.bf16.msk.msra.mxu0 %vm3649_vm14, %v2918_v18 }
 0x212   : > { %2924 = vmatprep.subr.bf16.mxu0 %v3390_v34 }
 0x213   : > { %1027 = vmatmul.mubr.f32.gmra.mrb[6].mxu1 %v771_v21 }
 0x214   : > { %2651 = vmatmul.mubr.msk.f32.vlgmr.msra.gmra.mrb[8].mxu0 %vm934_vm10, %v767_v12  ;;  %v917_v35 = vpop.permute.xlu1 %916 }
 0x215   : > { %2653 = vmatprep.mubr.msk.f32.mxu0 %vm934_vm10, %v770_v22 }
 0x218   : > { %2654 = vmatmul.mubr.msk.f32.gmra.mrb[10].mxu0 %vm934_vm10, %v773_v23  ;;  %v922_v32 = vpop.permute.xlu0 %921  ;;  %v927_v47 = vpop.permute.xlu1 %926 }
 0x219   : > { %2384 = vmatprep.mubr.msk.f32.mxu0 %vm1217_vm15, %v1118_v60 }
 0x21c   : > { %v932_v13 = vpop.permute.xlu0 %931 }
 0x2da   : > { %v2488_v24 = vpop.f32.mrb[0].mxu1 }
 0x2db   : > { %v2489_v25 = vpop.f32.mrb[1].mxu1 }
 0x2dc   : > { %v2490_v26 = vadd.f32 %v2489_v25, %v2488_v24 }
 0x2de   : > { %v2491_v27 = vpop.f32.mrb[2].mxu1  ;;  %v1014_v42 = vadd.f32 %v2490_v26, %v917_v35  ;;  %v1117_v35 = vld [vmem:[%s4072_s5] sm:$0xff] }
 0x2df   : > { %v2492_v29 = vpop.f32.mrb[3].mxu1 }
 0x2e0   : > { %v2493_v30 = vadd.f32 %v2492_v29, %v2491_v27 }
 0x2e2   : > { %v2494_v31 = vpop.f32.mrb[4].mxu1  ;;  %v1019_v39 = vadd.f32 %v2493_v30, %v922_v32 }
 0x2e3   : > { %v2495_v33 = vpop.f32.mrb[5].mxu1 }
 0x2e4   : > { %v2496_v36 = vadd.f32 %v2495_v33, %v2494_v31 }
 0x2e6   : > { %v2497_v38 = vpop.f32.mrb[6].mxu1  ;;  %v1024_v50 = vadd.f32 %v2496_v36, %v927_v47  ;;  %v1120_v36 = vld [vmem:[%s4072_s5 + $0x18] sm:$0xff] }
 0x2e7   : > { %v2498_v40 = vpop.f32.mrb[7].mxu1  ;;  %v2652_v41 = vpop.f32.mrb[8].mxu0 }
 0x2e8   : > { %v2499_v43 = vadd.f32 %v2498_v40, %v2497_v38  ;;  %v3707_v44 = vadd.f32 %v2652_v41, %v1019_v39  ;;  %v1098_v45 = vpop.f32.mrb[9].mxu0  ;;  %v1119_v38 = vld [vmem:[%s4072_s5 + $0x10] sm:$0xff]  ;;  %v1124_v39 = vld [vmem:[%s4072_s5 + $0x38] sm:$0xff] }
 0x2e9   : > { %v3709_v46 = vadd.f32 %v1098_v45, %v1014_v42  ;;  %v1123_v40 = vld [vmem:[%s4072_s5 + $0x30] sm:$0xff] }
 0x2ea   : > { %v1029_v48 = vadd.f32 %v2499_v43, %v932_v13 }
 0x2eb   : > { %v2655_v49 = vpop.f32.mrb[10].mxu0  ;;  %v3236_v51 = vpack.i.bf16 %v3707_v44, %v3709_v46  ;;  %v2941_v11 = vpack.c.bf16 %v3707_v44, %v3709_v46 }
 0x2ec   : > { %v3713_v52 = vadd.f32 %v2655_v49, %v1029_v48  ;;  %v1108_v53 = vpop.f32.mrb[11].mxu0 }
 0x2ed   : > { %v3715_v54 = vadd.f32 %v1108_v53, %v1024_v50  ;;  %3237 = vrot.lane.b32.xlu1 %v3236_v51, %s3384_s30 }
 0x2ef   : > { %v3241_v55 = vpack.i.bf16 %v3713_v52, %v3715_v54  ;;  %v2944_v20 = vpack.c.bf16 %v3713_v52, %v3715_v54 }
 0x2f1   : > { %3242 = vrot.lane.b32.xlu0 %v3241_v55, %s3384_s30  ;;  %3247 = vrot.lane.b32.xlu1 %v3236_v51, %s4100_s23  ;;  %s4110_s30 = smov 120  }
 0x2f5   : > { %3252 = vrot.lane.b32.xlu0 %v3241_v55, %s4100_s23  ;;  %3257 = vrot.lane.b32.xlu1 %v3236_v51, %s4090_s18 }
 0x2f9   : > { %3262 = vrot.lane.b32.xlu0 %v3241_v55, %s4090_s18  ;;  %3267 = vrot.lane.b32.xlu1 %v3236_v51, %s4101_s28 }
 0x2fd   : > { %3272 = vrot.lane.b32.xlu0 %v3241_v55, %s4101_s28  ;;  %1199 = vperm.xlu1 %3155, %v1125_v56  }
 0x301   : > { %1204 = vperm.xlu0 %3154, %v1126_v57   ;;  %1209 = vperm.xlu1 %3155, %v1127_v58  }
 0x305   : > { %1214 = vperm.xlu0 %3154, %v1128_v59  }
 0x35f   : > { %v3238_v62 = vpop.permute.xlu1 %3237 }
 0x360   : > { %v3240_v63 = vunpack.i.h.bf16 %v3238_v62  ;;  %v3239_v0 = vunpack.i.l.bf16 %v3238_v62 }
 0x362   : > { %v2925_v1 = vpack.c.bf16 %v3240_v63, %v3239_v0 }
 0x363   : > { %v3243_v2 = vpop.permute.xlu0 %3242  ;;  %v3248_v3 = vpop.permute.xlu1 %3247 }
 0x364   : > { %v3245_v4 = vunpack.i.h.bf16 %v3243_v2  ;;  %v3244_v5 = vunpack.i.l.bf16 %v3243_v2  ;;  %2927 = vmatpush1.bf16.msk.msra.mxu0 %vm3610_vm11, %v2925_v1  ;;  %v3250_v7 = vunpack.i.h.bf16 %v3248_v3  ;;  %v3249_v8 = vunpack.i.l.bf16 %v3248_v3  ;;  %v1323_v3 = vld [vmem:[%s4075_s8] sm:$0xff] }
 0x365   : > { %2928 = vmatprep.subr.bf16.mxu0 %v3390_v34 }
 0x366   : > { %v2929_v6 = vpack.c.bf16 %v3245_v4, %v3244_v5  ;;  %v2933_v10 = vpack.c.bf16 %v3250_v7, %v3249_v8  ;;  %v1324_v7 = vld [vmem:[%s4075_s8 + $0x8] sm:$0xff]  ;;  %v1319_v8 = vld [vmem:[%s4074_s7] sm:$0xff] }
 0x367   : > { %v3253_v9 = vpop.permute.xlu0 %3252  ;;  %v3258_v17 = vpop.permute.xlu1 %3257  ;;  %2680 = vmatprep.mubr.msk.f32.mxu1 %vm1383_vm0, %v1319_v8 }
 0x368   : > { %2931 = vmatpush1.bf16.msk.msra.mxu0 %vm3610_vm11, %v2929_v6  ;;  %v3255_v14 = vunpack.i.h.bf16 %v3253_v9  ;;  %v3254_v15 = vunpack.i.l.bf16 %v3253_v9  ;;  %v3260_v18 = vunpack.i.h.bf16 %v3258_v17  ;;  %v3259_v19 = vunpack.i.l.bf16 %v3258_v17  ;;  %v1325_v6 = vld [vmem:[%s4075_s8 + $0x10] sm:$0xff]  ;;  %v1326_v9 = vld [vmem:[%s4075_s8 + $0x18] sm:$0xff] }
 0x369   : > { %2932 = vmatprep.subr.bf16.mxu0 %v3390_v34 }
 0x36a   : > { %v2937_v16 = vpack.c.bf16 %v3255_v14, %v3254_v15  ;;  %v2947_v12 = vpack.c.bf16 %v3260_v18, %v3259_v19 }
 0x36b   : > { %v3263_v21 = vpop.permute.xlu0 %3262  ;;  %v3268_v24 = vpop.permute.xlu1 %3267 }
 0x36c   : > { %2935 = vmatpush1.bf16.msk.msra.mxu0 %vm3631_vm13, %v2933_v10  ;;  %v3265_v22 = vunpack.i.h.bf16 %v3263_v21  ;;  %v3264_v23 = vunpack.i.l.bf16 %v3263_v21  ;;  %v3270_v26 = vunpack.i.h.bf16 %v3268_v24  ;;  %v3269_v27 = vunpack.i.l.bf16 %v3268_v24 }
 0x36d   : > { %2936 = vmatprep.subr.bf16.mxu0 %v3390_v34 }
 0x36e   : > { %v2951_v25 = vpack.c.bf16 %v3265_v22, %v3264_v23  ;;  %v2955_v30 = vpack.c.bf16 %v3270_v26, %v3269_v27  ;;  %v1320_v27 = vld [vmem:[%s4074_s7 + $0x8] sm:$0xff] }
 0x36f   : > { %v3273_v29 = vpop.permute.xlu0 %3272 }
 0x370   : > { %2939 = vmatpush1.bf16.msk.msra.mxu0 %vm3631_vm13, %v2937_v16  ;;  %v3275_v31 = vunpack.i.h.bf16 %v3273_v29  ;;  %v3274_v32 = vunpack.i.l.bf16 %v3273_v29  ;;  %v1321_v29 = vld [vmem:[%s4074_s7 + $0x10] sm:$0xff] }
 0x371   : > { %2940 = vmatprep.subr.bf16.mxu0 %v3390_v34 }
 0x372   : > { %v2959_v33 = vpack.c.bf16 %v3275_v31, %v3274_v32 }
 0x374   : > { %2942 = vmatpush1.bf16.msra.mxu0 %v2941_v11 }
 0x375   : > { %2943 = vmatprep.subr.bf16.mxu0 %v3390_v34 }
 0x378   : > { %2945 = vmatpush1.bf16.msra.mxu0 %v2944_v20 }
 0x379   : > { %2946 = vmatprep.subr.bf16.mxu0 %v3390_v34 }
 0x37c   : > { %2949 = vmatpush1.bf16.msk.msra.mxu0 %vm3622_vm12, %v2947_v12  ;;  %v1200_v43 = vpop.permute.xlu1 %1199 }
 0x37d   : > { %2950 = vmatprep.subr.bf16.mxu0 %v3390_v34 }
 0x380   : > { %2953 = vmatpush1.bf16.msk.msra.mxu0 %vm3622_vm12, %v2951_v25  ;;  %v1205_v13 = vpop.permute.xlu0 %1204  ;;  %v1210_v58 = vpop.permute.xlu1 %1209 }
 0x381   : > { %2954 = vmatprep.subr.bf16.mxu0 %v3390_v34 }
 0x384   : > { %2957 = vmatpush1.bf16.msk.msra.mxu0 %vm3649_vm14, %v2955_v30  ;;  %v1215_v60 = vpop.permute.xlu0 %1214  ;;  %v1322_v30 = vld [vmem:[%s4074_s7 + $0x18] sm:$0xff] }
 0x385   : > { %2958 = vmatprep.subr.bf16.mxu0 %v3390_v34  ;;  %v1121_v34 = vld [vmem:[%s4072_s5 + $0x20] sm:$0xff] }
 0x388   : > { %2961 = vmatpush1.bf16.msk.msra.mxu0 %vm3649_vm14, %v2959_v33 }
 0x38b   : > { %1295 = vmatmul.mubr.f32.vlgmr.msra.gmra.mrb[12].mxu0 %v1117_v35 }
 0x38c   : > { %2385 = vmatprep.mubr.msk.f32.mxu0 %vm1217_vm15, %v1120_v36 }
 0x38f   : > { %1300 = vmatmul.mubr.f32.gmra.mrb[14].mxu0 %v1119_v38 }
 0x390   : > { %2386 = vmatprep.mubr.msk.f32.mxu0 %vm1217_vm15, %v1122_v61 }
 0x393   : > { %1305 = vmatmul.mubr.f32.gmra.mrb[16].mxu0 %v1121_v34 }
 0x394   : > { %2387 = vmatprep.mubr.msk.f32.mxu0 %vm1217_vm15, %v1124_v39 }
 0x397   : > { %1310 = vmatmul.mubr.f32.gmra.mrb[18].mxu0 %v1123_v40 }
 0x45e   : > { %v1296_v41 = vpop.f32.mrb[12].mxu0 }
 0x45f   : > { %v1298_v42 = vpop.f32.mrb[13].mxu0  ;;  %v1297_v45 = vadd.f32 %v1296_v41, %v1200_v43 }
 0x461   : > { %v1315_v50 = vmax.f32 %v1297_v45, 0.0 }
 0x462   : > { %v1301_v47 = vpop.f32.mrb[14].mxu0 }
 0x463   : > { %v1302_v48 = vadd.f32 %v1301_v47, %v1205_v13  ;;  %v1303_v49 = vpop.f32.mrb[15].mxu0 }
 0x465   : > { %v1316_v51 = vmax.f32 %v1302_v48, 0.0 }
 0x466   : > { %v1306_v53 = vpop.f32.mrb[16].mxu0 }
 0x467   : > { %v1308_v55 = vpop.f32.mrb[17].mxu0  ;;  %v3276_v56 = vpack.i.bf16 %v1316_v51, %v1315_v50  ;;  %v2974_v57 = vpack.c.bf16 %v1316_v51, %v1315_v50  ;;  %v1307_v59 = vadd.f32 %v1306_v53, %v1210_v58  ;;  %v1496_v58 = vld [vmem:[%s4077_s10 + $0x18] sm:$0xff] }
 0x469   : > { %3277 = vrot.lane.b32.xlu1 %v3276_v56, %s4100_s23  ;;  %v1317_v1 = vmax.f32 %v1307_v59, 0.0 }
 0x46a   : > { %v1311_v62 = vpop.f32.mrb[18].mxu0 }
 0x46b   : > { %v1312_v63 = vadd.f32 %v1311_v62, %v1215_v60  ;;  %v1313_v0 = vpop.f32.mrb[19].mxu0 }
 0x46d   : > { %v1318_v2 = vmax.f32 %v1312_v63, 0.0  ;;  %3287 = vrot.lane.b32.xlu1 %v3276_v56, %s4090_s18 }
 0x46f   : > { %v3281_v4 = vpack.i.bf16 %v1318_v2, %v1317_v1  ;;  %v2978_v5 = vpack.c.bf16 %v1318_v2, %v1317_v1 }
 0x471   : > { %3282 = vrot.lane.b32.xlu0 %v3281_v4, %s4100_s23  ;;  %1365 = vperm.xlu1 %3155, %v1323_v3  }
 0x475   : > { %3292 = vrot.lane.b32.xlu0 %v3281_v4, %s4090_s18  ;;  %1375 = vperm.xlu1 %3155, %v1325_v6  }
 0x479   : > { %1370 = vperm.xlu0 %3154, %v1324_v7  }
 0x47d   : > { %1380 = vperm.xlu0 %3154, %v1326_v9  }
 0x4db   : > { %v3278_v10 = vpop.permute.xlu1 %3277 }
 0x4dc   : > { %v3280_v14 = vunpack.i.h.bf16 %v3278_v10  ;;  %v3279_v15 = vunpack.i.l.bf16 %v3278_v10 }
 0x4de   : > { %v2962_v16 = vpack.c.bf16 %v3280_v14, %v3279_v15  ;;  %v1490_v15 = vld [vmem:[%s4076_s9 + $0x8] sm:$0xff] }
 0x4df   : > { %v3288_v20 = vpop.permute.xlu1 %3287 }
 0x4e0   : > { %2964 = vmatprep.subr.msk.bf16.mxu1 %vm3631_vm13, %v2962_v16  ;;  %v3290_v21 = vunpack.i.h.bf16 %v3288_v20  ;;  %v3289_v12 = vunpack.i.l.bf16 %v3288_v20  ;;  %v1657_v20 = vld [vmem:[%s4080_s13 + $0x18] sm:$0xff] }
 0x4e1   : > { %2967 = vmatpush3.bf16.msk.msra.mxu1 %vm3631_vm13, %v2962_v16  ;;  %v1491_v16 = vld [vmem:[%s4076_s9 + $0x10] sm:$0xff] }
 0x4e2   : > { %v2982_v23 = vpack.c.bf16 %v3290_v21, %v3289_v12  ;;  %v1658_v12 = vld [vmem:[%s4080_s13 + $0x20] sm:$0xff] }
 0x4e3   : > { %v3283_v11 = vpop.permute.xlu0 %3282 }
 0x4e4   : > { %v3285_v17 = vunpack.i.h.bf16 %v3283_v11  ;;  %v3284_v18 = vunpack.i.l.bf16 %v3283_v11  ;;  %v1492_v11 = vld [vmem:[%s4076_s9 + $0x18] sm:$0xff] }
 0x4e6   : > { %v2968_v19 = vpack.c.bf16 %v3285_v17, %v3284_v18  ;;  %v1655_v17 = vld [vmem:[%s4080_s13 + $0x8] sm:$0xff]  ;;  %v1656_v18 = vld [vmem:[%s4080_s13 + $0x10] sm:$0xff] }
 0x4e7   : > { %v3293_v22 = vpop.permute.xlu0 %3292  ;;  %v3030_v21 = vpack.c.bf16 %v1657_v20, %v1656_v18  ;;  %v1785_v18 = vld [vmem:[%s4079_s12 + $0x10] sm:$0xff]  ;;  %v1779_v20 = vld [vmem:[%s4078_s11] sm:$0xff] }
 0x4e8   : > { %2970 = vmatprep.subr.msk.bf16.mxu1 %vm3631_vm13, %v2968_v19  ;;  %v3295_v24 = vunpack.i.h.bf16 %v3293_v22  ;;  %v3294_v25 = vunpack.i.l.bf16 %v3293_v22  ;;  %v1659_v22 = vld [vmem:[%s4080_s13 + $0x28] sm:$0xff] }
 0x4e9   : > { %2973 = vmatpush3.bf16.msk.msra.mxu1 %vm3631_vm13, %v2968_v19  ;;  %v3026_v19 = vpack.c.bf16 %v1655_v17, %v1654_v28  ;;  %v1783_v17 = vld [vmem:[%s4079_s12] sm:$0xff] }
 0x4ea   : > { %2975 = vmatprep.subr.bf16.mxu1 %v2974_v57  ;;  %v2988_v26 = vpack.c.bf16 %v3295_v24, %v3294_v25  ;;  %v1660_v24 = vld [vmem:[%s4080_s13 + $0x30] sm:$0xff]  ;;  %v1661_v25 = vld [vmem:[%s4080_s13 + $0x38] sm:$0xff] }
 0x4eb   : > { %3027 = vmatprep.subr.bf16.mxu0 %v3026_v19 }
 0x4ec   : > { %3029 = vmatpush3.bf16.msra.mxu0 %v3026_v19  ;;  %v1784_v19 = vld [vmem:[%s4079_s12 + $0x8] sm:$0xff] }
 0x4ed   : > { %2977 = vmatpush3.bf16.msra.mxu1 %v2974_v57  ;;  %v1489_v57 = vld [vmem:[%s4076_s9] sm:$0xff]  ;;  %3031 = vmatprep.subr.bf16.mxu0 %v3030_v21 }
 0x4ee   : > { %2979 = vmatprep.subr.bf16.mxu1 %v2978_v5 }
 0x4f0   : > { %v1366_v32 = vpop.permute.xlu1 %1365  ;;  %3033 = vmatpush3.bf16.msra.mxu0 %v3030_v21  ;;  %v1786_v21 = vld [vmem:[%s4079_s12 + $0x18] sm:$0xff] }
 0x4f1   : > { %2981 = vmatpush3.bf16.msra.mxu1 %v2978_v5 }
 0x4f2   : > { %2984 = vmatprep.subr.msk.bf16.mxu1 %vm3622_vm12, %v2982_v23 }
 0x4f4   : > { %v1376_v41 = vpop.permute.xlu1 %1375 }
 0x4f5   : > { %2987 = vmatpush3.bf16.msk.msra.mxu1 %vm3622_vm12, %v2982_v23  ;;  %v3034_v23 = vpack.c.bf16 %v1659_v22, %v1658_v12 }
 0x4f6   : > { %2990 = vmatprep.subr.msk.bf16.mxu1 %vm3622_vm12, %v2988_v26 }
 0x4f7   : > { %3035 = vmatprep.subr.bf16.mxu0 %v3034_v23 }
 0x4f8   : > { %v1371_v31 = vpop.permute.xlu0 %1370  ;;  %3037 = vmatpush3.bf16.msra.mxu0 %v3034_v23 }
 0x4f9   : > { %2993 = vmatpush3.bf16.msk.msra.mxu1 %vm3622_vm12, %v2988_v26  ;;  %v3038_v26 = vpack.c.bf16 %v1661_v25, %v1660_v24 }
 0x4fb   : > { %3039 = vmatprep.subr.bf16.mxu0 %v3038_v26 }
 0x4fc   : > { %2681 = vmatmul.mubr.msk.f32.vlgmr.msra.gmra.mrb[8].mxu1 %vm1383_vm0, %v1320_v27  ;;  %v1381_v34 = vpop.permute.xlu0 %1380  ;;  %v1662_v27 = vld [vmem:[%s4080_s13 + $0x40] sm:$0xff]  ;;  %3041 = vmatpush3.bf16.msra.mxu0 %v3038_v26 }
 0x4fd   : > { %2683 = vmatprep.mubr.msk.f32.mxu1 %vm1383_vm0, %v1321_v29  ;;  %v1663_v29 = vld [vmem:[%s4080_s13 + $0x48] sm:$0xff] }
 0x500   : > { %2684 = vmatmul.mubr.msk.f32.gmra.mrb[10].mxu1 %vm1383_vm0, %v1322_v30  ;;  %v3042_v30 = vpack.c.bf16 %v1663_v29, %v1662_v27 }
 0x501   : > { %2710 = vmatprep.mubr.msk.f32.mxu1 %vm1383_vm0, %v1489_v57 }
 0x502   : > { %3043 = vmatprep.subr.bf16.mxu0 %v3042_v30 }
 0x503   : > { %3045 = vmatpush3.bf16.msra.mxu0 %v3042_v30 }
 0x5cf   : > { %v2682_v33 = vpop.f32.mrb[8].mxu1 }
 0x5d0   : > { %v1468_v35 = vadd.f32 %v2682_v33, %v1371_v31  ;;  %v1462_v36 = vpop.f32.mrb[9].mxu1  ;;  %v1664_v31 = vld [vmem:[%s4080_s13 + $0x50] sm:$0xff] }
 0x5d1   : > { %v1463_v38 = vadd.f32 %v1462_v36, %v1366_v32  ;;  %v1665_v32 = vld [vmem:[%s4080_s13 + $0x58] sm:$0xff]  ;;  %v1667_v36 = vld [vmem:[%s4080_s13 + $0x68] sm:$0xff] }
 0x5d2   : > { %v1482_v61 = vadd.f32 %v1468_v35, %v3707_v44  ;;  %v3046_v33 = vpack.c.bf16 %v1665_v32, %v1664_v31  ;;  %v1666_v35 = vld [vmem:[%s4080_s13 + $0x60] sm:$0xff] }
 0x5d3   : > { %v1481_v39 = vadd.f32 %v1463_v38, %v3709_v46  ;;  %v2685_v40 = vpop.f32.mrb[10].mxu1  ;;  %v1493_v46 = vld [vmem:[%s4077_s10] sm:$0xff]  ;;  %v3050_v38 = vpack.c.bf16 %v1667_v36, %v1666_v35 }
 0x5d4   : > { %v1486_v42 = vmax.f32 %v1482_v61, 0.0  ;;  %v1478_v43 = vadd.f32 %v2685_v40, %v1381_v34  ;;  %v1472_v45 = vpop.f32.mrb[11].mxu1  ;;  %3047 = vmatprep.subr.bf16.mxu0 %v3046_v33  ;;  %v1668_v61 = vld [vmem:[%s4080_s13 + $0x70] sm:$0xff]  ;;  %v1669_v34 = vld [vmem:[%s4080_s13 + $0x78] sm:$0xff] }
 0x5d5   : > { %v1485_v13 = vmax.f32 %v1481_v39, 0.0  ;;  %v1473_v47 = vadd.f32 %v1472_v45, %v1376_v41  ;;  %3049 = vmatpush3.bf16.msra.mxu0 %v3046_v33  ;;  %v3054_v39 = vpack.c.bf16 %v1669_v34, %v1668_v61  ;;  %v1781_v34 = vld [vmem:[%s4078_s11 + $0x10] sm:$0xff] }
 0x5d6   : > { %v1484_v48 = vadd.f32 %v1478_v43, %v3713_v52  ;;  %v1494_v52 = vld [vmem:[%s4077_s10 + $0x8] sm:$0xff]  ;;  %3051 = vmatprep.subr.bf16.mxu0 %v3050_v38 }
 0x5d7   : > { %v1483_v49 = vadd.f32 %v1473_v47, %v3715_v54  ;;  %v3296_v50 = vpack.i.bf16 %v1486_v42, %v1485_v13  ;;  %v3006_v51 = vpack.c.bf16 %v1486_v42, %v1485_v13  ;;  %v1495_v54 = vld [vmem:[%s4077_s10 + $0x10] sm:$0xff] }
 0x5d8   : > { %v1488_v53 = vmax.f32 %v1484_v48, 0.0 }
 0x5d9   : > { %v1487_v55 = vmax.f32 %v1483_v49, 0.0  ;;  %3297 = vrot.lane.b32.xlu1 %v3296_v50, %s4100_s23  ;;  %3053 = vmatpush3.bf16.msra.mxu0 %v3050_v38 }
 0x5da   : > { %3055 = vmatprep.subr.bf16.mxu0 %v3054_v39 }
 0x5db   : > { %v3301_v44 = vpack.i.bf16 %v1488_v53, %v1487_v55  ;;  %v3010_v56 = vpack.c.bf16 %v1488_v53, %v1487_v55 }
 0x5dd   : > { %3302 = vrot.lane.b32.xlu0 %v3301_v44, %s4100_s23  ;;  %3307 = vrot.lane.b32.xlu1 %v3296_v50, %s4090_s18 }
 0x5de   : > { %3057 = vmatpush3.bf16.msra.mxu0 %v3054_v39  ;;  %v1782_v39 = vld [vmem:[%s4078_s11 + $0x18] sm:$0xff] }
 0x5e1   : > { %3312 = vrot.lane.b32.xlu0 %v3301_v44, %s4090_s18  ;;  %1535 = vperm.xlu1 %3155, %v1493_v46   ;;  %s3391_s18 = smov 104  }
 0x5e5   : > { %1540 = vperm.xlu0 %3154, %v1494_v52   ;;  %1545 = vperm.xlu1 %3155, %v1495_v54  }
 0x5e9   : > { %1550 = vperm.xlu0 %3154, %v1496_v58  }
 0x64b   : > { %v3298_v59 = vpop.permute.xlu1 %3297 }
 0x64c   : > { %v3300_v60 = vunpack.i.h.bf16 %v3298_v59  ;;  %v3299_v62 = vunpack.i.l.bf16 %v3298_v59 }
 0x64e   : > { %v2994_v63 = vpack.c.bf16 %v3300_v60, %v3299_v62 }
 0x64f   : > { %v3303_v0 = vpop.permute.xlu0 %3302  ;;  %v3308_v4 = vpop.permute.xlu1 %3307 }
 0x650   : > { %v3305_v1 = vunpack.i.h.bf16 %v3303_v0  ;;  %v3304_v2 = vunpack.i.l.bf16 %v3303_v0  ;;  %2996 = vmatprep.subr.msk.bf16.mxu1 %vm3631_vm13, %v2994_v63  ;;  %v3310_v5 = vunpack.i.h.bf16 %v3308_v4  ;;  %v3309_v6 = vunpack.i.l.bf16 %v3308_v4 }
 0x651   : > { %2999 = vmatpush3.bf16.msk.msra.mxu1 %vm3631_vm13, %v2994_v63 }
 0x652   : > { %v3000_v3 = vpack.c.bf16 %v3305_v1, %v3304_v2  ;;  %v3014_v8 = vpack.c.bf16 %v3310_v5, %v3309_v6 }
 0x653   : > { %v3313_v7 = vpop.permute.xlu0 %3312 }
 0x654   : > { %3002 = vmatprep.subr.msk.bf16.mxu1 %vm3631_vm13, %v3000_v3  ;;  %v3315_v9 = vunpack.i.h.bf16 %v3313_v7  ;;  %v3314_v10 = vunpack.i.l.bf16 %v3313_v7 }
 0x655   : > { %3005 = vmatpush3.bf16.msk.msra.mxu1 %vm3631_vm13, %v3000_v3 }
 0x656   : > { %3007 = vmatprep.subr.bf16.mxu1 %v3006_v51  ;;  %v3020_v14 = vpack.c.bf16 %v3315_v9, %v3314_v10 }
 0x659   : > { %3009 = vmatpush3.bf16.msra.mxu1 %v3006_v51 }
 0x65a   : > { %3011 = vmatprep.subr.bf16.mxu1 %v3010_v56 }
 0x65d   : > { %3013 = vmatpush3.bf16.msra.mxu1 %v3010_v56 }
 0x65e   : > { %3016 = vmatprep.subr.msk.bf16.mxu1 %vm3622_vm12, %v3014_v8 }
 0x660   : > { %v1536_v41 = vpop.permute.xlu1 %1535 }
 0x661   : > { %3019 = vmatpush3.bf16.msk.msra.mxu1 %vm3622_vm12, %v3014_v8 }
 0x662   : > { %3022 = vmatprep.subr.msk.bf16.mxu1 %vm3622_vm12, %v3020_v14 }
 0x664   : > { %v1541_v40 = vpop.permute.xlu0 %1540  ;;  %v1546_v51 = vpop.permute.xlu1 %1545 }
 0x665   : > { %3025 = vmatpush3.bf16.msk.msra.mxu1 %vm3622_vm12, %v3020_v14 }
 0x668   : > { %2711 = vmatmul.mubr.msk.f32.vlgmr.msra.gmra.mrb[12].mxu1 %vm1383_vm0, %v1490_v15  ;;  %v1551_v48 = vpop.permute.xlu0 %1550 }
 0x669   : > { %2713 = vmatprep.mubr.msk.f32.mxu1 %vm1383_vm0, %v1491_v16 }
 0x66c   : > { %2714 = vmatmul.mubr.msk.f32.gmra.mrb[14].mxu1 %vm1383_vm0, %v1492_v11 }
 0x66d   : > { %2778 = vmatprep.mubr.msk.f32.mxu1 %vm1383_vm0, %v1779_v20 }
 0x73b   : > { %v2712_v42 = vpop.f32.mrb[12].mxu1 }
 0x73c   : > { %v1637_v43 = vadd.f32 %v2712_v42, %v1541_v40  ;;  %v1631_v45 = vpop.f32.mrb[13].mxu1  ;;  %v1945_v40 = vld [vmem:[%s4081_s14] sm:$0xff]  ;;  %v1947_v42 = vld [vmem:[%s4081_s14 + $0x10] sm:$0xff] }
 0x73d   : > { %v1632_v13 = vadd.f32 %v1631_v45, %v1536_v41  ;;  %v1946_v41 = vld [vmem:[%s4081_s14 + $0x8] sm:$0xff]  ;;  %v1948_v45 = vld [vmem:[%s4081_s14 + $0x18] sm:$0xff] }
 0x73e   : > { %v1651_v47 = vmax.f32 %v1637_v43, 0.0  ;;  %v3090_v43 = vpack.c.bf16 %v1946_v41, %v1945_v40 }
 0x73f   : > { %v1650_v49 = vmax.f32 %v1632_v13, 0.0  ;;  %v2715_v50 = vpop.f32.mrb[14].mxu1  ;;  %v3094_v13 = vpack.c.bf16 %v1948_v45, %v1947_v42 }
 0x740   : > { %v1647_v53 = vadd.f32 %v2715_v50, %v1551_v48  ;;  %v1641_v55 = vpop.f32.mrb[15].mxu1  ;;  %v1950_v48 = vld [vmem:[%s4081_s14 + $0x28] sm:$0xff]  ;;  %3091 = vmatprep.subr.bf16.mxu0 %v3090_v43  ;;  %v1951_v50 = vld [vmem:[%s4081_s14 + $0x30] sm:$0xff] }
 0x741   : > { %v3316_v44 = vpack.i.bf16 %v1651_v47, %v1650_v49  ;;  %v1642_v56 = vadd.f32 %v1641_v55, %v1546_v51  ;;  %v1952_v51 = vld [vmem:[%s4081_s14 + $0x38] sm:$0xff] }
 0x742   : > { %v1653_v46 = vmax.f32 %v1647_v53, 0.0  ;;  %v3102_v53 = vpack.c.bf16 %v1952_v51, %v1951_v50 }
 0x743   : > { %v1652_v52 = vmax.f32 %v1642_v56, 0.0  ;;  %3317 = vrot.lane.b32.xlu1 %v3316_v44, %s4110_s30 }
 0x745   : > { %v3321_v54 = vpack.i.bf16 %v1653_v46, %v1652_v52 }
 0x747   : > { %3322 = vrot.lane.b32.xlu0 %v3321_v54, %s4110_s30 }
 0x7b5   : > { %v3318_v57 = vpop.permute.xlu1 %3317 }
 0x7b6   : > { %v3320_v58 = vunpack.i.h.bf16 %v3318_v57  ;;  %v3319_v59 = vunpack.i.l.bf16 %v3318_v57 }
 0x7b8   : > { %v1687_v60 = vsel %vm577_vm5, %v3320_v58, 0.0  ;;  %v1686_v62 = vsel %vm577_vm5, %v3319_v59, 0.0 }
 0x7b9   : > { %v1691_v63 = vmax.f32 %v1651_v47, %v1687_v60  ;;  %v3323_v0 = vpop.permute.xlu0 %3322  ;;  %v1690_v1 = vmax.f32 %v1650_v49, %v1686_v62  ;;  %v1949_v47 = vld [vmem:[%s4081_s14 + $0x20] sm:$0xff] }
 0x7ba   : > { %v3325_v2 = vunpack.i.h.bf16 %v3323_v0  ;;  %v3324_v3 = vunpack.i.l.bf16 %v3323_v0  ;;  %v3098_v49 = vpack.c.bf16 %v1950_v48, %v1949_v47 }
 0x7bb   : > { %2748 = vmatprep.mubr.f32.mxu0 %v1690_v1 }
 0x7bc   : > { %v1689_v4 = vsel %vm577_vm5, %v3325_v2, 0.0  ;;  %v1688_v5 = vsel %vm577_vm5, %v3324_v3, 0.0  ;;  %2749 = vmatmul.mubr.f32.vlgmr.msra.gmra.mrb[20].mxu0 %v1691_v63 }
 0x7bd   : > { %v1692_v6 = vmax.f32 %v1652_v52, %v1688_v5  ;;  %v1693_v7 = vmax.f32 %v1653_v46, %v1689_v4  ;;  %3093 = vmatpush3.bf16.msra.mxu0 %v3090_v43 }
 0x7be   : > { %3095 = vmatprep.subr.bf16.mxu0 %v3094_v13 }
 0x7bf   : > { %2751 = vmatprep.mubr.f32.mxu0 %v1692_v6 }
 0x7c0   : > { %2752 = vmatmul.mubr.f32.gmra.mrb[22].mxu0 %v1693_v7 }
 0x7c1   : > { %3097 = vmatpush3.bf16.msra.mxu0 %v3094_v13 }
 0x7c2   : > { %3099 = vmatprep.subr.bf16.mxu0 %v3098_v49 }
 0x7c5   : > { %3101 = vmatpush3.bf16.msra.mxu0 %v3098_v49 }
 0x7c6   : > { %3103 = vmatprep.subr.bf16.mxu0 %v3102_v53 }
 0x7c9   : > { %3105 = vmatpush3.bf16.msra.mxu0 %v3102_v53 }
 0x88f   : > { %v2750_v8 = vpop.f32.mrb[20].mxu0 }
 0x890   : > { %v1760_v9 = vpop.f32.mrb[21].mxu0 }
 0x891   : > { %v3336_v10 = vpack.i.bf16 %v2750_v8, %v1760_v9  ;;  %v3070_v14 = vpack.c.bf16 %v2750_v8, %v1760_v9 }
 0x893   : > { %3327 = vrot.lane.b32.xlu1 %v3336_v10, %s4100_s23  ;;  %v2753_v15 = vpop.f32.mrb[22].mxu0 }
 0x894   : > { %v1770_v16 = vpop.f32.mrb[23].mxu0 }
 0x895   : > { %v3341_v11 = vpack.i.bf16 %v2753_v15, %v1770_v16  ;;  %v3074_v28 = vpack.c.bf16 %v2753_v15, %v1770_v16 }
 0x897   : > { %3337 = vrot.lane.b32.xlu1 %v3336_v10, %s4110_s30  ;;  %3332 = vrot.lane.b32.xlu0 %v3341_v11, %s4100_s23 }
 0x89b   : > { %1826 = vperm.xlu1 %3155, %v1783_v17   ;;  %3342 = vrot.lane.b32.xlu0 %v3341_v11, %s4110_s30 }
 0x89f   : > { %1836 = vperm.xlu1 %3155, %v1785_v18   ;;  %1831 = vperm.xlu0 %3154, %v1784_v19  }
 0x8a3   : > { %1841 = vperm.xlu0 %3154, %v1786_v21  }
 0x905   : > { %v3328_v12 = vpop.permute.xlu1 %3327 }
 0x906   : > { %v3330_v22 = vunpack.i.h.bf16 %v3328_v12  ;;  %v3329_v23 = vunpack.i.l.bf16 %v3328_v12 }
 0x908   : > { %v3058_v24 = vpack.c.bf16 %v3330_v22, %v3329_v23 }
 0x909   : > { %v3333_v25 = vpop.permute.xlu0 %3332  ;;  %v3338_v30 = vpop.permute.xlu1 %3337 }
 0x90a   : > { %v3335_v26 = vunpack.i.h.bf16 %v3333_v25  ;;  %v3334_v27 = vunpack.i.l.bf16 %v3333_v25  ;;  %3060 = vmatprep.subr.msk.bf16.mxu1 %vm3631_vm13, %v3058_v24  ;;  %v3340_v31 = vunpack.i.h.bf16 %v3338_v30  ;;  %v3339_v32 = vunpack.i.l.bf16 %v3338_v30  ;;  %v2074_v25 = vld [vmem:[%s4082_s15] sm:$0xff] }
 0x90b   : > { %3063 = vmatpush3.bf16.msk.msra.mxu1 %vm3631_vm13, %v3058_v24  ;;  %v2078_v24 = vld [vmem:[%s4083_s16] sm:$0xff] }
 0x90c   : > { %v3064_v29 = vpack.c.bf16 %v3335_v26, %v3334_v27  ;;  %v3078_v35 = vpack.c.bf16 %v3340_v31, %v3339_v32  ;;  %v2080_v26 = vld [vmem:[%s4083_s16 + $0x10] sm:$0xff]  ;;  %v2079_v27 = vld [vmem:[%s4083_s16 + $0x8] sm:$0xff] }
 0x90d   : > { %v3343_v33 = vpop.permute.xlu0 %3342 }
 0x90e   : > { %3066 = vmatprep.subr.msk.bf16.mxu1 %vm3631_vm13, %v3064_v29  ;;  %v3345_v36 = vunpack.i.h.bf16 %v3343_v33  ;;  %v3344_v38 = vunpack.i.l.bf16 %v3343_v33 }
 0x90f   : > { %3069 = vmatpush3.bf16.msk.msra.mxu1 %vm3631_vm13, %v3064_v29  ;;  %v2081_v29 = vld [vmem:[%s4083_s16 + $0x18] sm:$0xff] }
 0x910   : > { %3071 = vmatprep.subr.bf16.mxu1 %v3070_v14  ;;  %v3084_v61 = vpack.c.bf16 %v3345_v36, %v3344_v38 }
 0x913   : > { %3073 = vmatpush3.bf16.msra.mxu1 %v3070_v14 }
 0x914   : > { %3075 = vmatprep.subr.bf16.mxu1 %v3074_v28 }
 0x917   : > { %3077 = vmatpush3.bf16.msra.mxu1 %v3074_v28 }
 0x918   : > { %3080 = vmatprep.subr.msk.bf16.mxu1 %vm3079_vm3, %v3078_v35 }
 0x91a   : > { %v1827_v44 = vpop.permute.xlu1 %1826 }
 0x91b   : > { %3083 = vmatpush3.bf16.msk.msra.mxu1 %vm3079_vm3, %v3078_v35 }
 0x91c   : > { %3086 = vmatprep.subr.msk.bf16.mxu1 %vm3079_vm3, %v3084_v61 }
 0x91e   : > { %v1832_v55 = vpop.permute.xlu0 %1831  ;;  %v1837_v62 = vpop.permute.xlu1 %1836 }
 0x91f   : > { %3089 = vmatpush3.bf16.msk.msra.mxu1 %vm3079_vm3, %v3084_v61 }
 0x922   : > { %2779 = vmatmul.mubr.msk.f32.vlgmr.msra.gmra.mrb[16].mxu1 %vm1383_vm0, %v1780_v37  ;;  %v1842_v58 = vpop.permute.xlu0 %1841 }
 0x923   : > { %2781 = vmatprep.mubr.msk.f32.mxu1 %vm1383_vm0, %v1781_v34 }
 0x926   : > { %2782 = vmatmul.mubr.msk.f32.gmra.mrb[18].mxu1 %vm1383_vm0, %v1782_v39 }
 0x927   : > { %2838 = vmatprep.mubr.f32.mxu1 %v2074_v25 }
 0x9f5   : > { %v2780_v56 = vpop.f32.mrb[16].mxu1 }
 0x9f6   : > { %v1928_v46 = vadd.f32 %v2780_v56, %v1832_v55  ;;  %v1922_v52 = vpop.f32.mrb[17].mxu1  ;;  %v2076_v56 = vld [vmem:[%s4082_s15 + $0x10] sm:$0xff] }
 0x9f7   : > { %v1923_v54 = vadd.f32 %v1922_v52, %v1827_v44  ;;  %v2075_v44 = vld [vmem:[%s4082_s15 + $0x8] sm:$0xff] }
 0x9f8   : > { %v1942_v57 = vmax.f32 %v1928_v46, 0.0  ;;  %v2077_v46 = vld [vmem:[%s4082_s15 + $0x18] sm:$0xff] }
 0x9f9   : > { %v1941_v59 = vmax.f32 %v1923_v54, 0.0  ;;  %v2783_v60 = vpop.f32.mrb[18].mxu1 }
 0x9fa   : > { %v1938_v63 = vadd.f32 %v2783_v60, %v1842_v58  ;;  %1959 = vrot.lane.b32.xlu0 %v1942_v57, %s4110_s30  ;;  %v1932_v0 = vpop.f32.mrb[19].mxu1 }
 0x9fb   : > { %v1933_v1 = vadd.f32 %v1932_v0, %v1837_v62  ;;  %1957 = vrot.lane.b32.xlu1 %v1941_v59, %s4110_s30 }
 0x9fc   : > { %v1944_v2 = vmax.f32 %v1938_v63, 0.0 }
 0x9fd   : > { %v1943_v3 = vmax.f32 %v1933_v1, 0.0 }
 0x9fe   : > { %1963 = vrot.lane.b32.xlu0 %v1944_v2, %s4110_s30 }
 0x9ff   : > { %1961 = vrot.lane.b32.xlu1 %v1943_v3, %s4110_s30 }
 0xa6c   : > { %v1960_v4 = vpop.permute.xlu0 %1959 }
 0xa6d   : > { %v1970_v5 = vsel %vm1819_vm1, %v1960_v4, 0.0  ;;  %v1958_v6 = vpop.permute.xlu1 %1957 }
 0xa6e   : > { %v1969_v7 = vsel %vm1819_vm1, %v1958_v6, 0.0  ;;  %v1974_v9 = vmax.f32 %v1942_v57, %v1970_v5 }
 0xa6f   : > { %v1973_v8 = vmax.f32 %v1941_v59, %v1969_v7 }
 0xa70   : > { %v1964_v10 = vpop.permute.xlu0 %1963 }
 0xa71   : > { %v1972_v14 = vsel %vm1819_vm1, %v1964_v10, 0.0  ;;  %2800 = vmatprep.mubr.msk.f32.mxu0 %vm934_vm10, %v1973_v8  ;;  %v1962_v15 = vpop.permute.xlu1 %1961 }
 0xa72   : > { %v1971_v16 = vsel %vm1819_vm1, %v1962_v15, 0.0  ;;  %2801 = vmatmul.mubr.msk.f32.vlgmr.msra.gmra.mrb[24].mxu0 %vm934_vm10, %v1974_v9  ;;  %v1976_v28 = vmax.f32 %v1944_v2, %v1972_v14 }
 0xa73   : > { %v1975_v11 = vmax.f32 %v1943_v3, %v1971_v16 }
 0xa75   : > { %2803 = vmatprep.mubr.msk.f32.mxu0 %vm934_vm10, %v1975_v11 }
 0xa76   : > { %2804 = vmatmul.mubr.msk.f32.gmra.mrb[26].mxu0 %vm934_vm10, %v1976_v28 }
 0xb45   : > { %v2802_v17 = vpop.f32.mrb[24].mxu0 }
 0xb46   : > { %v2055_v18 = vpop.f32.mrb[25].mxu0 }
 0xb47   : > { %v3346_v19 = vpack.i.bf16 %v2802_v17, %v2055_v18  ;;  %v3106_v20 = vpack.c.bf16 %v2802_v17, %v2055_v18 }
 0xb49   : > { %3347 = vrot.lane.b32.xlu1 %v3346_v19, %s4110_s30  ;;  %v2805_v21 = vpop.f32.mrb[26].mxu0  ;;  %3107 = vmatprep.subr.bf16.mxu1 %v3106_v20 }
 0xb4a   : > { %v2065_v12 = vpop.f32.mrb[27].mxu0  ;;  %3109 = vmatpush3.bf16.msra.mxu1 %v3106_v20 }
 0xb4b   : > { %v3371_v22 = vpack.i.bf16 %v2805_v21, %v2065_v12  ;;  %v3110_v23 = vpack.c.bf16 %v2805_v21, %v2065_v12 }
 0xb4d   : > { %3357 = vrot.lane.b32.xlu1 %v3346_v19, %s4101_s28  ;;  %3352 = vrot.lane.b32.xlu0 %v3371_v22, %s4110_s30 }
 0xb4e   : > { %3111 = vmatprep.subr.bf16.mxu1 %v3110_v23 }
 0xb4f   : > { %3113 = vmatpush3.bf16.msra.mxu1 %v3110_v23 }
 0xb51   : > { %3367 = vrot.lane.b32.xlu1 %v3346_v19, %s3391_s18  ;;  %3362 = vrot.lane.b32.xlu0 %v3371_v22, %s4101_s28 }
 0xb55   : > { %2124 = vperm.xlu1 %3155, %v2078_v24   ;;  %3372 = vrot.lane.b32.xlu0 %v3371_v22, %s3391_s18 }
 0xb59   : > { %2134 = vperm.xlu1 %3155, %v2080_v26   ;;  %2129 = vperm.xlu0 %3154, %v2079_v27  }
 0xb5d   : > { %2139 = vperm.xlu0 %3154, %v2081_v29  }
 0xbbb   : > { %v3348_v30 = vpop.permute.xlu1 %3347 }
 0xbbc   : > { %v3350_v31 = vunpack.i.h.bf16 %v3348_v30  ;;  %v3349_v32 = vunpack.i.l.bf16 %v3348_v30 }
 0xbbe   : > { %v3114_v33 = vpack.c.bf16 %v3350_v31, %v3349_v32 }
 0xbbf   : > { %v3353_v35 = vpop.permute.xlu0 %3352  ;;  %v3358_v36 = vpop.permute.xlu1 %3357 }
 0xbc0   : > { %v3355_v38 = vunpack.i.h.bf16 %v3353_v35  ;;  %v3354_v61 = vunpack.i.l.bf16 %v3353_v35  ;;  %v3360_v37 = vunpack.i.h.bf16 %v3358_v36  ;;  %v3359_v34 = vunpack.i.l.bf16 %v3358_v36  ;;  %3115 = vmatprep.subr.bf16.mxu1 %v3114_v33 }
 0xbc1   : > { %3117 = vmatpush3.bf16.msra.mxu1 %v3114_v33 }
 0xbc2   : > { %v3118_v39 = vpack.c.bf16 %v3355_v38, %v3354_v61  ;;  %v3122_v41 = vpack.c.bf16 %v3360_v37, %v3359_v34 }
 0xbc3   : > { %v3363_v40 = vpop.permute.xlu0 %3362  ;;  %v3368_v45 = vpop.permute.xlu1 %3367 }
 0xbc4   : > { %v3365_v42 = vunpack.i.h.bf16 %v3363_v40  ;;  %v3364_v43 = vunpack.i.l.bf16 %v3363_v40  ;;  %3119 = vmatprep.subr.bf16.mxu1 %v3118_v39  ;;  %v3370_v47 = vunpack.i.h.bf16 %v3368_v45  ;;  %v3369_v48 = vunpack.i.l.bf16 %v3368_v45 }
 0xbc5   : > { %3121 = vmatpush3.bf16.msra.mxu1 %v3118_v39 }
 0xbc6   : > { %3123 = vmatprep.subr.bf16.mxu1 %v3122_v41  ;;  %v3126_v13 = vpack.c.bf16 %v3365_v42, %v3364_v43  ;;  %v3130_v50 = vpack.c.bf16 %v3370_v47, %v3369_v48 }
 0xbc7   : > { %v3373_v49 = vpop.permute.xlu0 %3372 }
 0xbc8   : > { %v3375_v51 = vunpack.i.h.bf16 %v3373_v49  ;;  %v3374_v53 = vunpack.i.l.bf16 %v3373_v49 }
 0xbc9   : > { %3125 = vmatpush3.bf16.msra.mxu1 %v3122_v41 }
 0xbca   : > { %3127 = vmatprep.subr.bf16.mxu1 %v3126_v13  ;;  %v3134_v55 = vpack.c.bf16 %v3375_v51, %v3374_v53 }
 0xbcd   : > { %3129 = vmatpush3.bf16.msra.mxu1 %v3126_v13 }
 0xbce   : > { %3131 = vmatprep.subr.bf16.mxu1 %v3130_v50 }
 0xbd1   : > { %3133 = vmatpush3.bf16.msra.mxu1 %v3130_v50 }
 0xbd2   : > { %3135 = vmatprep.subr.bf16.mxu1 %v3134_v55 }
 0xbd4   : > { %v2125_v54 = vpop.permute.xlu1 %2124 }
 0xbd5   : > { %3137 = vmatpush3.bf16.msra.mxu1 %v3134_v55 }
 0xbd8   : > { %2839 = vmatmul.mubr.f32.vlgmr.msra.gmra.mrb[20].mxu1 %v2075_v44  ;;  %v2130_v52 = vpop.permute.xlu0 %2129  ;;  %v2135_v0 = vpop.permute.xlu1 %2134 }
 0xbd9   : > { %2841 = vmatprep.mubr.f32.mxu1 %v2076_v56 }
 0xbdc   : > { %2842 = vmatmul.mubr.f32.gmra.mrb[22].mxu1 %v2077_v46  ;;  %v2140_v62 = vpop.permute.xlu0 %2139 }
 0xcab   : > { %v2840_v57 = vpop.f32.mrb[20].mxu1 }
 0xcac   : > { %v2214_v58 = vadd.f32 %v2840_v57, %v2130_v52  ;;  %v2208_v59 = vpop.f32.mrb[21].mxu1 }
 0xcad   : > { %v2209_v60 = vadd.f32 %v2208_v59, %v2125_v54 }
 0xcae   : > { %2228 = vst.msk [vmem:[%s545_s0 + $0x8] sm:$0xff] %vm572_vm2, %v2214_v58 }
 0xcaf   : > { %2227 = vst.msk [vmem:[%s545_s0] sm:$0xff] %vm572_vm2, %v2209_v60  ;;  %v2843_v63 = vpop.f32.mrb[22].mxu1 }
 0xcb0   : > { %v2224_v1 = vadd.f32 %v2843_v63, %v2140_v62  ;;  %v2218_v2 = vpop.f32.mrb[23].mxu1 }
 0xcb1   : > { %v2219_v3 = vadd.f32 %v2218_v2, %v2135_v0 }
 0xcb2   : > { %2230 = vst.msk [vmem:[%s545_s0 + $0x18] sm:$0xff] %vm572_vm2, %v2224_v1 }
 0xcb3   : > { %2229 = vst.msk [vmem:[%s545_s0 + $0x10] sm:$0xff] %vm572_vm2, %v2219_v3 }
 0xcb4 PF: > { %s27_s24 = sadd.s32 1, %s3382_s24  }
 0xcb5   : > { %p24_p4 = scmp.ge.s32.totalorder %s27_s24, 4  }
 0xcb7   :  { %26 = sbr.rel (!%p24_p4) target bundleno = 3 (0x3), region = 118 }

// kernel: tpu_custom_call.1
= control target key start
LH: loop header
LB: loop body
LE: loop exit
PB: predicated region body
PF: predicated region fallthrough
CT: control target
= control target key end

     0   :  { %s3482_s24 = smov 0   ;;  %s4067_s0 = inlined_call_operand.vmem [shape: f32[2,8,128], index: 0, kind: input, shape index: {}]   ;;  %s4068_s1 = inlined_call_operand.vmem [shape: f32[64,40], index: 1, kind: input, shape index: {}]   ;;  %s4069_s2 = inlined_call_operand.vmem [shape: f32[64,1], index: 2, kind: input, shape index: {}]   ;;  %s4070_s3 = inlined_call_operand.vmem [shape: f32[32,320], index: 3, kind: input, shape index: {}]   ;;  %s4071_s4 = inlined_call_operand.vmem [shape: f32[32,1], index: 4, kind: input, shape index: {}]   ;;  %s4072_s5 = inlined_call_operand.vmem [shape: f32[32,160], index: 5, kind: input, shape index: {}]   ;;  %s4073_s6 = inlined_call_operand.vmem [shape: f32[32,1], index: 6, kind: input, shape index: {}]   ;;  %s4074_s7 = inlined_call_operand.vmem [shape: f32[32,96], index: 7, kind: input, shape index: {}]   ;;  %s4075_s8 = inlined_call_operand.vmem [shape: f32[32,1], index: 8, kind: input, shape index: {}]   ;;  %s4076_s9 = inlined_call_operand.vmem [shape: f32[32,96], index: 9, kind: input, shape index: {}]   ;;  %s4077_s10 = inlined_call_operand.vmem [shape: f32[32,1], index: 10, kind: input, shape index: {}]   ;;  %s4078_s11 = inlined_call_operand.vmem [shape: f32[32,96], index: 11, kind: input, shape index: {}]   ;;  %s4079_s12 = inlined_call_operand.vmem [shape: f32[32,1], index: 12, kind: input, shape index: {}]   ;;  %s4080_s13 = inlined_call_operand.vmem [shape: f32[128,64], index: 13, kind: input, shape index: {}]   ;;  %s4081_s14 = inlined_call_operand.vmem [shape: f32[64,32], index: 14, kind: input, shape index: {}]   ;;  %s4082_s15 = inlined_call_operand.vmem [shape: f32[32,128], index: 15, kind: input, shape index: {}]   ;;  %s4083_s16 = inlined_call_operand.vmem [shape: f32[32,1], index: 16, kind: input, shape index: {}]   ;;  %s4084_s17 = inlined_call_operand.vmem [shape: f32[2,32,8], index: 17, kind: output, shape index: {}]  }
   0x1   :  { %4092 = sst [smem:[#allocation2_spill]] %s4067_s0 }
   0x2   :  { %4093 = sst [smem:[#allocation3_spill]] %s4068_s1 }
   0x3 LB: > { %s2286_s25 = sadd.s32 4294967295, %s3382_s24   ;;  %p2290_p0 = scmp.ge.s32.totalorder %s3382_s24, 1  ;;  %s3382_s24 = sphi %s3482_s24, %s27_s24  }
   0x4   : > { %p486_p1 = scmp.lt.s32.totalorder %s3382_s24, 3 }
   0x6   : > { %p487_p2 = pnand %p2290_p0, %p486_p1 }
   0x7   : > { %p537_p3 = scmp.lt.s32.totalorder (!%p487_p2), %s2286_s25, 1  ;;  %s4094_s29 = sld [smem:[#allocation2_spill]] (!%p487_p2)  ;;  %vm624_vm0 = vcmask (!%p487_p2), 326656   ;;  %v556_v2 = vld [vmem:[%s4069_s2 + $0x8] sm:$0xff] (!%p487_p2)  ;;  %v555_v3 = vld [vmem:[%s4069_s2] sm:$0xff] (!%p487_p2)  ;;  %v3388_v4 = vmov (!%p487_p2), 0  }
   0x8   : > { %490 = sbr.rel (%p487_p2) target bundleno = 3252 (0xcb4), region = 88  ;;  %s3384_s30 = smov (!%p487_p2), 16   ;;  %3155 = vset.pattern.permute.xlu1 (!%p487_p2), %v3388_v4  ;;  %3154 = vset.pattern.permute.xlu0 (!%p487_p2), %v3388_v4  ;;  %v557_v5 = vld [vmem:[%s4069_s2 + $0x10] sm:$0xff] (!%p487_p2)  ;;  %v558_v6 = vld [vmem:[%s4069_s2 + $0x18] sm:$0xff] (!%p487_p2)  ;;  %v559_v7 = vld [vmem:[%s4069_s2 + $0x20] sm:$0xff] (!%p487_p2)  ;;  %vm567_vm1 = vcmask (!%p487_p2), 130048  }
   0x9   : > { %s4090_s18 = smov (!%p487_p2), 120   ;;  %s4095_s20 = sld [smem:[#allocation3_spill]] (!%p487_p2)  ;;  %v560_v8 = vld [vmem:[%s4069_s2 + $0x28] sm:$0xff] (!%p487_p2)  ;;  %v561_v9 = vld [vmem:[%s4069_s2 + $0x30] sm:$0xff] (!%p487_p2)  ;;  %v562_v10 = vld [vmem:[%s4069_s2 + $0x38] sm:$0xff] (!%p487_p2)  ;;  %vm572_vm2 = vcmask (!%p487_p2), 64512  }
   0xa   : > { %s4088_s21 = smov (!%p487_p2), 8   ;;  %s4086_s22 = smov (!%p487_p2), 112   ;;  %vm3528_vm3 = vmneg (!%p487_p2), %vm567_vm1  ;;  %vm577_vm5 = vcmask (!%p487_p2), 982016   ;;  %vm3389_vm7 = vmmov (!%p487_p2), 1   ;;  %vm582_vm9 = vcmask (!%p487_p2), 916480   ;;  %v764_v4 = vld [vmem:[%s4070_s3 + $0x10] sm:$0xff] (!%p487_p2) }
   0xb   : > { %vm3533_vm4 = vmneg (!%p487_p2), %vm572_vm2  ;;  %s4100_s23 = smov (!%p487_p2), 8   ;;  %s4101_s28 = smov (!%p487_p2), 112   ;;  %vm934_vm10 = vcmask (!%p487_p2), 523264   ;;  %vm1217_vm15 = vcmask (!%p487_p2), 261120   ;;  %vm1819_vm1 = vcmask (!%p487_p2), 457728  }
   0xc   : > { %vm2845_vm6 = vmpackc.low (!%p487_p2), %vm3533_vm4, %vm3528_vm3 }
   0xd   : > { %vm2851_vm8 = vmpackc.low (!%p487_p2), %vm577_vm5, %vm3389_vm7 }
   0xe   : > { %vm3610_vm11 = vmpackc.low (!%p487_p2), %vm3528_vm3, %vm3528_vm3 }
   0xf   : > { %s4112_s25 = smov (!%p537_p3, %s2286_s25), 1  ;;  %v547_v1 = vld [vmem:[%s4095_s20] sm:$0xff]  ;;  %v548_v19 = vld [vmem:[%s4095_s20 + $0x8] sm:$0xff]  ;;  %v549_v20 = vld [vmem:[%s4095_s20 + $0x10] sm:$0xff] }
  0x10   : > { %s2291_s26 = sshll.u32 %s4112_s25, 3  ;;  %2622 = vmatprep.mubr.msk.f32.mxu0 %vm624_vm0, %v547_v1  ;;  %v550_v21 = vld [vmem:[%s4095_s20 + $0x18] sm:$0xff]  ;;  %v551_v22 = vld [vmem:[%s4095_s20 + $0x20] sm:$0xff]  ;;  %v552_v23 = vld [vmem:[%s4095_s20 + $0x28] sm:$0xff] }
  0x11   : > { %s540_s0 = scalar_lea.vmem %s4094_s29, %s2291_s26  ;;  %v553_v24 = vld [vmem:[%s4095_s20 + $0x30] sm:$0xff]  ;;  %v554_v25 = vld [vmem:[%s4095_s20 + $0x38] sm:$0xff]  ;;  %vm3622_vm12 = vmpackc.low %vm577_vm5, %vm577_vm5  ;;  %s2442_s29 = sshll.u32 %s4112_s25, 5 }
  0x12   : > { %v546_v0 = vld [vmem:[%s540_s0] sm:$0xff]  ;;  %vm3631_vm13 = vmpackc.low %vm3533_vm4, %vm3533_vm4  ;;  %s545_s0 = scalar_lea.vmem %s4084_s17, %s2442_s29 }
  0x13   : > { %564 = vrot.lane.b32.xlu0 %v546_v0, %s3384_s30  ;;  %574 = vrot.lane.b32.xlu1 %v546_v0, %s4090_s18  ;;  %vm3649_vm14 = vmpackc.low %vm582_vm9, %vm582_vm9 }
  0x14   : > { %vm3079_vm3 = vmpackc.low %vm1819_vm1, %vm1819_vm1 }
  0x17   : > { %569 = vrot.lane.b32.xlu0 %v546_v0, %s4088_s21  ;;  %579 = vrot.lane.b32.xlu1 %v546_v0, %s4086_s22 }
  0x1b   : > { %591 = vperm.xlu1 %3155, %v556_v2   ;;  %586 = vperm.xlu0 %3154, %v555_v3   ;;  %v763_v2 = vld [vmem:[%s4070_s3 + $0x8] sm:$0xff]  ;;  %v774_v3 = vld [vmem:[%s4071_s4] sm:$0xff] }
  0x1c   : > { %1011 = vmatprep.mubr.f32.mxu1 %v763_v2 }
  0x1f   : > { %596 = vperm.xlu1 %3155, %v557_v5   ;;  %601 = vperm.xlu0 %3154, %v558_v6   ;;  %v776_v5 = vld [vmem:[%s4071_s4 + $0x10] sm:$0xff]  ;;  %v775_v6 = vld [vmem:[%s4071_s4 + $0x8] sm:$0xff] }
  0x23   : > { %606 = vperm.xlu1 %3155, %v559_v7   ;;  %611 = vperm.xlu0 %3154, %v560_v8   ;;  %v777_v7 = vld [vmem:[%s4071_s4 + $0x18] sm:$0xff] }
  0x27   : > { %616 = vperm.xlu1 %3155, %v561_v9   ;;  %621 = vperm.xlu0 %3154, %v562_v10  }
  0x85   : > { %v565_v11 = vpop.permute.xlu0 %564  ;;  %v575_v14 = vpop.permute.xlu1 %574 }
  0x86   : > { %v2850_v17 = vpack.c.bf16 %v575_v14, %v546_v0 }
  0x89   : > { %v570_v15 = vpop.permute.xlu0 %569  ;;  %v580_v18 = vpop.permute.xlu1 %579 }
  0x8a   : > { %v2844_v16 = vpack.c.bf16 %v570_v15, %v565_v11 }
  0x8c   : > { %2846 = vmatprep.subr.msk.bf16.mxu0 %vm2845_vm6, %v2844_v16 }
  0x8d   : > { %2849 = vmatpush3.bf16.msk.msra.mxu0 %vm2845_vm6, %v2844_v16 }
  0x8e   : > { %2852 = vmatprep.subr.msk.bf16.mxu0 %vm2851_vm8, %v2850_v17 }
  0x91   : > { %2855 = vmatpush3.bf16.msk.msra.mxu0 %vm2851_vm8, %v2850_v17 }
  0x92   : > { %2620 = vmatprep.subr.msk.mxu0 %vm582_vm9, %v580_v18 }
  0x95   : > { %2621 = vmatpush3.msk.msra.mxu0 %vm582_vm9, %v580_v18 }
  0x96   : > { %2623 = vmatmul.mubr.msk.f32.vlgmr.msra.gmra.mrb[0].mxu0 %vm624_vm0, %v548_v19 }
  0x97   : > { %2625 = vmatprep.mubr.msk.f32.mxu0 %vm624_vm0, %v549_v20 }
  0x9a   : > { %2626 = vmatmul.mubr.msk.f32.gmra.mrb[2].mxu0 %vm624_vm0, %v550_v21  ;;  %v587_v26 = vpop.permute.xlu0 %586  ;;  %v592_v27 = vpop.permute.xlu1 %591 }
  0x9b   : > { %2628 = vmatprep.mubr.msk.f32.mxu0 %vm624_vm0, %v551_v22 }
  0x9e   : > { %2629 = vmatmul.mubr.msk.f32.gmra.mrb[4].mxu0 %vm624_vm0, %v552_v23  ;;  %v602_v28 = vpop.permute.xlu0 %601  ;;  %v597_v30 = vpop.permute.xlu1 %596 }
  0x9f   : > { %2631 = vmatprep.mubr.msk.f32.mxu0 %vm624_vm0, %v553_v24 }
  0xa2   : > { %2632 = vmatmul.mubr.msk.f32.gmra.mrb[6].mxu0 %vm624_vm0, %v554_v25  ;;  %v612_v39 = vpop.permute.xlu0 %611  ;;  %v607_v43 = vpop.permute.xlu1 %606  ;;  %vm1383_vm0 = vcmask 785408  }
  0xa3   : > { %2650 = vmatprep.mubr.msk.f32.mxu0 %vm934_vm10, %v764_v4 }
  0xa6   : > { %v622_v53 = vpop.permute.xlu0 %621  ;;  %v617_v56 = vpop.permute.xlu1 %616 }
 0x169   : > { %v2624_v29 = vpop.f32.mrb[0].mxu0 }
 0x16a   : > { %v721_v31 = vadd.f32 %v2624_v29, %v592_v27  ;;  %v715_v32 = vpop.f32.mrb[1].mxu0 }
 0x16b   : > { %v716_v33 = vadd.f32 %v715_v32, %v587_v26 }
 0x16c   : > { %v755_v34 = vmax.f32 %v721_v31, 0.0 }
 0x16d   : > { %v754_v35 = vmax.f32 %v716_v33, 0.0  ;;  %v2627_v36 = vpop.f32.mrb[2].mxu0 }
 0x16e   : > { %v731_v37 = vadd.f32 %v2627_v36, %v602_v28  ;;  %v725_v38 = vpop.f32.mrb[3].mxu0  ;;  %v1654_v28 = vld [vmem:[%s4080_s13] sm:$0xff] }
 0x16f   : > { %v726_v40 = vadd.f32 %v725_v38, %v597_v30  ;;  %v3156_v41 = vpack.i.bf16 %v755_v34, %v754_v35  ;;  %v2856_v42 = vpack.c.bf16 %v755_v34, %v754_v35 }
 0x170   : > { %v757_v44 = vmax.f32 %v731_v37, 0.0  ;;  %v1780_v37 = vld [vmem:[%s4078_s11 + $0x8] sm:$0xff] }
 0x171   : > { %v756_v45 = vmax.f32 %v726_v40, 0.0  ;;  %v2630_v46 = vpop.f32.mrb[4].mxu0  ;;  %3157 = vrot.lane.b32.xlu1 %v3156_v41, %s3384_s30  ;;  %2857 = vmatprep.subr.bf16.mxu1 %v2856_v42 }
 0x172   : > { %v741_v47 = vadd.f32 %v2630_v46, %v612_v39  ;;  %v735_v48 = vpop.f32.mrb[5].mxu0 }
 0x173   : > { %v736_v49 = vadd.f32 %v735_v48, %v607_v43  ;;  %v3161_v50 = vpack.i.bf16 %v757_v44, %v756_v45  ;;  %v2861_v52 = vpack.c.bf16 %v757_v44, %v756_v45 }
 0x174   : > { %v759_v51 = vmax.f32 %v741_v47, 0.0 }
 0x175   : > { %v758_v54 = vmax.f32 %v736_v49, 0.0  ;;  %v2633_v55 = vpop.f32.mrb[6].mxu0  ;;  %3162 = vrot.lane.b32.xlu0 %v3161_v50, %s3384_s30 }
 0x176   : > { %v751_v57 = vadd.f32 %v2633_v55, %v622_v53  ;;  %v745_v58 = vpop.f32.mrb[7].mxu0 }
 0x177   : > { %v746_v59 = vadd.f32 %v745_v58, %v617_v56  ;;  %v3166_v60 = vpack.i.bf16 %v759_v51, %v758_v54  ;;  %v2866_v62 = vpack.c.bf16 %v759_v51, %v758_v54 }
 0x178   : > { %v761_v61 = vmax.f32 %v751_v57, 0.0 }
 0x179   : > { %v760_v63 = vmax.f32 %v746_v59, 0.0  ;;  %3167 = vrot.lane.b32.xlu1 %v3166_v60, %s3384_s30 }
 0x17b   : > { %v3176_v0 = vpack.i.bf16 %v761_v61, %v760_v63  ;;  %v2871_v1 = vpack.c.bf16 %v761_v61, %v760_v63  ;;  %v1122_v61 = vld [vmem:[%s4072_s5 + $0x28] sm:$0xff] }
 0x17d   : > { %3172 = vrot.lane.b32.xlu1 %v3156_v41, %s4090_s18  ;;  %3177 = vrot.lane.b32.xlu0 %v3176_v0, %s3384_s30 }
 0x181   : > { %3187 = vrot.lane.b32.xlu1 %v3161_v50, %s4090_s18  ;;  %3182 = vrot.lane.b32.xlu0 %v3156_v41, %s4100_s23 }
 0x185   : > { %3197 = vrot.lane.b32.xlu1 %v3166_v60, %s4090_s18  ;;  %3192 = vrot.lane.b32.xlu0 %v3161_v50, %s4100_s23 }
 0x189   : > { %3212 = vrot.lane.b32.xlu1 %v3176_v0, %s4090_s18  ;;  %3202 = vrot.lane.b32.xlu0 %v3166_v60, %s4100_s23 }
 0x18d   : > { %3217 = vrot.lane.b32.xlu1 %v3176_v0, %s4100_s23  ;;  %3207 = vrot.lane.b32.xlu0 %v3156_v41, %s4101_s28 }
 0x191   : > { %3227 = vrot.lane.b32.xlu1 %v3166_v60, %s4101_s28  ;;  %3222 = vrot.lane.b32.xlu0 %v3161_v50, %s4101_s28 }
 0x195   : > { %916 = vperm.xlu1 %3155, %v774_v3   ;;  %3232 = vrot.lane.b32.xlu0 %v3176_v0, %s4101_s28 }
 0x199   : > { %926 = vperm.xlu1 %3155, %v776_v5   ;;  %921 = vperm.xlu0 %3154, %v775_v6   ;;  %v762_v6 = vld [vmem:[%s4070_s3] sm:$0xff] }
 0x19d   : > { %931 = vperm.xlu0 %3154, %v777_v7   ;;  %v766_v7 = vld [vmem:[%s4070_s3 + $0x20] sm:$0xff] }
 0x1e3   : > { %v3158_v8 = vpop.permute.xlu1 %3157 }
 0x1e4   : > { %v3160_v9 = vunpack.i.h.bf16 %v3158_v8  ;;  %v3159_v10 = vunpack.i.l.bf16 %v3158_v8 }
 0x1e6   : > { %v2858_v14 = vpack.c.bf16 %v3160_v9, %v3159_v10 }
 0x1e7   : > { %v3163_v15 = vpop.permute.xlu0 %3162 }
 0x1e8   : > { %v3165_v16 = vunpack.i.h.bf16 %v3163_v15  ;;  %v3164_v17 = vunpack.i.l.bf16 %v3163_v15  ;;  %2860 = vmatpush3.bf16.msk.msra.mxu1 %vm3610_vm11, %v2858_v14 }
 0x1e9   : > { %2862 = vmatprep.subr.bf16.mxu1 %v2861_v52 }
 0x1ea   : > { %v2863_v18 = vpack.c.bf16 %v3165_v16, %v3164_v17  ;;  %v765_v16 = vld [vmem:[%s4070_s3 + $0x18] sm:$0xff] }
 0x1eb   : > { %v3168_v19 = vpop.permute.xlu1 %3167  ;;  %v769_v17 = vld [vmem:[%s4070_s3 + $0x38] sm:$0xff] }
 0x1ec   : > { %v3170_v20 = vunpack.i.h.bf16 %v3168_v19  ;;  %v3169_v21 = vunpack.i.l.bf16 %v3168_v19  ;;  %2865 = vmatpush3.bf16.msk.msra.mxu1 %vm3610_vm11, %v2863_v18  ;;  %v768_v19 = vld [vmem:[%s4070_s3 + $0x30] sm:$0xff] }
 0x1ed   : > { %2867 = vmatprep.subr.bf16.mxu1 %v2866_v62 }
 0x1ee   : > { %v2868_v12 = vpack.c.bf16 %v3170_v20, %v3169_v21  ;;  %v772_v20 = vld [vmem:[%s4070_s3 + $0x50] sm:$0xff]  ;;  %v771_v21 = vld [vmem:[%s4070_s3 + $0x48] sm:$0xff] }
 0x1ef   : > { %v3173_v22 = vpop.permute.xlu1 %3172  ;;  %v3178_v23 = vpop.permute.xlu0 %3177 }
 0x1f0   : > { %v3175_v24 = vunpack.i.h.bf16 %v3173_v22  ;;  %v3174_v25 = vunpack.i.l.bf16 %v3173_v22  ;;  %v3180_v26 = vunpack.i.h.bf16 %v3178_v23  ;;  %v3179_v27 = vunpack.i.l.bf16 %v3178_v23  ;;  %2870 = vmatpush3.bf16.msk.msra.mxu1 %vm3610_vm11, %v2868_v12  ;;  %v767_v12 = vld [vmem:[%s4070_s3 + $0x28] sm:$0xff]  ;;  %v770_v22 = vld [vmem:[%s4070_s3 + $0x40] sm:$0xff]  ;;  %v773_v23 = vld [vmem:[%s4070_s3 + $0x58] sm:$0xff] }
 0x1f1   : > { %2872 = vmatprep.subr.bf16.mxu1 %v2871_v1 }
 0x1f2   : > { %v2876_v29 = vpack.c.bf16 %v3175_v24, %v3174_v25  ;;  %v2873_v30 = vpack.c.bf16 %v3180_v26, %v3179_v27 }
 0x1f3   : > { %v3188_v31 = vpop.permute.xlu1 %3187  ;;  %v3183_v32 = vpop.permute.xlu0 %3182 }
 0x1f4   : > { %v3190_v33 = vunpack.i.h.bf16 %v3188_v31  ;;  %v3189_v34 = vunpack.i.l.bf16 %v3188_v31  ;;  %v3185_v35 = vunpack.i.h.bf16 %v3183_v32  ;;  %v3184_v36 = vunpack.i.l.bf16 %v3183_v32  ;;  %2875 = vmatpush3.bf16.msk.msra.mxu1 %vm3610_vm11, %v2873_v30 }
 0x1f5   : > { %2878 = vmatprep.subr.msk.bf16.mxu1 %vm3622_vm12, %v2876_v29 }
 0x1f6   : > { %v2882_v38 = vpack.c.bf16 %v3190_v33, %v3189_v34  ;;  %v2879_v39 = vpack.c.bf16 %v3185_v35, %v3184_v36  ;;  %v3390_v34 = vmov 0.0|0.0  }
 0x1f7   : > { %v3198_v40 = vpop.permute.xlu1 %3197  ;;  %v3193_v41 = vpop.permute.xlu0 %3192 }
 0x1f8   : > { %v3200_v42 = vunpack.i.h.bf16 %v3198_v40  ;;  %v3199_v43 = vunpack.i.l.bf16 %v3198_v40  ;;  %v3195_v44 = vunpack.i.h.bf16 %v3193_v41  ;;  %v3194_v45 = vunpack.i.l.bf16 %v3193_v41  ;;  %2881 = vmatpush3.bf16.msk.msra.mxu1 %vm3631_vm13, %v2879_v39 }
 0x1f9   : > { %2884 = vmatprep.subr.msk.bf16.mxu1 %vm3622_vm12, %v2882_v38 }
 0x1fa   : > { %v2888_v13 = vpack.c.bf16 %v3200_v42, %v3199_v43  ;;  %v2885_v46 = vpack.c.bf16 %v3195_v44, %v3194_v45 }
 0x1fb   : > { %v3213_v47 = vpop.permute.xlu1 %3212  ;;  %v3203_v48 = vpop.permute.xlu0 %3202 }
 0x1fc   : > { %v3215_v49 = vunpack.i.h.bf16 %v3213_v47  ;;  %v3214_v50 = vunpack.i.l.bf16 %v3213_v47  ;;  %v3205_v51 = vunpack.i.h.bf16 %v3203_v48  ;;  %v3204_v52 = vunpack.i.l.bf16 %v3203_v48  ;;  %2887 = vmatpush3.bf16.msk.msra.mxu1 %vm3631_vm13, %v2885_v46 }
 0x1fd   : > { %2890 = vmatprep.subr.msk.bf16.mxu1 %vm3622_vm12, %v2888_v13 }
 0x1fe   : > { %v2894_v53 = vpack.c.bf16 %v3215_v49, %v3214_v50  ;;  %v2891_v54 = vpack.c.bf16 %v3205_v51, %v3204_v52 }
 0x1ff   : > { %v3218_v55 = vpop.permute.xlu1 %3217  ;;  %v3208_v56 = vpop.permute.xlu0 %3207 }
 0x200   : > { %v3220_v57 = vunpack.i.h.bf16 %v3218_v55  ;;  %v3219_v58 = vunpack.i.l.bf16 %v3218_v55  ;;  %v3210_v59 = vunpack.i.h.bf16 %v3208_v56  ;;  %v3209_v60 = vunpack.i.l.bf16 %v3208_v56  ;;  %2893 = vmatpush3.bf16.msk.msra.mxu1 %vm3631_vm13, %v2891_v54  ;;  %v1125_v56 = vld [vmem:[%s4073_s6] sm:$0xff] }
 0x201   : > { %2896 = vmatprep.subr.msk.bf16.mxu1 %vm3622_vm12, %v2894_v53 }
 0x202   : > { %v2897_v62 = vpack.c.bf16 %v3220_v57, %v3219_v58  ;;  %v2900_v63 = vpack.c.bf16 %v3210_v59, %v3209_v60  ;;  %v1126_v57 = vld [vmem:[%s4073_s6 + $0x8] sm:$0xff]  ;;  %v1127_v58 = vld [vmem:[%s4073_s6 + $0x10] sm:$0xff]  ;;  %v1128_v59 = vld [vmem:[%s4073_s6 + $0x18] sm:$0xff] }
 0x203   : > { %v3228_v0 = vpop.permute.xlu1 %3227  ;;  %v3223_v1 = vpop.permute.xlu0 %3222  ;;  %v1118_v60 = vld [vmem:[%s4072_s5 + $0x8] sm:$0xff] }
 0x204   : > { %v3230_v2 = vunpack.i.h.bf16 %v3228_v0  ;;  %v3229_v3 = vunpack.i.l.bf16 %v3228_v0  ;;  %v3225_v4 = vunpack.i.h.bf16 %v3223_v1  ;;  %v3224_v5 = vunpack.i.l.bf16 %v3223_v1  ;;  %2899 = vmatpush3.bf16.msk.msra.mxu1 %vm3631_vm13, %v2897_v62  ;;  %2902 = vmatprep.subr.msk.bf16.mxu0 %vm3649_vm14, %v2900_v63 }
 0x205   : > { %2905 = vmatpush3.bf16.msk.msra.mxu0 %vm3649_vm14, %v2900_v63 }
 0x206   : > { %v2906_v8 = vpack.c.bf16 %v3225_v4, %v3224_v5  ;;  %v2912_v10 = vpack.c.bf16 %v3230_v2, %v3229_v3 }
 0x207   : > { %v3233_v9 = vpop.permute.xlu0 %3232  ;;  %1012 = vmatmul.mubr.f32.vlgmr.msra.gmra.mrb[0].mxu1 %v762_v6 }
 0x208   : > { %v3235_v14 = vunpack.i.h.bf16 %v3233_v9  ;;  %v3234_v15 = vunpack.i.l.bf16 %v3233_v9  ;;  %2908 = vmatprep.subr.msk.bf16.mxu0 %vm3649_vm14, %v2906_v8  ;;  %1016 = vmatprep.mubr.f32.mxu1 %v766_v7 }
 0x209   : > { %2911 = vmatpush3.bf16.msk.msra.mxu0 %vm3649_vm14, %v2906_v8 }
 0x20a   : > { %2914 = vmatprep.subr.msk.bf16.mxu0 %vm3649_vm14, %v2912_v10  ;;  %v2918_v18 = vpack.c.bf16 %v3235_v14, %v3234_v15 }
 0x20b   : > { %1017 = vmatmul.mubr.f32.gmra.mrb[2].mxu1 %v765_v16 }
 0x20c   : > { %1021 = vmatprep.mubr.f32.mxu1 %v769_v17 }
 0x20d   : > { %2917 = vmatpush3.bf16.msk.msra.mxu0 %vm3649_vm14, %v2912_v10 }
 0x20e   : > { %2920 = vmatprep.subr.msk.bf16.mxu0 %vm3649_vm14, %v2918_v18 }
 0x20f   : > { %1022 = vmatmul.mubr.f32.gmra.mrb[4].mxu1 %v768_v19 }
 0x210   : > { %1026 = vmatprep.mubr.f32.mxu1 %v772_v20 }
 0x211   : > { %2923 = vmatpush3.bf16.msk.msra.mxu0 %vm3649_vm14, %v2918_v18 }
 0x212   : > { %2924 = vmatprep.subr.bf16.mxu0 %v3390_v34 }
 0x213   : > { %1027 = vmatmul.mubr.f32.gmra.mrb[6].mxu1 %v771_v21 }
 0x214   : > { %2651 = vmatmul.mubr.msk.f32.vlgmr.msra.gmra.mrb[8].mxu0 %vm934_vm10, %v767_v12  ;;  %v917_v35 = vpop.permute.xlu1 %916 }
 0x215   : > { %2653 = vmatprep.mubr.msk.f32.mxu0 %vm934_vm10, %v770_v22 }
 0x218   : > { %2654 = vmatmul.mubr.msk.f32.gmra.mrb[10].mxu0 %vm934_vm10, %v773_v23  ;;  %v922_v32 = vpop.permute.xlu0 %921  ;;  %v927_v47 = vpop.permute.xlu1 %926 }
 0x219   : > { %2384 = vmatprep.mubr.msk.f32.mxu0 %vm1217_vm15, %v1118_v60 }
 0x21c   : > { %v932_v13 = vpop.permute.xlu0 %931 }
 0x2da   : > { %v2488_v24 = vpop.f32.mrb[0].mxu1 }
 0x2db   : > { %v2489_v25 = vpop.f32.mrb[1].mxu1 }
 0x2dc   : > { %v2490_v26 = vadd.f32 %v2489_v25, %v2488_v24 }
 0x2de   : > { %v2491_v27 = vpop.f32.mrb[2].mxu1  ;;  %v1014_v42 = vadd.f32 %v2490_v26, %v917_v35  ;;  %v1117_v35 = vld [vmem:[%s4072_s5] sm:$0xff] }
 0x2df   : > { %v2492_v29 = vpop.f32.mrb[3].mxu1 }
 0x2e0   : > { %v2493_v30 = vadd.f32 %v2492_v29, %v2491_v27 }
 0x2e2   : > { %v2494_v31 = vpop.f32.mrb[4].mxu1  ;;  %v1019_v39 = vadd.f32 %v2493_v30, %v922_v32 }
 0x2e3   : > { %v2495_v33 = vpop.f32.mrb[5].mxu1 }
 0x2e4   : > { %v2496_v36 = vadd.f32 %v2495_v33, %v2494_v31 }
 0x2e6   : > { %v2497_v38 = vpop.f32.mrb[6].mxu1  ;;  %v1024_v50 = vadd.f32 %v2496_v36, %v927_v47  ;;  %v1120_v36 = vld [vmem:[%s4072_s5 + $0x18] sm:$0xff] }
 0x2e7   : > { %v2498_v40 = vpop.f32.mrb[7].mxu1  ;;  %v2652_v41 = vpop.f32.mrb[8].mxu0 }
 0x2e8   : > { %v2499_v43 = vadd.f32 %v2498_v40, %v2497_v38  ;;  %v3707_v44 = vadd.f32 %v2652_v41, %v1019_v39  ;;  %v1098_v45 = vpop.f32.mrb[9].mxu0  ;;  %v1119_v38 = vld [vmem:[%s4072_s5 + $0x10] sm:$0xff]  ;;  %v1124_v39 = vld [vmem:[%s4072_s5 + $0x38] sm:$0xff] }
 0x2e9   : > { %v3709_v46 = vadd.f32 %v1098_v45, %v1014_v42  ;;  %v1123_v40 = vld [vmem:[%s4072_s5 + $0x30] sm:$0xff] }
 0x2ea   : > { %v1029_v48 = vadd.f32 %v2499_v43, %v932_v13 }
 0x2eb   : > { %v2655_v49 = vpop.f32.mrb[10].mxu0  ;;  %v3236_v51 = vpack.i.bf16 %v3707_v44, %v3709_v46  ;;  %v2941_v11 = vpack.c.bf16 %v3707_v44, %v3709_v46 }
 0x2ec   : > { %v3713_v52 = vadd.f32 %v2655_v49, %v1029_v48  ;;  %v1108_v53 = vpop.f32.mrb[11].mxu0 }
 0x2ed   : > { %v3715_v54 = vadd.f32 %v1108_v53, %v1024_v50  ;;  %3237 = vrot.lane.b32.xlu1 %v3236_v51, %s3384_s30 }
 0x2ef   : > { %v3241_v55 = vpack.i.bf16 %v3713_v52, %v3715_v54  ;;  %v2944_v20 = vpack.c.bf16 %v3713_v52, %v3715_v54 }
 0x2f1   : > { %3242 = vrot.lane.b32.xlu0 %v3241_v55, %s3384_s30  ;;  %3247 = vrot.lane.b32.xlu1 %v3236_v51, %s4100_s23  ;;  %s4110_s30 = smov 120  }
 0x2f5   : > { %3252 = vrot.lane.b32.xlu0 %v3241_v55, %s4100_s23  ;;  %3257 = vrot.lane.b32.xlu1 %v3236_v51, %s4090_s18 }
 0x2f9   : > { %3262 = vrot.lane.b32.xlu0 %v3241_v55, %s4090_s18  ;;  %3267 = vrot.lane.b32.xlu1 %v3236_v51, %s4101_s28 }
 0x2fd   : > { %3272 = vrot.lane.b32.xlu0 %v3241_v55, %s4101_s28  ;;  %1199 = vperm.xlu1 %3155, %v1125_v56  }
 0x301   : > { %1204 = vperm.xlu0 %3154, %v1126_v57   ;;  %1209 = vperm.xlu1 %3155, %v1127_v58  }
 0x305   : > { %1214 = vperm.xlu0 %3154, %v1128_v59  }
 0x35f   : > { %v3238_v62 = vpop.permute.xlu1 %3237 }
 0x360   : > { %v3240_v63 = vunpack.i.h.bf16 %v3238_v62  ;;  %v3239_v0 = vunpack.i.l.bf16 %v3238_v62 }
 0x362   : > { %v2925_v1 = vpack.c.bf16 %v3240_v63, %v3239_v0 }
 0x363   : > { %v3243_v2 = vpop.permute.xlu0 %3242  ;;  %v3248_v3 = vpop.permute.xlu1 %3247 }
 0x364   : > { %v3245_v4 = vunpack.i.h.bf16 %v3243_v2  ;;  %v3244_v5 = vunpack.i.l.bf16 %v3243_v2  ;;  %2927 = vmatpush1.bf16.msk.msra.mxu0 %vm3610_vm11, %v2925_v1  ;;  %v3250_v7 = vunpack.i.h.bf16 %v3248_v3  ;;  %v3249_v8 = vunpack.i.l.bf16 %v3248_v3  ;;  %v1323_v3 = vld [vmem:[%s4075_s8] sm:$0xff] }
 0x365   : > { %2928 = vmatprep.subr.bf16.mxu0 %v3390_v34 }
 0x366   : > { %v2929_v6 = vpack.c.bf16 %v3245_v4, %v3244_v5  ;;  %v2933_v10 = vpack.c.bf16 %v3250_v7, %v3249_v8  ;;  %v1324_v7 = vld [vmem:[%s4075_s8 + $0x8] sm:$0xff]  ;;  %v1319_v8 = vld [vmem:[%s4074_s7] sm:$0xff] }
 0x367   : > { %v3253_v9 = vpop.permute.xlu0 %3252  ;;  %v3258_v17 = vpop.permute.xlu1 %3257  ;;  %2680 = vmatprep.mubr.msk.f32.mxu1 %vm1383_vm0, %v1319_v8 }
 0x368   : > { %2931 = vmatpush1.bf16.msk.msra.mxu0 %vm3610_vm11, %v2929_v6  ;;  %v3255_v14 = vunpack.i.h.bf16 %v3253_v9  ;;  %v3254_v15 = vunpack.i.l.bf16 %v3253_v9  ;;  %v3260_v18 = vunpack.i.h.bf16 %v3258_v17  ;;  %v3259_v19 = vunpack.i.l.bf16 %v3258_v17  ;;  %v1325_v6 = vld [vmem:[%s4075_s8 + $0x10] sm:$0xff]  ;;  %v1326_v9 = vld [vmem:[%s4075_s8 + $0x18] sm:$0xff] }
 0x369   : > { %2932 = vmatprep.subr.bf16.mxu0 %v3390_v34 }
 0x36a   : > { %v2937_v16 = vpack.c.bf16 %v3255_v14, %v3254_v15  ;;  %v2947_v12 = vpack.c.bf16 %v3260_v18, %v3259_v19 }
 0x36b   : > { %v3263_v21 = vpop.permute.xlu0 %3262  ;;  %v3268_v24 = vpop.permute.xlu1 %3267 }
 0x36c   : > { %2935 = vmatpush1.bf16.msk.msra.mxu0 %vm3631_vm13, %v2933_v10  ;;  %v3265_v22 = vunpack.i.h.bf16 %v3263_v21  ;;  %v3264_v23 = vunpack.i.l.bf16 %v3263_v21  ;;  %v3270_v26 = vunpack.i.h.bf16 %v3268_v24  ;;  %v3269_v27 = vunpack.i.l.bf16 %v3268_v24 }
 0x36d   : > { %2936 = vmatprep.subr.bf16.mxu0 %v3390_v34 }
 0x36e   : > { %v2951_v25 = vpack.c.bf16 %v3265_v22, %v3264_v23  ;;  %v2955_v30 = vpack.c.bf16 %v3270_v26, %v3269_v27  ;;  %v1320_v27 = vld [vmem:[%s4074_s7 + $0x8] sm:$0xff] }
 0x36f   : > { %v3273_v29 = vpop.permute.xlu0 %3272 }
 0x370   : > { %2939 = vmatpush1.bf16.msk.msra.mxu0 %vm3631_vm13, %v2937_v16  ;;  %v3275_v31 = vunpack.i.h.bf16 %v3273_v29  ;;  %v3274_v32 = vunpack.i.l.bf16 %v3273_v29  ;;  %v1321_v29 = vld [vmem:[%s4074_s7 + $0x10] sm:$0xff] }
 0x371   : > { %2940 = vmatprep.subr.bf16.mxu0 %v3390_v34 }
 0x372   : > { %v2959_v33 = vpack.c.bf16 %v3275_v31, %v3274_v32 }
 0x374   : > { %2942 = vmatpush1.bf16.msra.mxu0 %v2941_v11 }
 0x375   : > { %2943 = vmatprep.subr.bf16.mxu0 %v3390_v34 }
 0x378   : > { %2945 = vmatpush1.bf16.msra.mxu0 %v2944_v20 }
 0x379   : > { %2946 = vmatprep.subr.bf16.mxu0 %v3390_v34 }
 0x37c   : > { %2949 = vmatpush1.bf16.msk.msra.mxu0 %vm3622_vm12, %v2947_v12  ;;  %v1200_v43 = vpop.permute.xlu1 %1199 }
 0x37d   : > { %2950 = vmatprep.subr.bf16.mxu0 %v3390_v34 }
 0x380   : > { %2953 = vmatpush1.bf16.msk.msra.mxu0 %vm3622_vm12, %v2951_v25  ;;  %v1205_v13 = vpop.permute.xlu0 %1204  ;;  %v1210_v58 = vpop.permute.xlu1 %1209 }
 0x381   : > { %2954 = vmatprep.subr.bf16.mxu0 %v3390_v34 }
 0x384   : > { %2957 = vmatpush1.bf16.msk.msra.mxu0 %vm3649_vm14, %v2955_v30  ;;  %v1215_v60 = vpop.permute.xlu0 %1214  ;;  %v1322_v30 = vld [vmem:[%s4074_s7 + $0x18] sm:$0xff] }
 0x385   : > { %2958 = vmatprep.subr.bf16.mxu0 %v3390_v34  ;;  %v1121_v34 = vld [vmem:[%s4072_s5 + $0x20] sm:$0xff] }
 0x388   : > { %2961 = vmatpush1.bf16.msk.msra.mxu0 %vm3649_vm14, %v2959_v33 }
 0x38b   : > { %1295 = vmatmul.mubr.f32.vlgmr.msra.gmra.mrb[12].mxu0 %v1117_v35 }
 0x38c   : > { %2385 = vmatprep.mubr.msk.f32.mxu0 %vm1217_vm15, %v1120_v36 }
 0x38f   : > { %1300 = vmatmul.mubr.f32.gmra.mrb[14].mxu0 %v1119_v38 }
 0x390   : > { %2386 = vmatprep.mubr.msk.f32.mxu0 %vm1217_vm15, %v1122_v61 }
 0x393   : > { %1305 = vmatmul.mubr.f32.gmra.mrb[16].mxu0 %v1121_v34 }
 0x394   : > { %2387 = vmatprep.mubr.msk.f32.mxu0 %vm1217_vm15, %v1124_v39 }
 0x397   : > { %1310 = vmatmul.mubr.f32.gmra.mrb[18].mxu0 %v1123_v40 }
 0x45e   : > { %v1296_v41 = vpop.f32.mrb[12].mxu0 }
 0x45f   : > { %v1298_v42 = vpop.f32.mrb[13].mxu0  ;;  %v1297_v45 = vadd.f32 %v1296_v41, %v1200_v43 }
 0x461   : > { %v1315_v50 = vmax.f32 %v1297_v45, 0.0 }
 0x462   : > { %v1301_v47 = vpop.f32.mrb[14].mxu0 }
 0x463   : > { %v1302_v48 = vadd.f32 %v1301_v47, %v1205_v13  ;;  %v1303_v49 = vpop.f32.mrb[15].mxu0 }
 0x465   : > { %v1316_v51 = vmax.f32 %v1302_v48, 0.0 }
 0x466   : > { %v1306_v53 = vpop.f32.mrb[16].mxu0 }
 0x467   : > { %v1308_v55 = vpop.f32.mrb[17].mxu0  ;;  %v3276_v56 = vpack.i.bf16 %v1316_v51, %v1315_v50  ;;  %v2974_v57 = vpack.c.bf16 %v1316_v51, %v1315_v50  ;;  %v1307_v59 = vadd.f32 %v1306_v53, %v1210_v58  ;;  %v1496_v58 = vld [vmem:[%s4077_s10 + $0x18] sm:$0xff] }
 0x469   : > { %3277 = vrot.lane.b32.xlu1 %v3276_v56, %s4100_s23  ;;  %v1317_v1 = vmax.f32 %v1307_v59, 0.0 }
 0x46a   : > { %v1311_v62 = vpop.f32.mrb[18].mxu0 }
 0x46b   : > { %v1312_v63 = vadd.f32 %v1311_v62, %v1215_v60  ;;  %v1313_v0 = vpop.f32.mrb[19].mxu0 }
 0x46d   : > { %v1318_v2 = vmax.f32 %v1312_v63, 0.0  ;;  %3287 = vrot.lane.b32.xlu1 %v3276_v56, %s4090_s18 }
 0x46f   : > { %v3281_v4 = vpack.i.bf16 %v1318_v2, %v1317_v1  ;;  %v2978_v5 = vpack.c.bf16 %v1318_v2, %v1317_v1 }
 0x471   : > { %3282 = vrot.lane.b32.xlu0 %v3281_v4, %s4100_s23  ;;  %1365 = vperm.xlu1 %3155, %v1323_v3  }
 0x475   : > { %3292 = vrot.lane.b32.xlu0 %v3281_v4, %s4090_s18  ;;  %1375 = vperm.xlu1 %3155, %v1325_v6  }
 0x479   : > { %1370 = vperm.xlu0 %3154, %v1324_v7  }
 0x47d   : > { %1380 = vperm.xlu0 %3154, %v1326_v9  }
 0x4db   : > { %v3278_v10 = vpop.permute.xlu1 %3277 }
 0x4dc   : > { %v3280_v14 = vunpack.i.h.bf16 %v3278_v10  ;;  %v3279_v15 = vunpack.i.l.bf16 %v3278_v10 }
 0x4de   : > { %v2962_v16 = vpack.c.bf16 %v3280_v14, %v3279_v15  ;;  %v1490_v15 = vld [vmem:[%s4076_s9 + $0x8] sm:$0xff] }
 0x4df   : > { %v3288_v20 = vpop.permute.xlu1 %3287 }
 0x4e0   : > { %2964 = vmatprep.subr.msk.bf16.mxu1 %vm3631_vm13, %v2962_v16  ;;  %v3290_v21 = vunpack.i.h.bf16 %v3288_v20  ;;  %v3289_v12 = vunpack.i.l.bf16 %v3288_v20  ;;  %v1657_v20 = vld [vmem:[%s4080_s13 + $0x18] sm:$0xff] }
 0x4e1   : > { %2967 = vmatpush3.bf16.msk.msra.mxu1 %vm3631_vm13, %v2962_v16  ;;  %v1491_v16 = vld [vmem:[%s4076_s9 + $0x10] sm:$0xff] }
 0x4e2   : > { %v2982_v23 = vpack.c.bf16 %v3290_v21, %v3289_v12  ;;  %v1658_v12 = vld [vmem:[%s4080_s13 + $0x20] sm:$0xff] }
 0x4e3   : > { %v3283_v11 = vpop.permute.xlu0 %3282 }
 0x4e4   : > { %v3285_v17 = vunpack.i.h.bf16 %v3283_v11  ;;  %v3284_v18 = vunpack.i.l.bf16 %v3283_v11  ;;  %v1492_v11 = vld [vmem:[%s4076_s9 + $0x18] sm:$0xff] }
 0x4e6   : > { %v2968_v19 = vpack.c.bf16 %v3285_v17, %v3284_v18  ;;  %v1655_v17 = vld [vmem:[%s4080_s13 + $0x8] sm:$0xff]  ;;  %v1656_v18 = vld [vmem:[%s4080_s13 + $0x10] sm:$0xff] }
 0x4e7   : > { %v3293_v22 = vpop.permute.xlu0 %3292  ;;  %v3030_v21 = vpack.c.bf16 %v1657_v20, %v1656_v18  ;;  %v1785_v18 = vld [vmem:[%s4079_s12 + $0x10] sm:$0xff]  ;;  %v1779_v20 = vld [vmem:[%s4078_s11] sm:$0xff] }
 0x4e8   : > { %2970 = vmatprep.subr.msk.bf16.mxu1 %vm3631_vm13, %v2968_v19  ;;  %v3295_v24 = vunpack.i.h.bf16 %v3293_v22  ;;  %v3294_v25 = vunpack.i.l.bf16 %v3293_v22  ;;  %v1659_v22 = vld [vmem:[%s4080_s13 + $0x28] sm:$0xff] }
 0x4e9   : > { %2973 = vmatpush3.bf16.msk.msra.mxu1 %vm3631_vm13, %v2968_v19  ;;  %v3026_v19 = vpack.c.bf16 %v1655_v17, %v1654_v28  ;;  %v1783_v17 = vld [vmem:[%s4079_s12] sm:$0xff] }
 0x4ea   : > { %2975 = vmatprep.subr.bf16.mxu1 %v2974_v57  ;;  %v2988_v26 = vpack.c.bf16 %v3295_v24, %v3294_v25  ;;  %v1660_v24 = vld [vmem:[%s4080_s13 + $0x30] sm:$0xff]  ;;  %v1661_v25 = vld [vmem:[%s4080_s13 + $0x38] sm:$0xff] }
 0x4eb   : > { %3027 = vmatprep.subr.bf16.mxu0 %v3026_v19 }
 0x4ec   : > { %3029 = vmatpush3.bf16.msra.mxu0 %v3026_v19  ;;  %v1784_v19 = vld [vmem:[%s4079_s12 + $0x8] sm:$0xff] }
 0x4ed   : > { %2977 = vmatpush3.bf16.msra.mxu1 %v2974_v57  ;;  %v1489_v57 = vld [vmem:[%s4076_s9] sm:$0xff]  ;;  %3031 = vmatprep.subr.bf16.mxu0 %v3030_v21 }
 0x4ee   : > { %2979 = vmatprep.subr.bf16.mxu1 %v2978_v5 }
 0x4f0   : > { %v1366_v32 = vpop.permute.xlu1 %1365  ;;  %3033 = vmatpush3.bf16.msra.mxu0 %v3030_v21  ;;  %v1786_v21 = vld [vmem:[%s4079_s12 + $0x18] sm:$0xff] }
 0x4f1   : > { %2981 = vmatpush3.bf16.msra.mxu1 %v2978_v5 }
 0x4f2   : > { %2984 = vmatprep.subr.msk.bf16.mxu1 %vm3622_vm12, %v2982_v23 }
 0x4f4   : > { %v1376_v41 = vpop.permute.xlu1 %1375 }
 0x4f5   : > { %2987 = vmatpush3.bf16.msk.msra.mxu1 %vm3622_vm12, %v2982_v23  ;;  %v3034_v23 = vpack.c.bf16 %v1659_v22, %v1658_v12 }
 0x4f6   : > { %2990 = vmatprep.subr.msk.bf16.mxu1 %vm3622_vm12, %v2988_v26 }
 0x4f7   : > { %3035 = vmatprep.subr.bf16.mxu0 %v3034_v23 }
 0x4f8   : > { %v1371_v31 = vpop.permute.xlu0 %1370  ;;  %3037 = vmatpush3.bf16.msra.mxu0 %v3034_v23 }
 0x4f9   : > { %2993 = vmatpush3.bf16.msk.msra.mxu1 %vm3622_vm12, %v2988_v26  ;;  %v3038_v26 = vpack.c.bf16 %v1661_v25, %v1660_v24 }
 0x4fb   : > { %3039 = vmatprep.subr.bf16.mxu0 %v3038_v26 }
 0x4fc   : > { %2681 = vmatmul.mubr.msk.f32.vlgmr.msra.gmra.mrb[8].mxu1 %vm1383_vm0, %v1320_v27  ;;  %v1381_v34 = vpop.permute.xlu0 %1380  ;;  %v1662_v27 = vld [vmem:[%s4080_s13 + $0x40] sm:$0xff]  ;;  %3041 = vmatpush3.bf16.msra.mxu0 %v3038_v26 }
 0x4fd   : > { %2683 = vmatprep.mubr.msk.f32.mxu1 %vm1383_vm0, %v1321_v29  ;;  %v1663_v29 = vld [vmem:[%s4080_s13 + $0x48] sm:$0xff] }
 0x500   : > { %2684 = vmatmul.mubr.msk.f32.gmra.mrb[10].mxu1 %vm1383_vm0, %v1322_v30  ;;  %v3042_v30 = vpack.c.bf16 %v1663_v29, %v1662_v27 }
 0x501   : > { %2710 = vmatprep.mubr.msk.f32.mxu1 %vm1383_vm0, %v1489_v57 }
 0x502   : > { %3043 = vmatprep.subr.bf16.mxu0 %v3042_v30 }
 0x503   : > { %3045 = vmatpush3.bf16.msra.mxu0 %v3042_v30 }
 0x5cf   : > { %v2682_v33 = vpop.f32.mrb[8].mxu1 }
 0x5d0   : > { %v1468_v35 = vadd.f32 %v2682_v33, %v1371_v31  ;;  %v1462_v36 = vpop.f32.mrb[9].mxu1  ;;  %v1664_v31 = vld [vmem:[%s4080_s13 + $0x50] sm:$0xff] }
 0x5d1   : > { %v1463_v38 = vadd.f32 %v1462_v36, %v1366_v32  ;;  %v1665_v32 = vld [vmem:[%s4080_s13 + $0x58] sm:$0xff]  ;;  %v1667_v36 = vld [vmem:[%s4080_s13 + $0x68] sm:$0xff] }
 0x5d2   : > { %v1482_v61 = vadd.f32 %v1468_v35, %v3707_v44  ;;  %v3046_v33 = vpack.c.bf16 %v1665_v32, %v1664_v31  ;;  %v1666_v35 = vld [vmem:[%s4080_s13 + $0x60] sm:$0xff] }
 0x5d3   : > { %v1481_v39 = vadd.f32 %v1463_v38, %v3709_v46  ;;  %v2685_v40 = vpop.f32.mrb[10].mxu1  ;;  %v1493_v46 = vld [vmem:[%s4077_s10] sm:$0xff]  ;;  %v3050_v38 = vpack.c.bf16 %v1667_v36, %v1666_v35 }
 0x5d4   : > { %v1486_v42 = vmax.f32 %v1482_v61, 0.0  ;;  %v1478_v43 = vadd.f32 %v2685_v40, %v1381_v34  ;;  %v1472_v45 = vpop.f32.mrb[11].mxu1  ;;  %3047 = vmatprep.subr.bf16.mxu0 %v3046_v33  ;;  %v1668_v61 = vld [vmem:[%s4080_s13 + $0x70] sm:$0xff]  ;;  %v1669_v34 = vld [vmem:[%s4080_s13 + $0x78] sm:$0xff] }
 0x5d5   : > { %v1485_v13 = vmax.f32 %v1481_v39, 0.0  ;;  %v1473_v47 = vadd.f32 %v1472_v45, %v1376_v41  ;;  %3049 = vmatpush3.bf16.msra.mxu0 %v3046_v33  ;;  %v3054_v39 = vpack.c.bf16 %v1669_v34, %v1668_v61  ;;  %v1781_v34 = vld [vmem:[%s4078_s11 + $0x10] sm:$0xff] }
 0x5d6   : > { %v1484_v48 = vadd.f32 %v1478_v43, %v3713_v52  ;;  %v1494_v52 = vld [vmem:[%s4077_s10 + $0x8] sm:$0xff]  ;;  %3051 = vmatprep.subr.bf16.mxu0 %v3050_v38 }
 0x5d7   : > { %v1483_v49 = vadd.f32 %v1473_v47, %v3715_v54  ;;  %v3296_v50 = vpack.i.bf16 %v1486_v42, %v1485_v13  ;;  %v3006_v51 = vpack.c.bf16 %v1486_v42, %v1485_v13  ;;  %v1495_v54 = vld [vmem:[%s4077_s10 + $0x10] sm:$0xff] }
 0x5d8   : > { %v1488_v53 = vmax.f32 %v1484_v48, 0.0 }
 0x5d9   : > { %v1487_v55 = vmax.f32 %v1483_v49, 0.0  ;;  %3297 = vrot.lane.b32.xlu1 %v3296_v50, %s4100_s23  ;;  %3053 = vmatpush3.bf16.msra.mxu0 %v3050_v38 }
 0x5da   : > { %3055 = vmatprep.subr.bf16.mxu0 %v3054_v39 }
 0x5db   : > { %v3301_v44 = vpack.i.bf16 %v1488_v53, %v1487_v55  ;;  %v3010_v56 = vpack.c.bf16 %v1488_v53, %v1487_v55 }
 0x5dd   : > { %3302 = vrot.lane.b32.xlu0 %v3301_v44, %s4100_s23  ;;  %3307 = vrot.lane.b32.xlu1 %v3296_v50, %s4090_s18 }
 0x5de   : > { %3057 = vmatpush3.bf16.msra.mxu0 %v3054_v39  ;;  %v1782_v39 = vld [vmem:[%s4078_s11 + $0x18] sm:$0xff] }
 0x5e1   : > { %3312 = vrot.lane.b32.xlu0 %v3301_v44, %s4090_s18  ;;  %1535 = vperm.xlu1 %3155, %v1493_v46   ;;  %s3391_s18 = smov 104  }
 0x5e5   : > { %1540 = vperm.xlu0 %3154, %v1494_v52   ;;  %1545 = vperm.xlu1 %3155, %v1495_v54  }
 0x5e9   : > { %1550 = vperm.xlu0 %3154, %v1496_v58  }
 0x64b   : > { %v3298_v59 = vpop.permute.xlu1 %3297 }
 0x64c   : > { %v3300_v60 = vunpack.i.h.bf16 %v3298_v59  ;;  %v3299_v62 = vunpack.i.l.bf16 %v3298_v59 }
 0x64e   : > { %v2994_v63 = vpack.c.bf16 %v3300_v60, %v3299_v62 }
 0x64f   : > { %v3303_v0 = vpop.permute.xlu0 %3302  ;;  %v3308_v4 = vpop.permute.xlu1 %3307 }
 0x650   : > { %v3305_v1 = vunpack.i.h.bf16 %v3303_v0  ;;  %v3304_v2 = vunpack.i.l.bf16 %v3303_v0  ;;  %2996 = vmatprep.subr.msk.bf16.mxu1 %vm3631_vm13, %v2994_v63  ;;  %v3310_v5 = vunpack.i.h.bf16 %v3308_v4  ;;  %v3309_v6 = vunpack.i.l.bf16 %v3308_v4 }
 0x651   : > { %2999 = vmatpush3.bf16.msk.msra.mxu1 %vm3631_vm13, %v2994_v63 }
 0x652   : > { %v3000_v3 = vpack.c.bf16 %v3305_v1, %v3304_v2  ;;  %v3014_v8 = vpack.c.bf16 %v3310_v5, %v3309_v6 }
 0x653   : > { %v3313_v7 = vpop.permute.xlu0 %3312 }
 0x654   : > { %3002 = vmatprep.subr.msk.bf16.mxu1 %vm3631_vm13, %v3000_v3  ;;  %v3315_v9 = vunpack.i.h.bf16 %v3313_v7  ;;  %v3314_v10 = vunpack.i.l.bf16 %v3313_v7 }
 0x655   : > { %3005 = vmatpush3.bf16.msk.msra.mxu1 %vm3631_vm13, %v3000_v3 }
 0x656   : > { %3007 = vmatprep.subr.bf16.mxu1 %v3006_v51  ;;  %v3020_v14 = vpack.c.bf16 %v3315_v9, %v3314_v10 }
 0x659   : > { %3009 = vmatpush3.bf16.msra.mxu1 %v3006_v51 }
 0x65a   : > { %3011 = vmatprep.subr.bf16.mxu1 %v3010_v56 }
 0x65d   : > { %3013 = vmatpush3.bf16.msra.mxu1 %v3010_v56 }
 0x65e   : > { %3016 = vmatprep.subr.msk.bf16.mxu1 %vm3622_vm12, %v3014_v8 }
 0x660   : > { %v1536_v41 = vpop.permute.xlu1 %1535 }
 0x661   : > { %3019 = vmatpush3.bf16.msk.msra.mxu1 %vm3622_vm12, %v3014_v8 }
 0x662   : > { %3022 = vmatprep.subr.msk.bf16.mxu1 %vm3622_vm12, %v3020_v14 }
 0x664   : > { %v1541_v40 = vpop.permute.xlu0 %1540  ;;  %v1546_v51 = vpop.permute.xlu1 %1545 }
 0x665   : > { %3025 = vmatpush3.bf16.msk.msra.mxu1 %vm3622_vm12, %v3020_v14 }
 0x668   : > { %2711 = vmatmul.mubr.msk.f32.vlgmr.msra.gmra.mrb[12].mxu1 %vm1383_vm0, %v1490_v15  ;;  %v1551_v48 = vpop.permute.xlu0 %1550 }
 0x669   : > { %2713 = vmatprep.mubr.msk.f32.mxu1 %vm1383_vm0, %v1491_v16 }
 0x66c   : > { %2714 = vmatmul.mubr.msk.f32.gmra.mrb[14].mxu1 %vm1383_vm0, %v1492_v11 }
 0x66d   : > { %2778 = vmatprep.mubr.msk.f32.mxu1 %vm1383_vm0, %v1779_v20 }
 0x73b   : > { %v2712_v42 = vpop.f32.mrb[12].mxu1 }
 0x73c   : > { %v1637_v43 = vadd.f32 %v2712_v42, %v1541_v40  ;;  %v1631_v45 = vpop.f32.mrb[13].mxu1  ;;  %v1945_v40 = vld [vmem:[%s4081_s14] sm:$0xff]  ;;  %v1947_v42 = vld [vmem:[%s4081_s14 + $0x10] sm:$0xff] }
 0x73d   : > { %v1632_v13 = vadd.f32 %v1631_v45, %v1536_v41  ;;  %v1946_v41 = vld [vmem:[%s4081_s14 + $0x8] sm:$0xff]  ;;  %v1948_v45 = vld [vmem:[%s4081_s14 + $0x18] sm:$0xff] }
 0x73e   : > { %v1651_v47 = vmax.f32 %v1637_v43, 0.0  ;;  %v3090_v43 = vpack.c.bf16 %v1946_v41, %v1945_v40 }
 0x73f   : > { %v1650_v49 = vmax.f32 %v1632_v13, 0.0  ;;  %v2715_v50 = vpop.f32.mrb[14].mxu1  ;;  %v3094_v13 = vpack.c.bf16 %v1948_v45, %v1947_v42 }
 0x740   : > { %v1647_v53 = vadd.f32 %v2715_v50, %v1551_v48  ;;  %v1641_v55 = vpop.f32.mrb[15].mxu1  ;;  %v1950_v48 = vld [vmem:[%s4081_s14 + $0x28] sm:$0xff]  ;;  %3091 = vmatprep.subr.bf16.mxu0 %v3090_v43  ;;  %v1951_v50 = vld [vmem:[%s4081_s14 + $0x30] sm:$0xff] }
 0x741   : > { %v3316_v44 = vpack.i.bf16 %v1651_v47, %v1650_v49  ;;  %v1642_v56 = vadd.f32 %v1641_v55, %v1546_v51  ;;  %v1952_v51 = vld [vmem:[%s4081_s14 + $0x38] sm:$0xff] }
 0x742   : > { %v1653_v46 = vmax.f32 %v1647_v53, 0.0  ;;  %v3102_v53 = vpack.c.bf16 %v1952_v51, %v1951_v50 }
 0x743   : > { %v1652_v52 = vmax.f32 %v1642_v56, 0.0  ;;  %3317 = vrot.lane.b32.xlu1 %v3316_v44, %s4110_s30 }
 0x745   : > { %v3321_v54 = vpack.i.bf16 %v1653_v46, %v1652_v52 }
 0x747   : > { %3322 = vrot.lane.b32.xlu0 %v3321_v54, %s4110_s30 }
 0x7b5   : > { %v3318_v57 = vpop.permute.xlu1 %3317 }
 0x7b6   : > { %v3320_v58 = vunpack.i.h.bf16 %v3318_v57  ;;  %v3319_v59 = vunpack.i.l.bf16 %v3318_v57 }
 0x7b8   : > { %v1687_v60 = vsel %vm577_vm5, %v3320_v58, 0.0  ;;  %v1686_v62 = vsel %vm577_vm5, %v3319_v59, 0.0 }
 0x7b9   : > { %v1691_v63 = vmax.f32 %v1651_v47, %v1687_v60  ;;  %v3323_v0 = vpop.permute.xlu0 %3322  ;;  %v1690_v1 = vmax.f32 %v1650_v49, %v1686_v62  ;;  %v1949_v47 = vld [vmem:[%s4081_s14 + $0x20] sm:$0xff] }
 0x7ba   : > { %v3325_v2 = vunpack.i.h.bf16 %v3323_v0  ;;  %v3324_v3 = vunpack.i.l.bf16 %v3323_v0  ;;  %v3098_v49 = vpack.c.bf16 %v1950_v48, %v1949_v47 }
 0x7bb   : > { %2748 = vmatprep.mubr.f32.mxu0 %v1690_v1 }
 0x7bc   : > { %v1689_v4 = vsel %vm577_vm5, %v3325_v2, 0.0  ;;  %v1688_v5 = vsel %vm577_vm5, %v3324_v3, 0.0  ;;  %2749 = vmatmul.mubr.f32.vlgmr.msra.gmra.mrb[20].mxu0 %v1691_v63 }
 0x7bd   : > { %v1692_v6 = vmax.f32 %v1652_v52, %v1688_v5  ;;  %v1693_v7 = vmax.f32 %v1653_v46, %v1689_v4  ;;  %3093 = vmatpush3.bf16.msra.mxu0 %v3090_v43 }
 0x7be   : > { %3095 = vmatprep.subr.bf16.mxu0 %v3094_v13 }
 0x7bf   : > { %2751 = vmatprep.mubr.f32.mxu0 %v1692_v6 }
 0x7c0   : > { %2752 = vmatmul.mubr.f32.gmra.mrb[22].mxu0 %v1693_v7 }
 0x7c1   : > { %3097 = vmatpush3.bf16.msra.mxu0 %v3094_v13 }
 0x7c2   : > { %3099 = vmatprep.subr.bf16.mxu0 %v3098_v49 }
 0x7c5   : > { %3101 = vmatpush3.bf16.msra.mxu0 %v3098_v49 }
 0x7c6   : > { %3103 = vmatprep.subr.bf16.mxu0 %v3102_v53 }
 0x7c9   : > { %3105 = vmatpush3.bf16.msra.mxu0 %v3102_v53 }
 0x88f   : > { %v2750_v8 = vpop.f32.mrb[20].mxu0 }
 0x890   : > { %v1760_v9 = vpop.f32.mrb[21].mxu0 }
 0x891   : > { %v3336_v10 = vpack.i.bf16 %v2750_v8, %v1760_v9  ;;  %v3070_v14 = vpack.c.bf16 %v2750_v8, %v1760_v9 }
 0x893   : > { %3327 = vrot.lane.b32.xlu1 %v3336_v10, %s4100_s23  ;;  %v2753_v15 = vpop.f32.mrb[22].mxu0 }
 0x894   : > { %v1770_v16 = vpop.f32.mrb[23].mxu0 }
 0x895   : > { %v3341_v11 = vpack.i.bf16 %v2753_v15, %v1770_v16  ;;  %v3074_v28 = vpack.c.bf16 %v2753_v15, %v1770_v16 }
 0x897   : > { %3337 = vrot.lane.b32.xlu1 %v3336_v10, %s4110_s30  ;;  %3332 = vrot.lane.b32.xlu0 %v3341_v11, %s4100_s23 }
 0x89b   : > { %1826 = vperm.xlu1 %3155, %v1783_v17   ;;  %3342 = vrot.lane.b32.xlu0 %v3341_v11, %s4110_s30 }
 0x89f   : > { %1836 = vperm.xlu1 %3155, %v1785_v18   ;;  %1831 = vperm.xlu0 %3154, %v1784_v19  }
 0x8a3   : > { %1841 = vperm.xlu0 %3154, %v1786_v21  }
 0x905   : > { %v3328_v12 = vpop.permute.xlu1 %3327 }
 0x906   : > { %v3330_v22 = vunpack.i.h.bf16 %v3328_v12  ;;  %v3329_v23 = vunpack.i.l.bf16 %v3328_v12 }
 0x908   : > { %v3058_v24 = vpack.c.bf16 %v3330_v22, %v3329_v23 }
 0x909   : > { %v3333_v25 = vpop.permute.xlu0 %3332  ;;  %v3338_v30 = vpop.permute.xlu1 %3337 }
 0x90a   : > { %v3335_v26 = vunpack.i.h.bf16 %v3333_v25  ;;  %v3334_v27 = vunpack.i.l.bf16 %v3333_v25  ;;  %3060 = vmatprep.subr.msk.bf16.mxu1 %vm3631_vm13, %v3058_v24  ;;  %v3340_v31 = vunpack.i.h.bf16 %v3338_v30  ;;  %v3339_v32 = vunpack.i.l.bf16 %v3338_v30  ;;  %v2074_v25 = vld [vmem:[%s4082_s15] sm:$0xff] }
 0x90b   : > { %3063 = vmatpush3.bf16.msk.msra.mxu1 %vm3631_vm13, %v3058_v24  ;;  %v2078_v24 = vld [vmem:[%s4083_s16] sm:$0xff] }
 0x90c   : > { %v3064_v29 = vpack.c.bf16 %v3335_v26, %v3334_v27  ;;  %v3078_v35 = vpack.c.bf16 %v3340_v31, %v3339_v32  ;;  %v2080_v26 = vld [vmem:[%s4083_s16 + $0x10] sm:$0xff]  ;;  %v2079_v27 = vld [vmem:[%s4083_s16 + $0x8] sm:$0xff] }
 0x90d   : > { %v3343_v33 = vpop.permute.xlu0 %3342 }
 0x90e   : > { %3066 = vmatprep.subr.msk.bf16.mxu1 %vm3631_vm13, %v3064_v29  ;;  %v3345_v36 = vunpack.i.h.bf16 %v3343_v33  ;;  %v3344_v38 = vunpack.i.l.bf16 %v3343_v33 }
 0x90f   : > { %3069 = vmatpush3.bf16.msk.msra.mxu1 %vm3631_vm13, %v3064_v29  ;;  %v2081_v29 = vld [vmem:[%s4083_s16 + $0x18] sm:$0xff] }
 0x910   : > { %3071 = vmatprep.subr.bf16.mxu1 %v3070_v14  ;;  %v3084_v61 = vpack.c.bf16 %v3345_v36, %v3344_v38 }
 0x913   : > { %3073 = vmatpush3.bf16.msra.mxu1 %v3070_v14 }
 0x914   : > { %3075 = vmatprep.subr.bf16.mxu1 %v3074_v28 }
 0x917   : > { %3077 = vmatpush3.bf16.msra.mxu1 %v3074_v28 }
 0x918   : > { %3080 = vmatprep.subr.msk.bf16.mxu1 %vm3079_vm3, %v3078_v35 }
 0x91a   : > { %v1827_v44 = vpop.permute.xlu1 %1826 }
 0x91b   : > { %3083 = vmatpush3.bf16.msk.msra.mxu1 %vm3079_vm3, %v3078_v35 }
 0x91c   : > { %3086 = vmatprep.subr.msk.bf16.mxu1 %vm3079_vm3, %v3084_v61 }
 0x91e   : > { %v1832_v55 = vpop.permute.xlu0 %1831  ;;  %v1837_v62 = vpop.permute.xlu1 %1836 }
 0x91f   : > { %3089 = vmatpush3.bf16.msk.msra.mxu1 %vm3079_vm3, %v3084_v61 }
 0x922   : > { %2779 = vmatmul.mubr.msk.f32.vlgmr.msra.gmra.mrb[16].mxu1 %vm1383_vm0, %v1780_v37  ;;  %v1842_v58 = vpop.permute.xlu0 %1841 }
 0x923   : > { %2781 = vmatprep.mubr.msk.f32.mxu1 %vm1383_vm0, %v1781_v34 }
 0x926   : > { %2782 = vmatmul.mubr.msk.f32.gmra.mrb[18].mxu1 %vm1383_vm0, %v1782_v39 }
 0x927   : > { %2838 = vmatprep.mubr.f32.mxu1 %v2074_v25 }
 0x9f5   : > { %v2780_v56 = vpop.f32.mrb[16].mxu1 }
 0x9f6   : > { %v1928_v46 = vadd.f32 %v2780_v56, %v1832_v55  ;;  %v1922_v52 = vpop.f32.mrb[17].mxu1  ;;  %v2076_v56 = vld [vmem:[%s4082_s15 + $0x10] sm:$0xff] }
 0x9f7   : > { %v1923_v54 = vadd.f32 %v1922_v52, %v1827_v44  ;;  %v2075_v44 = vld [vmem:[%s4082_s15 + $0x8] sm:$0xff] }
 0x9f8   : > { %v1942_v57 = vmax.f32 %v1928_v46, 0.0  ;;  %v2077_v46 = vld [vmem:[%s4082_s15 + $0x18] sm:$0xff] }
 0x9f9   : > { %v1941_v59 = vmax.f32 %v1923_v54, 0.0  ;;  %v2783_v60 = vpop.f32.mrb[18].mxu1 }
 0x9fa   : > { %v1938_v63 = vadd.f32 %v2783_v60, %v1842_v58  ;;  %1959 = vrot.lane.b32.xlu0 %v1942_v57, %s4110_s30  ;;  %v1932_v0 = vpop.f32.mrb[19].mxu1 }
 0x9fb   : > { %v1933_v1 = vadd.f32 %v1932_v0, %v1837_v62  ;;  %1957 = vrot.lane.b32.xlu1 %v1941_v59, %s4110_s30 }
 0x9fc   : > { %v1944_v2 = vmax.f32 %v1938_v63, 0.0 }
 0x9fd   : > { %v1943_v3 = vmax.f32 %v1933_v1, 0.0 }
 0x9fe   : > { %1963 = vrot.lane.b32.xlu0 %v1944_v2, %s4110_s30 }
 0x9ff   : > { %1961 = vrot.lane.b32.xlu1 %v1943_v3, %s4110_s30 }
 0xa6c   : > { %v1960_v4 = vpop.permute.xlu0 %1959 }
 0xa6d   : > { %v1970_v5 = vsel %vm1819_vm1, %v1960_v4, 0.0  ;;  %v1958_v6 = vpop.permute.xlu1 %1957 }
 0xa6e   : > { %v1969_v7 = vsel %vm1819_vm1, %v1958_v6, 0.0  ;;  %v1974_v9 = vmax.f32 %v1942_v57, %v1970_v5 }
 0xa6f   : > { %v1973_v8 = vmax.f32 %v1941_v59, %v1969_v7 }
 0xa70   : > { %v1964_v10 = vpop.permute.xlu0 %1963 }
 0xa71   : > { %v1972_v14 = vsel %vm1819_vm1, %v1964_v10, 0.0  ;;  %2800 = vmatprep.mubr.msk.f32.mxu0 %vm934_vm10, %v1973_v8  ;;  %v1962_v15 = vpop.permute.xlu1 %1961 }
 0xa72   : > { %v1971_v16 = vsel %vm1819_vm1, %v1962_v15, 0.0  ;;  %2801 = vmatmul.mubr.msk.f32.vlgmr.msra.gmra.mrb[24].mxu0 %vm934_vm10, %v1974_v9  ;;  %v1976_v28 = vmax.f32 %v1944_v2, %v1972_v14 }
 0xa73   : > { %v1975_v11 = vmax.f32 %v1943_v3, %v1971_v16 }
 0xa75   : > { %2803 = vmatprep.mubr.msk.f32.mxu0 %vm934_vm10, %v1975_v11 }
 0xa76   : > { %2804 = vmatmul.mubr.msk.f32.gmra.mrb[26].mxu0 %vm934_vm10, %v1976_v28 }
 0xb45   : > { %v2802_v17 = vpop.f32.mrb[24].mxu0 }
 0xb46   : > { %v2055_v18 = vpop.f32.mrb[25].mxu0 }
 0xb47   : > { %v3346_v19 = vpack.i.bf16 %v2802_v17, %v2055_v18  ;;  %v3106_v20 = vpack.c.bf16 %v2802_v17, %v2055_v18 }
 0xb49   : > { %3347 = vrot.lane.b32.xlu1 %v3346_v19, %s4110_s30  ;;  %v2805_v21 = vpop.f32.mrb[26].mxu0  ;;  %3107 = vmatprep.subr.bf16.mxu1 %v3106_v20 }
 0xb4a   : > { %v2065_v12 = vpop.f32.mrb[27].mxu0  ;;  %3109 = vmatpush3.bf16.msra.mxu1 %v3106_v20 }
 0xb4b   : > { %v3371_v22 = vpack.i.bf16 %v2805_v21, %v2065_v12  ;;  %v3110_v23 = vpack.c.bf16 %v2805_v21, %v2065_v12 }
 0xb4d   : > { %3357 = vrot.lane.b32.xlu1 %v3346_v19, %s4101_s28  ;;  %3352 = vrot.lane.b32.xlu0 %v3371_v22, %s4110_s30 }
 0xb4e   : > { %3111 = vmatprep.subr.bf16.mxu1 %v3110_v23 }
 0xb4f   : > { %3113 = vmatpush3.bf16.msra.mxu1 %v3110_v23 }
 0xb51   : > { %3367 = vrot.lane.b32.xlu1 %v3346_v19, %s3391_s18  ;;  %3362 = vrot.lane.b32.xlu0 %v3371_v22, %s4101_s28 }
 0xb55   : > { %2124 = vperm.xlu1 %3155, %v2078_v24   ;;  %3372 = vrot.lane.b32.xlu0 %v3371_v22, %s3391_s18 }
 0xb59   : > { %2134 = vperm.xlu1 %3155, %v2080_v26   ;;  %2129 = vperm.xlu0 %3154, %v2079_v27  }
 0xb5d   : > { %2139 = vperm.xlu0 %3154, %v2081_v29  }
 0xbbb   : > { %v3348_v30 = vpop.permute.xlu1 %3347 }
 0xbbc   : > { %v3350_v31 = vunpack.i.h.bf16 %v3348_v30  ;;  %v3349_v32 = vunpack.i.l.bf16 %v3348_v30 }
 0xbbe   : > { %v3114_v33 = vpack.c.bf16 %v3350_v31, %v3349_v32 }
 0xbbf   : > { %v3353_v35 = vpop.permute.xlu0 %3352  ;;  %v3358_v36 = vpop.permute.xlu1 %3357 }
 0xbc0   : > { %v3355_v38 = vunpack.i.h.bf16 %v3353_v35  ;;  %v3354_v61 = vunpack.i.l.bf16 %v3353_v35  ;;  %v3360_v37 = vunpack.i.h.bf16 %v3358_v36  ;;  %v3359_v34 = vunpack.i.l.bf16 %v3358_v36  ;;  %3115 = vmatprep.subr.bf16.mxu1 %v3114_v33 }
 0xbc1   : > { %3117 = vmatpush3.bf16.msra.mxu1 %v3114_v33 }
 0xbc2   : > { %v3118_v39 = vpack.c.bf16 %v3355_v38, %v3354_v61  ;;  %v3122_v41 = vpack.c.bf16 %v3360_v37, %v3359_v34 }
 0xbc3   : > { %v3363_v40 = vpop.permute.xlu0 %3362  ;;  %v3368_v45 = vpop.permute.xlu1 %3367 }
 0xbc4   : > { %v3365_v42 = vunpack.i.h.bf16 %v3363_v40  ;;  %v3364_v43 = vunpack.i.l.bf16 %v3363_v40  ;;  %3119 = vmatprep.subr.bf16.mxu1 %v3118_v39  ;;  %v3370_v47 = vunpack.i.h.bf16 %v3368_v45  ;;  %v3369_v48 = vunpack.i.l.bf16 %v3368_v45 }
 0xbc5   : > { %3121 = vmatpush3.bf16.msra.mxu1 %v3118_v39 }
 0xbc6   : > { %3123 = vmatprep.subr.bf16.mxu1 %v3122_v41  ;;  %v3126_v13 = vpack.c.bf16 %v3365_v42, %v3364_v43  ;;  %v3130_v50 = vpack.c.bf16 %v3370_v47, %v3369_v48 }
 0xbc7   : > { %v3373_v49 = vpop.permute.xlu0 %3372 }
 0xbc8   : > { %v3375_v51 = vunpack.i.h.bf16 %v3373_v49  ;;  %v3374_v53 = vunpack.i.l.bf16 %v3373_v49 }
 0xbc9   : > { %3125 = vmatpush3.bf16.msra.mxu1 %v3122_v41 }
 0xbca   : > { %3127 = vmatprep.subr.bf16.mxu1 %v3126_v13  ;;  %v3134_v55 = vpack.c.bf16 %v3375_v51, %v3374_v53 }
 0xbcd   : > { %3129 = vmatpush3.bf16.msra.mxu1 %v3126_v13 }
 0xbce   : > { %3131 = vmatprep.subr.bf16.mxu1 %v3130_v50 }
 0xbd1   : > { %3133 = vmatpush3.bf16.msra.mxu1 %v3130_v50 }
 0xbd2   : > { %3135 = vmatprep.subr.bf16.mxu1 %v3134_v55 }
 0xbd4   : > { %v2125_v54 = vpop.permute.xlu1 %2124 }
 0xbd5   : > { %3137 = vmatpush3.bf16.msra.mxu1 %v3134_v55 }
 0xbd8   : > { %2839 = vmatmul.mubr.f32.vlgmr.msra.gmra.mrb[20].mxu1 %v2075_v44  ;;  %v2130_v52 = vpop.permute.xlu0 %2129  ;;  %v2135_v0 = vpop.permute.xlu1 %2134 }
 0xbd9   : > { %2841 = vmatprep.mubr.f32.mxu1 %v2076_v56 }
 0xbdc   : > { %2842 = vmatmul.mubr.f32.gmra.mrb[22].mxu1 %v2077_v46  ;;  %v2140_v62 = vpop.permute.xlu0 %2139 }
 0xcab   : > { %v2840_v57 = vpop.f32.mrb[20].mxu1 }
 0xcac   : > { %v2214_v58 = vadd.f32 %v2840_v57, %v2130_v52  ;;  %v2208_v59 = vpop.f32.mrb[21].mxu1 }
 0xcad   : > { %v2209_v60 = vadd.f32 %v2208_v59, %v2125_v54 }
 0xcae   : > { %2228 = vst.msk [vmem:[%s545_s0 + $0x8] sm:$0xff] %vm572_vm2, %v2214_v58 }
 0xcaf   : > { %2227 = vst.msk [vmem:[%s545_s0] sm:$0xff] %vm572_vm2, %v2209_v60  ;;  %v2843_v63 = vpop.f32.mrb[22].mxu1 }
 0xcb0   : > { %v2224_v1 = vadd.f32 %v2843_v63, %v2140_v62  ;;  %v2218_v2 = vpop.f32.mrb[23].mxu1 }
 0xcb1   : > { %v2219_v3 = vadd.f32 %v2218_v2, %v2135_v0 }
 0xcb2   : > { %2230 = vst.msk [vmem:[%s545_s0 + $0x18] sm:$0xff] %vm572_vm2, %v2224_v1 }
 0xcb3   : > { %2229 = vst.msk [vmem:[%s545_s0 + $0x10] sm:$0xff] %vm572_vm2, %v2219_v3 }
 0xcb4 PF: > { %s27_s24 = sadd.s32 1, %s3382_s24  }
 0xcb5   : > { %p24_p4 = scmp.ge.s32.totalorder %s27_s24, 4  }
 0xcb7   :  { %26 = sbr.rel (!%p24_p4) target bundleno = 3 (0x3), region = 118 }

</bundles_post_ra>
